<compile_context>
chip_gen: v7x
topology: tpu7x:2x2x1
jax: 0.10.0
libtpu: 0.0.40
codegen_flags: <defaults>
</compile_context>

<pallas_src>
import jax
import jax.numpy as jnp
from jax import lax
from jax.experimental import pallas as pl
from jax.experimental.pallas import tpu as pltpu

# ---- small shapes consistent with the module ----
BATCH = 16          # total batch of query/key images
SUB_BATCH = 8       # self.sub_batch_size (BATCH % SUB_BATCH == 0)
NUM_SUB = BATCH // SUB_BATCH
C_IN = 3
H = W = 16
HW = H * W          # 256 pixels per image (= 2 lane-vregs)
KK = 3 * 3
PATCH = C_IN * KK   # 27 im2col rows per branch
HIDDEN = 32         # synthetic encoder hidden width
DIM = 128           # MoCo projection dim
TEMP = 0.07

NPIX = BATCH * HW   # 4096 lane-dense pixel axis
HID2 = 2 * HIDDEN   # 64 (query ++ key hidden channels)
PATCH2 = 2 * PATCH  # 54 (query ++ key patch rows)
DIM2 = 2 * DIM      # 256 (query ++ key embedding columns)


# -------------------- fused end-to-end kernel --------------------
def end2end_kernel(inv_t_ref, patches_ref, wconv_ref, wfc_ref, labels_ref,
                   sims_ref, loss_ref):
    # inv_t:   SMEM (1,) f32                      1/T
    # patches: (2*PATCH, BATCH*HW)   bf16         rows 0:27 query, 27:54 shuffled-key
    # wconv:   (2*HIDDEN, 2*PATCH)   bf16         block-diag [Wq 0; 0 Wk]
    # wfc:     (2*HIDDEN, 2*DIM)     f32          block-diag [Fq 0; 0 Fk] * (1/HW)
    # labels:  (BATCH, 1) int32                   inverse-permutation labels
    # sims:    (BATCH, BATCH) f32    loss: (1,1) f32

    # conv3x3(pad=1), both branches in ONE bf16 MXU matmul (f32 accumulation)
    feat = jnp.dot(wconv_ref[...], patches_ref[...],
                   preferred_element_type=jnp.float32)      # (64, 4096) lane-dense
    feat = jnp.maximum(feat, 0.0)                           # ReLU (full vregs)

    # global average pool: per-image lane-block sum (256 lanes = 2 vregs each,
    # static 128-aligned slices).  The 1/HW scale is folded into wfc.
    pooled = jnp.concatenate(
        [jnp.sum(feat[:, i * HW:(i + 1) * HW], axis=1, keepdims=True)
         for i in range(BATCH)],
        axis=1)                                              # (64, 16)

    # fc for both branches in one MXU issue (block-diag, N=256), f32:
    #   emb[n, d] = sum_h pooled[h, n] * wfc[h, d]
    emb = lax.dot_general(pooled, wfc_ref[...],
                          dimension_numbers=(((0,), (0,)), ((), ())),
                          preferred_element_type=jnp.float32)  # (16, 256)

    # F.normalize(dim=1): x * rsqrt(max(||x||^2, eps^2)), eps = 1e-12 (f32, EUP)
    q = emb[:, :DIM]                                        # query embeddings (16,128)
    k = emb[:, DIM:]                                        # shuffled key embeddings
    q = q * lax.rsqrt(jnp.maximum(jnp.sum(q * q, axis=1, keepdims=True), 1e-24))
    k = k * lax.rsqrt(jnp.maximum(jnp.sum(k * k, axis=1, keepdims=True), 1e-24))

    # sim = q @ k.T * (1/T)   (f32, tiny matmul)
    sim = lax.dot_general(q, k, dimension_numbers=(((1,), (1,)), ((), ())),
                          preferred_element_type=jnp.float32) * inv_t_ref[0]
    sims_ref[...] = sim                                     # single store

    # cross entropy vs. integer labels (label-indexed pick, no one-hot input)
    m = jnp.max(sim, axis=1, keepdims=True)
    z = sim - m
    logp = z - jnp.log(jnp.sum(jnp.exp(z), axis=1, keepdims=True))
    col = lax.broadcasted_iota(jnp.int32, (BATCH, BATCH), 1)
    picked = jnp.where(col == labels_ref[...], logp, 0.0)
    # per-sub-batch mean CE averaged over sub-batches == mean over the full batch
    loss_ref[...] = -jnp.sum(picked, keepdims=True) * (1.0 / BATCH)


def fused_forward(inv_t, patches, wconv_bd, wfc_bd, labels_col):
    return pl.pallas_call(
        end2end_kernel,
        out_shape=(jax.ShapeDtypeStruct((BATCH, BATCH), jnp.float32),
                   jax.ShapeDtypeStruct((1, 1), jnp.float32)),
        in_specs=[
            pl.BlockSpec(memory_space=pltpu.MemorySpace.SMEM),   # 1/T scalar
            pl.BlockSpec(memory_space=pltpu.MemorySpace.VMEM),   # patches
            pl.BlockSpec(memory_space=pltpu.MemorySpace.VMEM),   # conv weights
            pl.BlockSpec(memory_space=pltpu.MemorySpace.VMEM),   # fc weights
            pl.BlockSpec(memory_space=pltpu.MemorySpace.VMEM),   # labels
        ],
        out_specs=(pl.BlockSpec(memory_space=pltpu.MemorySpace.VMEM),
                   pl.BlockSpec(memory_space=pltpu.MemorySpace.VMEM)),
    )(inv_t, patches, wconv_bd, wfc_bd, labels_col)


# -------------------- plain-JAX glue --------------------
def im2col_rows(x):
    # x: (N, C, H, W) NCHW, 3x3 conv, stride 1, pad 1.
    # Returns (PATCH, N*H*W): rows ordered (c, ky, kx) to match the torch
    # Conv2d weight flatten; lanes ordered n-major, (y, x)-minor.
    n = x.shape[0]
    xp = jnp.pad(x, ((0, 0), (0, 0), (1, 1), (1, 1)))
    rows = [xp[:, c, ky:ky + H, kx:kx + W].reshape(-1)
            for c in range(C_IN) for ky in range(3) for kx in range(3)]
    return jnp.stack(rows, axis=0)                          # (27, N*256)


def make_encoder_params(key):
    k1, k2 = jax.random.split(key)
    fan_in = PATCH
    # Conv2d: kaiming_normal_; Linear fc: normal(0, 0.01).  Both biases are
    # zero-initialized by random_init_ and therefore omitted.
    wconv = jax.random.normal(k1, (HIDDEN, C_IN, 3, 3), jnp.float32) * jnp.sqrt(2.0 / fan_in)
    wconv = wconv.reshape(HIDDEN, PATCH)                     # (HIDDEN, 27)
    wfc = (jax.random.normal(k2, (DIM, HIDDEN), jnp.float32) * 0.01).T   # (HIDDEN, DIM)
    return wconv, wfc


def end2end_forward(query_imgs, key_imgs, q_params, k_params, temp, perm_key):
    n = query_imgs.shape[0]
    # key shuffle + inverse-permutation labels (torch.randperm + scatter_)
    shuffled_idx = jax.random.permutation(perm_key, n)
    labels = jnp.zeros((n,), jnp.int32).at[shuffled_idx].set(
        jnp.arange(n, dtype=jnp.int32))
    # The encoder is purely per-sample, so shuffling the key *images* before
    # encoding is equivalent to shuffling the key embeddings afterwards.
    patches = jnp.concatenate(
        [im2col_rows(query_imgs), im2col_rows(key_imgs[shuffled_idx])],
        axis=0).astype(jnp.bfloat16)                         # (54, N*256)

    # block-diagonal fused weights: [Wq 0; 0 Wk]
    wconv_bd = jnp.zeros((HID2, PATCH2), jnp.float32)
    wconv_bd = wconv_bd.at[:HIDDEN, :PATCH].set(q_params[0])
    wconv_bd = wconv_bd.at[HIDDEN:, PATCH:].set(k_params[0]).astype(jnp.bfloat16)

    wfc_bd = jnp.zeros((HID2, DIM2), jnp.float32)
    wfc_bd = wfc_bd.at[:HIDDEN, :DIM].set(q_params[1])
    wfc_bd = wfc_bd.at[HIDDEN:, DIM:].set(k_params[1])
    wfc_bd = wfc_bd * (1.0 / HW)                             # fold GAP scale

    inv_t = jnp.asarray(1.0 / temp, jnp.float32).reshape(1)
    sims, loss = fused_forward(inv_t, patches, wconv_bd, wfc_bd,
                               labels.reshape(n, 1))
    return loss[0, 0], sims, labels


if __name__ == "__main__":
    root = jax.random.PRNGKey(0)
    kq, kk, kimg_q, kimg_k, kperm = jax.random.split(root, 5)
    q_params = make_encoder_params(kq)   # query_encoder (independent init)
    k_params = make_encoder_params(kk)   # key_encoder   (independent init)

    query_imgs = jax.random.normal(kimg_q, (BATCH, C_IN, H, W), jnp.float32)
    key_imgs = jax.random.normal(kimg_k, (BATCH, C_IN, H, W), jnp.float32)

    forward = jax.jit(end2end_forward)
    loss, sims, labels = forward(query_imgs, key_imgs, q_params, k_params,
                                 TEMP, kperm)
    jax.block_until_ready((loss, sims, labels))

    assert sims.shape == (BATCH, BATCH) and labels.shape == (BATCH,)
    assert bool(jnp.isfinite(loss))
    print("KERNEL_OK")
</pallas_src>

<mosaic_0001>
module attributes {stable_mosaic.version = 11 : i64} {
  func.func @end2end_kernel(%arg0: memref<1xf32, #tpu.memory_space<smem>>, %arg1: memref<54x4096xbf16, #tpu.memory_space<vmem>>, %arg2: memref<64x54xbf16, #tpu.memory_space<vmem>>, %arg3: memref<64x256xf32, #tpu.memory_space<vmem>>, %arg4: memref<16x1xi32, #tpu.memory_space<vmem>>, %arg5: memref<16x16xf32, #tpu.memory_space<vmem>>, %arg6: memref<1x1xf32, #tpu.memory_space<vmem>>) attributes {dimension_semantics = [], scalar_prefetch = 0 : i64, scratch_operands = 0 : i64, tpu.core_type = #tpu.core_type<tc>} {
    %c0 = arith.constant 0 : index
    %c0_0 = arith.constant 0 : index
    %0 = vector.load %arg2[%c0, %c0_0] : memref<64x54xbf16, #tpu.memory_space<vmem>>, vector<64x54xbf16>
    %c0_1 = arith.constant 0 : index
    %c0_2 = arith.constant 0 : index
    %1 = vector.load %arg1[%c0_1, %c0_2] : memref<54x4096xbf16, #tpu.memory_space<vmem>>, vector<54x4096xbf16>
    %cst = arith.constant dense<0.000000e+00> : vector<64x4096xf32>
    %2 = tpu.matmul %0, %1, %cst {dimension_numbers = #tpu.dot_dimension_numbers<[1], [0], [0], [1], [0, 0, 1, 1], [], []>} : vector<64x54xbf16>, vector<54x4096xbf16>, vector<64x4096xf32> -> vector<64x4096xf32>
    %cst_3 = arith.constant 0.000000e+00 : f32
    %3 = vector.broadcast %cst_3 : f32 to vector<64x4096xf32>
    %4 = arith.maximumf %2, %3 : vector<64x4096xf32>
    %5 = vector.extract_strided_slice %4 {offsets = [0, 0], sizes = [64, 256], strides = [1, 1]} : vector<64x4096xf32> to vector<64x256xf32>
    %cst_4 = arith.constant dense<0.000000e+00> : vector<64xf32>
    %6 = vector.multi_reduction <add>, %5, %cst_4 [1] : vector<64x256xf32> to vector<64xf32>
    %7 = vector.shape_cast %6 : vector<64xf32> to vector<64x1xf32>
    %8 = vector.extract_strided_slice %4 {offsets = [0, 256], sizes = [64, 256], strides = [1, 1]} : vector<64x4096xf32> to vector<64x256xf32>
    %cst_5 = arith.constant dense<0.000000e+00> : vector<64xf32>
    %9 = vector.multi_reduction <add>, %8, %cst_5 [1] : vector<64x256xf32> to vector<64xf32>
    %10 = vector.shape_cast %9 : vector<64xf32> to vector<64x1xf32>
    %11 = vector.extract_strided_slice %4 {offsets = [0, 512], sizes = [64, 256], strides = [1, 1]} : vector<64x4096xf32> to vector<64x256xf32>
    %cst_6 = arith.constant dense<0.000000e+00> : vector<64xf32>
    %12 = vector.multi_reduction <add>, %11, %cst_6 [1] : vector<64x256xf32> to vector<64xf32>
    %13 = vector.shape_cast %12 : vector<64xf32> to vector<64x1xf32>
    %14 = vector.extract_strided_slice %4 {offsets = [0, 768], sizes = [64, 256], strides = [1, 1]} : vector<64x4096xf32> to vector<64x256xf32>
    %cst_7 = arith.constant dense<0.000000e+00> : vector<64xf32>
    %15 = vector.multi_reduction <add>, %14, %cst_7 [1] : vector<64x256xf32> to vector<64xf32>
    %16 = vector.shape_cast %15 : vector<64xf32> to vector<64x1xf32>
    %17 = vector.extract_strided_slice %4 {offsets = [0, 1024], sizes = [64, 256], strides = [1, 1]} : vector<64x4096xf32> to vector<64x256xf32>
    %cst_8 = arith.constant dense<0.000000e+00> : vector<64xf32>
    %18 = vector.multi_reduction <add>, %17, %cst_8 [1] : vector<64x256xf32> to vector<64xf32>
    %19 = vector.shape_cast %18 : vector<64xf32> to vector<64x1xf32>
    %20 = vector.extract_strided_slice %4 {offsets = [0, 1280], sizes = [64, 256], strides = [1, 1]} : vector<64x4096xf32> to vector<64x256xf32>
    %cst_9 = arith.constant dense<0.000000e+00> : vector<64xf32>
    %21 = vector.multi_reduction <add>, %20, %cst_9 [1] : vector<64x256xf32> to vector<64xf32>
    %22 = vector.shape_cast %21 : vector<64xf32> to vector<64x1xf32>
    %23 = vector.extract_strided_slice %4 {offsets = [0, 1536], sizes = [64, 256], strides = [1, 1]} : vector<64x4096xf32> to vector<64x256xf32>
    %cst_10 = arith.constant dense<0.000000e+00> : vector<64xf32>
    %24 = vector.multi_reduction <add>, %23, %cst_10 [1] : vector<64x256xf32> to vector<64xf32>
    %25 = vector.shape_cast %24 : vector<64xf32> to vector<64x1xf32>
    %26 = vector.extract_strided_slice %4 {offsets = [0, 1792], sizes = [64, 256], strides = [1, 1]} : vector<64x4096xf32> to vector<64x256xf32>
    %cst_11 = arith.constant dense<0.000000e+00> : vector<64xf32>
    %27 = vector.multi_reduction <add>, %26, %cst_11 [1] : vector<64x256xf32> to vector<64xf32>
    %28 = vector.shape_cast %27 : vector<64xf32> to vector<64x1xf32>
    %29 = vector.extract_strided_slice %4 {offsets = [0, 2048], sizes = [64, 256], strides = [1, 1]} : vector<64x4096xf32> to vector<64x256xf32>
    %cst_12 = arith.constant dense<0.000000e+00> : vector<64xf32>
    %30 = vector.multi_reduction <add>, %29, %cst_12 [1] : vector<64x256xf32> to vector<64xf32>
    %31 = vector.shape_cast %30 : vector<64xf32> to vector<64x1xf32>
    %32 = vector.extract_strided_slice %4 {offsets = [0, 2304], sizes = [64, 256], strides = [1, 1]} : vector<64x4096xf32> to vector<64x256xf32>
    %cst_13 = arith.constant dense<0.000000e+00> : vector<64xf32>
    %33 = vector.multi_reduction <add>, %32, %cst_13 [1] : vector<64x256xf32> to vector<64xf32>
    %34 = vector.shape_cast %33 : vector<64xf32> to vector<64x1xf32>
    %35 = vector.extract_strided_slice %4 {offsets = [0, 2560], sizes = [64, 256], strides = [1, 1]} : vector<64x4096xf32> to vector<64x256xf32>
    %cst_14 = arith.constant dense<0.000000e+00> : vector<64xf32>
    %36 = vector.multi_reduction <add>, %35, %cst_14 [1] : vector<64x256xf32> to vector<64xf32>
    %37 = vector.shape_cast %36 : vector<64xf32> to vector<64x1xf32>
    %38 = vector.extract_strided_slice %4 {offsets = [0, 2816], sizes = [64, 256], strides = [1, 1]} : vector<64x4096xf32> to vector<64x256xf32>
    %cst_15 = arith.constant dense<0.000000e+00> : vector<64xf32>
    %39 = vector.multi_reduction <add>, %38, %cst_15 [1] : vector<64x256xf32> to vector<64xf32>
    %40 = vector.shape_cast %39 : vector<64xf32> to vector<64x1xf32>
    %41 = vector.extract_strided_slice %4 {offsets = [0, 3072], sizes = [64, 256], strides = [1, 1]} : vector<64x4096xf32> to vector<64x256xf32>
    %cst_16 = arith.constant dense<0.000000e+00> : vector<64xf32>
    %42 = vector.multi_reduction <add>, %41, %cst_16 [1] : vector<64x256xf32> to vector<64xf32>
    %43 = vector.shape_cast %42 : vector<64xf32> to vector<64x1xf32>
    %44 = vector.extract_strided_slice %4 {offsets = [0, 3328], sizes = [64, 256], strides = [1, 1]} : vector<64x4096xf32> to vector<64x256xf32>
    %cst_17 = arith.constant dense<0.000000e+00> : vector<64xf32>
    %45 = vector.multi_reduction <add>, %44, %cst_17 [1] : vector<64x256xf32> to vector<64xf32>
    %46 = vector.shape_cast %45 : vector<64xf32> to vector<64x1xf32>
    %47 = vector.extract_strided_slice %4 {offsets = [0, 3584], sizes = [64, 256], strides = [1, 1]} : vector<64x4096xf32> to vector<64x256xf32>
    %cst_18 = arith.constant dense<0.000000e+00> : vector<64xf32>
    %48 = vector.multi_reduction <add>, %47, %cst_18 [1] : vector<64x256xf32> to vector<64xf32>
    %49 = vector.shape_cast %48 : vector<64xf32> to vector<64x1xf32>
    %50 = vector.extract_strided_slice %4 {offsets = [0, 3840], sizes = [64, 256], strides = [1, 1]} : vector<64x4096xf32> to vector<64x256xf32>
    %cst_19 = arith.constant dense<0.000000e+00> : vector<64xf32>
    %51 = vector.multi_reduction <add>, %50, %cst_19 [1] : vector<64x256xf32> to vector<64xf32>
    %52 = vector.shape_cast %51 : vector<64xf32> to vector<64x1xf32>
    %53 = tpu.concatenate %7, %10, %13, %16, %19, %22, %25, %28, %31, %34, %37, %40, %43, %46, %49, %52 in 1 : vector<64x1xf32>, vector<64x1xf32>, vector<64x1xf32>, vector<64x1xf32>, vector<64x1xf32>, vector<64x1xf32>, vector<64x1xf32>, vector<64x1xf32>, vector<64x1xf32>, vector<64x1xf32>, vector<64x1xf32>, vector<64x1xf32>, vector<64x1xf32>, vector<64x1xf32>, vector<64x1xf32>, vector<64x1xf32> -> vector<64x16xf32>
    %c0_20 = arith.constant 0 : index
    %c0_21 = arith.constant 0 : index
    %54 = vector.load %arg3[%c0_20, %c0_21] : memref<64x256xf32, #tpu.memory_space<vmem>>, vector<64x256xf32>
    %cst_22 = arith.constant dense<0.000000e+00> : vector<16x256xf32>
    %55 = tpu.matmul %53, %54, %cst_22 {dimension_numbers = #tpu.dot_dimension_numbers<[0], [0], [1], [1], [0, 1, 1, 1], [], []>} : vector<64x16xf32>, vector<64x256xf32>, vector<16x256xf32> -> vector<16x256xf32>
    %56 = vector.extract_strided_slice %55 {offsets = [0, 0], sizes = [16, 128], strides = [1, 1]} : vector<16x256xf32> to vector<16x128xf32>
    %57 = vector.extract_strided_slice %55 {offsets = [0, 128], sizes = [16, 128], strides = [1, 1]} : vector<16x256xf32> to vector<16x128xf32>
    %58 = arith.mulf %56, %56 : vector<16x128xf32>
    %cst_23 = arith.constant dense<0.000000e+00> : vector<16xf32>
    %59 = vector.multi_reduction <add>, %58, %cst_23 [1] : vector<16x128xf32> to vector<16xf32>
    %60 = vector.shape_cast %59 : vector<16xf32> to vector<16x1xf32>
    %cst_24 = arith.constant 1.000000e-24 : f32
    %61 = vector.broadcast %cst_24 : f32 to vector<16x1xf32>
    %62 = arith.maximumf %60, %61 : vector<16x1xf32>
    %63 = math.rsqrt %62 : vector<16x1xf32>
    %64 = vector.broadcast %63 : vector<16x1xf32> to vector<16x128xf32>
    %65 = arith.mulf %56, %64 : vector<16x128xf32>
    %66 = arith.mulf %57, %57 : vector<16x128xf32>
    %cst_25 = arith.constant dense<0.000000e+00> : vector<16xf32>
    %67 = vector.multi_reduction <add>, %66, %cst_25 [1] : vector<16x128xf32> to vector<16xf32>
    %68 = vector.shape_cast %67 : vector<16xf32> to vector<16x1xf32>
    %cst_26 = arith.constant 1.000000e-24 : f32
    %69 = vector.broadcast %cst_26 : f32 to vector<16x1xf32>
    %70 = arith.maximumf %68, %69 : vector<16x1xf32>
    %71 = math.rsqrt %70 : vector<16x1xf32>
    %72 = vector.broadcast %71 : vector<16x1xf32> to vector<16x128xf32>
    %73 = arith.mulf %57, %72 : vector<16x128xf32>
    %cst_27 = arith.constant dense<0.000000e+00> : vector<16x16xf32>
    %74 = tpu.matmul %65, %73, %cst_27 {dimension_numbers = #tpu.dot_dimension_numbers<[1], [1], [0], [0], [0, 0, 1, 0], [], []>} : vector<16x128xf32>, vector<16x128xf32>, vector<16x16xf32> -> vector<16x16xf32>
    %c0_28 = arith.constant 0 : index
    %75 = memref.load %arg0[%c0_28] : memref<1xf32, #tpu.memory_space<smem>>
    %76 = vector.broadcast %75 : f32 to vector<16x16xf32>
    %77 = arith.mulf %74, %76 : vector<16x16xf32>
    %c0_29 = arith.constant 0 : index
    %c0_30 = arith.constant 0 : index
    %78 = vector.load %arg5[%c0_29, %c0_30] : memref<16x16xf32, #tpu.memory_space<vmem>>, vector<16x16xf32>
    tpu.vector_store %arg5[%c0_29, %c0_30], %77 {strides = array<i32>} : memref<16x16xf32, #tpu.memory_space<vmem>>, vector<16x16xf32>,
    %cst_31 = arith.constant dense<0xFF800000> : vector<16xf32>
    %79 = vector.multi_reduction <maximumf>, %77, %cst_31 [1] : vector<16x16xf32> to vector<16xf32>
    %80 = vector.shape_cast %79 : vector<16xf32> to vector<16x1xf32>
    %81 = vector.broadcast %80 : vector<16x1xf32> to vector<16x16xf32>
    %82 = arith.subf %77, %81 : vector<16x16xf32>
    %83 = math.exp %82 : vector<16x16xf32>
    %cst_32 = arith.constant dense<0.000000e+00> : vector<16xf32>
    %84 = vector.multi_reduction <add>, %83, %cst_32 [1] : vector<16x16xf32> to vector<16xf32>
    %85 = vector.shape_cast %84 : vector<16xf32> to vector<16x1xf32>
    %86 = math.log %85 : vector<16x1xf32>
    %87 = vector.broadcast %86 : vector<16x1xf32> to vector<16x16xf32>
    %88 = arith.subf %82, %87 : vector<16x16xf32>
    %89 = tpu.iota {dimensions = array<i32: 1>} : vector<16x16xi32>
    %c0_33 = arith.constant 0 : index
    %c0_34 = arith.constant 0 : index
    %90 = vector.load %arg4[%c0_33, %c0_34] : memref<16x1xi32, #tpu.memory_space<vmem>>, vector<16x1xi32>
    %91 = vector.broadcast %90 : vector<16x1xi32> to vector<16x16xi32>
    %92 = arith.cmpi eq, %89, %91 : vector<16x16xi32>
    %cst_35 = arith.constant 0.000000e+00 : f32
    %93 = vector.broadcast %cst_35 : f32 to vector<16x16xf32>
    %94 = arith.select %92, %88, %93 : vector<16x16xi1>, vector<16x16xf32>
    %95 = vector.shape_cast %94 : vector<16x16xf32> to vector<1x16x16xf32>
    %cst_36 = arith.constant dense<0.000000e+00> : vector<1xf32>
    %96 = vector.multi_reduction <add>, %95, %cst_36 [1, 2] : vector<1x16x16xf32> to vector<1xf32>
    %97 = vector.shape_cast %96 : vector<1xf32> to vector<1x1x1xf32>
    %98 = vector.extract %97[0, 0, 0] : f32 from vector<1x1x1xf32>
    %99 = vector.broadcast %98 : f32 to vector<1x1xf32>
    %cst_37 = arith.constant 0.000000e+00 : f32
    %100 = vector.broadcast %cst_37 : f32 to vector<1x1xf32>
    %101 = arith.subf %100, %99 : vector<1x1xf32>
    %cst_38 = arith.constant 6.250000e-02 : f32
    %102 = vector.broadcast %cst_38 : f32 to vector<1x1xf32>
    %103 = arith.mulf %101, %102 : vector<1x1xf32>
    %c0_39 = arith.constant 0 : index
    %c0_40 = arith.constant 0 : index
    %104 = vector.load %arg6[%c0_39, %c0_40] : memref<1x1xf32, #tpu.memory_space<vmem>>, vector<1x1xf32>
    tpu.vector_store %arg6[%c0_39, %c0_40], %103 {strides = array<i32>} : memref<1x1xf32, #tpu.memory_space<vmem>>, vector<1x1xf32>,
    return
  }
}

</mosaic_0001>

<bundles_post_ra>
// kernel: squeeze.0
= control target key start
LH: loop header
LB: loop body
LE: loop exit
PB: predicated region body
PF: predicated region fallthrough
CT: control target
= control target key end

     0   :  { %vm515_vm0 = vcmask 1047556   ;;  %s1407_s9 = smov 112   ;;  %s1408_s10 = smov 80   ;;  %vm517_vm1 = vcmask 130048   ;;  %vm611_vm2 = vcmask 917248   ;;  %vm561_vm3 = vcmask 1048448   ;;  %s1656_s0 = inlined_call_operand.vmem [shape: bf16[16,1,16,16], index: 0, kind: input, shape index: {}]   ;;  %s1657_s1 = inlined_call_operand.vmem [shape: bf16[1,4096], index: 1, kind: output, shape index: {}]  }
   0x1   :  { %v1321_v0 = vld [vmem:[%s1656_s0 + $0x38] sm:$0xff]   ;;  %v1322_v1 = vld [vmem:[%s1656_s0 + $0x30] sm:$0xff]   ;;  %v1323_v2 = vld [vmem:[%s1656_s0 + $0x28] sm:$0xff]   ;;  %s1409_s11 = smov 64   ;;  %s1410_s12 = smov 48   ;;  %vm661_vm4 = vcmask 786048  }
   0x2   :  { %v1283_v3 = vunpack.c.l.bf16 %v1321_v0  ;;  %v1284_v4 = vunpack.c.h.bf16 %v1321_v0  ;;  %v1287_v5 = vunpack.c.l.bf16 %v1322_v1  ;;  %v1288_v6 = vunpack.c.h.bf16 %v1322_v1  ;;  %v1324_v7 = vld [vmem:[%s1656_s0 + $0x20] sm:$0xff]   ;;  %v1325_v8 = vld [vmem:[%s1656_s0 + $0x18] sm:$0xff]   ;;  %v1326_v9 = vld [vmem:[%s1656_s0 + $0x10] sm:$0xff]   ;;  %s1411_s13 = smov 32   ;;  %s1412_s14 = smov 16  }
   0x3   :  { %v1291_v10 = vunpack.c.l.bf16 %v1323_v2  ;;  %v1292_v11 = vunpack.c.h.bf16 %v1323_v2  ;;  %v1295_v12 = vunpack.c.l.bf16 %v1324_v7  ;;  %v1296_v13 = vunpack.c.h.bf16 %v1324_v7  ;;  %v1327_v14 = vld [vmem:[%s1656_s0 + $0x8] sm:$0xff]   ;;  %v1310_v15 = vld [vmem:[%s1656_s0] sm:$0xff]   ;;  %v1313_v16 = vld [vmem:[%s1656_s0 + $0x78] sm:$0xff]  }
   0x4   :  { %276 = vst [vmem:[#allocation1 + $0x78] sm:$0xff] %v1284_v4  ;;  %292 = vst [vmem:[#allocation1 + $0x70] sm:$0xff] %v1283_v3  ;;  %v1299_v17 = vunpack.c.l.bf16 %v1325_v8  ;;  %v1300_v18 = vunpack.c.h.bf16 %v1325_v8  ;;  %v1303_v19 = vunpack.c.l.bf16 %v1326_v9  ;;  %v1304_v20 = vunpack.c.h.bf16 %v1326_v9  ;;  %v1314_v21 = vld [vmem:[%s1656_s0 + $0x70] sm:$0xff]   ;;  %v1315_v22 = vld [vmem:[%s1656_s0 + $0x68] sm:$0xff]  }
   0x5   :  { %308 = vst [vmem:[#allocation1 + $0x68] sm:$0xff] %v1288_v6  ;;  %324 = vst [vmem:[#allocation1 + $0x60] sm:$0xff] %v1287_v5  ;;  %v1316_v23 = vld [vmem:[%s1656_s0 + $0x60] sm:$0xff]   ;;  %v1307_v24 = vunpack.c.l.bf16 %v1327_v14  ;;  %v1308_v25 = vunpack.c.h.bf16 %v1327_v14  ;;  %v1311_v26 = vunpack.c.l.bf16 %v1310_v15  ;;  %v1312_v27 = vunpack.c.h.bf16 %v1310_v15  ;;  %v1317_v28 = vld [vmem:[%s1656_s0 + $0x58] sm:$0xff]  }
   0x6   :  { %340 = vst [vmem:[#allocation1 + $0x58] sm:$0xff] %v1292_v11  ;;  %356 = vst [vmem:[#allocation1 + $0x50] sm:$0xff] %v1291_v10  ;;  %v1318_v29 = vld [vmem:[%s1656_s0 + $0x50] sm:$0xff]   ;;  %v1251_v30 = vunpack.c.l.bf16 %v1313_v16  ;;  %v1252_v31 = vunpack.c.h.bf16 %v1313_v16  ;;  %v1255_v32 = vunpack.c.l.bf16 %v1314_v21  ;;  %v1256_v33 = vunpack.c.h.bf16 %v1314_v21  ;;  %v1319_v34 = vld [vmem:[%s1656_s0 + $0x48] sm:$0xff]  }
   0x7   :  { %372 = vst [vmem:[#allocation1 + $0x48] sm:$0xff] %v1296_v13  ;;  %388 = vst [vmem:[#allocation1 + $0x40] sm:$0xff] %v1295_v12  ;;  %v1320_v35 = vld [vmem:[%s1656_s0 + $0x40] sm:$0xff]   ;;  %v1259_v36 = vunpack.c.l.bf16 %v1315_v22  ;;  %v1260_v37 = vunpack.c.h.bf16 %v1315_v22  ;;  %v1263_v38 = vunpack.c.l.bf16 %v1316_v23  ;;  %v1264_v39 = vunpack.c.h.bf16 %v1316_v23  ;;  %s1406_s0 = smov 96  }
   0x8   :  { %404 = vst [vmem:[#allocation1 + $0x38] sm:$0xff] %v1300_v18  ;;  %420 = vst [vmem:[#allocation1 + $0x30] sm:$0xff] %v1299_v17  ;;  %v1267_v40 = vunpack.c.l.bf16 %v1317_v28  ;;  %v1268_v41 = vunpack.c.h.bf16 %v1317_v28  ;;  %v1271_v42 = vunpack.c.l.bf16 %v1318_v29  ;;  %v1272_v43 = vunpack.c.h.bf16 %v1318_v29 }
   0x9   :  { %436 = vst [vmem:[#allocation1 + $0x28] sm:$0xff] %v1304_v20  ;;  %452 = vst [vmem:[#allocation1 + $0x20] sm:$0xff] %v1303_v19  ;;  %v1275_v44 = vunpack.c.l.bf16 %v1319_v34  ;;  %v1276_v45 = vunpack.c.h.bf16 %v1319_v34  ;;  %v1279_v46 = vunpack.c.l.bf16 %v1320_v35  ;;  %v1280_v47 = vunpack.c.h.bf16 %v1320_v35 }
   0xa   :  { %468 = vst [vmem:[#allocation1 + $0x18] sm:$0xff] %v1308_v25  ;;  %484 = vst [vmem:[#allocation1 + $0x10] sm:$0xff] %v1307_v24  ;;  %vm711_vm5 = vcmask 654848   ;;  %vm761_vm6 = vcmask 523648   ;;  %vm811_vm7 = vcmask 392448   ;;  %vm861_vm8 = vcmask 261248  }
   0xb   :  { %499 = vst [vmem:[#allocation1 + $0x8] sm:$0xff] %v1312_v27  ;;  %512 = vst [vmem:[#allocation1] sm:$0xff] %v1311_v26 }
   0xc   :  { %20 = vst [vmem:[#allocation1 + $0xf8] sm:$0xff] %v1252_v31  ;;  %36 = vst [vmem:[#allocation1 + $0xf0] sm:$0xff] %v1251_v30  ;;  %v617_v48 = vld [vmem:[#allocation1 + $0x46] ss:$8 sm:$0xf0]  }
   0xd   :  { %52 = vst [vmem:[#allocation1 + $0xe8] sm:$0xff] %v1256_v33  ;;  %68 = vst [vmem:[#allocation1 + $0xe0] sm:$0xff] %v1255_v32  ;;  %v567_v49 = vld [vmem:[#allocation1 + $0x47] ss:$8 sm:$0xf0]  }
   0xe   :  { %84 = vst [vmem:[#allocation1 + $0xd8] sm:$0xff] %v1260_v37  ;;  %100 = vst [vmem:[#allocation1 + $0xd0] sm:$0xff] %v1259_v36  ;;  %v615_v50 = vld [vmem:[#allocation1 + $0x46] ss:$8 sm:$0xf]  }
   0xf   :  { %116 = vst [vmem:[#allocation1 + $0xc8] sm:$0xff] %v1264_v39  ;;  %132 = vst [vmem:[#allocation1 + $0xc0] sm:$0xff] %v1263_v38  ;;  %v565_v51 = vld [vmem:[#allocation1 + $0x47] ss:$8 sm:$0xf]   ;;  %v619_v53 = vsel %vm515_vm0, %v617_v48, %v615_v50 }
  0x10   :  { %148 = vst [vmem:[#allocation1 + $0xb8] sm:$0xff] %v1268_v41  ;;  %164 = vst [vmem:[#allocation1 + $0xb0] sm:$0xff] %v1267_v40  ;;  %v606_v52 = vld [vmem:[#allocation1 + $0x6] ss:$8 sm:$0xf0]   ;;  %v569_v55 = vsel %vm515_vm0, %v567_v49, %v565_v51 }
  0x11   :  { %180 = vst [vmem:[#allocation1 + $0xa8] sm:$0xff] %v1272_v43  ;;  %196 = vst [vmem:[#allocation1 + $0xa0] sm:$0xff] %v1271_v42  ;;  %v556_v54 = vld [vmem:[#allocation1 + $0x7] ss:$8 sm:$0xf0]  }
  0x12   :  { %212 = vst [vmem:[#allocation1 + $0x98] sm:$0xff] %v1276_v45  ;;  %228 = vst [vmem:[#allocation1 + $0x90] sm:$0xff] %v1275_v44  ;;  %v604_v56 = vld [vmem:[#allocation1 + $0x6] ss:$8 sm:$0xf]  }
  0x13   :  { %244 = vst [vmem:[#allocation1 + $0x88] sm:$0xff] %v1280_v47  ;;  %260 = vst [vmem:[#allocation1 + $0x80] sm:$0xff] %v1279_v46  ;;  %v554_v57 = vld [vmem:[#allocation1 + $0x7] ss:$8 sm:$0xf]   ;;  %v608_v58 = vsel %vm515_vm0, %v606_v52, %v604_v56 }
  0x14   :  { %v558_v59 = vsel %vm515_vm0, %v556_v54, %v554_v57  ;;  %v643_v60 = vld [vmem:[#allocation1 + $0xc6] ss:$8 sm:$0xf0]   ;;  %v593_v61 = vld [vmem:[#allocation1 + $0xc7] ss:$8 sm:$0xf0]   ;;  %v1346_v62 = vpack.i.bf16 %v619_v53, %v608_v58 }
  0x15   :  { %v1336_v63 = vpack.i.bf16 %v569_v55, %v558_v59  ;;  %v693_v16 = vld [vmem:[#allocation1 + $0xc5] ss:$8 sm:$0xf0]   ;;  %v743_v30 = vld [vmem:[#allocation1 + $0xc4] ss:$8 sm:$0xf0]  }
  0x16   :  { %v641_v0 = vld [vmem:[#allocation1 + $0xc6] ss:$8 sm:$0xf]   ;;  %v591_v1 = vld [vmem:[#allocation1 + $0xc7] ss:$8 sm:$0xf]   ;;  %1347 = vrot.lane.b32.xlu1 %v1346_v62, %s1406_s0 }
  0x17   :  { %v645_v3 = vsel %vm515_vm0, %v643_v60, %v641_v0  ;;  %v595_v5 = vsel %vm515_vm0, %v593_v61, %v591_v1  ;;  %1337 = vrot.lane.b32.xlu0 %v1336_v63, %s1407_s9  ;;  %v691_v15 = vld [vmem:[#allocation1 + $0xc5] ss:$8 sm:$0xf]   ;;  %v741_v29 = vld [vmem:[#allocation1 + $0xc4] ss:$8 sm:$0xf]  }
  0x18   :  { %v630_v2 = vld [vmem:[#allocation1 + $0x86] ss:$8 sm:$0xf0]   ;;  %v580_v4 = vld [vmem:[#allocation1 + $0x87] ss:$8 sm:$0xf0]   ;;  %v695_v17 = vsel %vm515_vm0, %v693_v16, %v691_v15  ;;  %v745_v31 = vsel %vm515_vm0, %v743_v30, %v741_v29 }
  0x19   :  { %v680_v11 = vld [vmem:[#allocation1 + $0x85] ss:$8 sm:$0xf0]   ;;  %v730_v26 = vld [vmem:[#allocation1 + $0x84] ss:$8 sm:$0xf0]  }
  0x1a   :  { %v628_v6 = vld [vmem:[#allocation1 + $0x86] ss:$8 sm:$0xf]   ;;  %v578_v7 = vld [vmem:[#allocation1 + $0x87] ss:$8 sm:$0xf]  }
  0x1b   :  { %v632_v8 = vsel %vm515_vm0, %v630_v2, %v628_v6  ;;  %v582_v9 = vsel %vm515_vm0, %v580_v4, %v578_v7  ;;  %v678_v10 = vld [vmem:[#allocation1 + $0x85] ss:$8 sm:$0xf]   ;;  %v728_v25 = vld [vmem:[#allocation1 + $0x84] ss:$8 sm:$0xf]  }
  0x1c   :  { %v1351_v12 = vpack.i.bf16 %v645_v3, %v632_v8  ;;  %v1341_v13 = vpack.i.bf16 %v595_v5, %v582_v9  ;;  %v682_v14 = vsel %vm515_vm0, %v680_v11, %v678_v10  ;;  %v654_v18 = vld [vmem:[#allocation1 + $0x5] ss:$8 sm:$0xf]   ;;  %v732_v28 = vsel %vm515_vm0, %v730_v26, %v728_v25  ;;  %v704_v32 = vld [vmem:[#allocation1 + $0x4] ss:$8 sm:$0xf]  }
  0x1d   :  { %v656_v19 = vld [vmem:[#allocation1 + $0x5] ss:$8 sm:$0xf0]   ;;  %v1361_v20 = vpack.i.bf16 %v695_v17, %v682_v14  ;;  %v706_v33 = vld [vmem:[#allocation1 + $0x4] ss:$8 sm:$0xf0]   ;;  %v1371_v34 = vpack.i.bf16 %v745_v31, %v732_v28 }
  0x1e   :  { %1352 = vrot.lane.b32.xlu1 %v1351_v12, %s1406_s0  ;;  %1342 = vrot.lane.b32.xlu0 %v1341_v13, %s1407_s9  ;;  %v658_v21 = vsel %vm515_vm0, %v656_v19, %v654_v18  ;;  %v665_v22 = vld [vmem:[#allocation1 + $0x45] ss:$8 sm:$0xf]   ;;  %v708_v35 = vsel %vm515_vm0, %v706_v33, %v704_v32  ;;  %v715_v36 = vld [vmem:[#allocation1 + $0x44] ss:$8 sm:$0xf]  }
  0x1f   :  { %v667_v23 = vld [vmem:[#allocation1 + $0x45] ss:$8 sm:$0xf0]   ;;  %v717_v37 = vld [vmem:[#allocation1 + $0x44] ss:$8 sm:$0xf0]  }
  0x20   :  { %v669_v24 = vsel %vm515_vm0, %v667_v23, %v665_v22  ;;  %v719_v38 = vsel %vm515_vm0, %v717_v37, %v715_v36  ;;  %v778_v39 = vld [vmem:[#allocation1 + $0x83] ss:$8 sm:$0xf]   ;;  %v828_v53 = vld [vmem:[#allocation1 + $0x82] ss:$8 sm:$0xf]  }
  0x21   :  { %v1356_v27 = vpack.i.bf16 %v669_v24, %v658_v21  ;;  %v780_v40 = vld [vmem:[#allocation1 + $0x83] ss:$8 sm:$0xf0]   ;;  %v1366_v41 = vpack.i.bf16 %v719_v38, %v708_v35  ;;  %v830_v54 = vld [vmem:[#allocation1 + $0x82] ss:$8 sm:$0xf0]  }
  0x22   :  { %1362 = vrot.lane.b32.xlu1 %v1361_v20, %s1408_s10  ;;  %v782_v42 = vsel %vm515_vm0, %v780_v40, %v778_v39  ;;  %v791_v43 = vld [vmem:[#allocation1 + $0xc3] ss:$8 sm:$0xf]   ;;  %v832_v56 = vsel %vm515_vm0, %v830_v54, %v828_v53  ;;  %v841_v57 = vld [vmem:[#allocation1 + $0xc2] ss:$8 sm:$0xf]  }
  0x23   :  { %1357 = vrot.lane.b32.xlu0 %v1356_v27, %s1408_s10  ;;  %v793_v44 = vld [vmem:[#allocation1 + $0xc3] ss:$8 sm:$0xf0]   ;;  %v843_v58 = vld [vmem:[#allocation1 + $0xc2] ss:$8 sm:$0xf0]  }
  0x24   :  { %v795_v45 = vsel %vm515_vm0, %v793_v44, %v791_v43  ;;  %v754_v46 = vld [vmem:[#allocation1 + $0x3] ss:$8 sm:$0xf]   ;;  %v845_v59 = vsel %vm515_vm0, %v843_v58, %v841_v57  ;;  %v804_v60 = vld [vmem:[#allocation1 + $0x2] ss:$8 sm:$0xf]  }
  0x25   :  { %v756_v47 = vld [vmem:[#allocation1 + $0x3] ss:$8 sm:$0xf0]   ;;  %v1381_v48 = vpack.i.bf16 %v795_v45, %v782_v42  ;;  %v806_v61 = vld [vmem:[#allocation1 + $0x2] ss:$8 sm:$0xf0]   ;;  %v1391_v62 = vpack.i.bf16 %v845_v59, %v832_v56 }
  0x26   :  { %1372 = vrot.lane.b32.xlu1 %v1371_v34, %s1409_s11  ;;  %v758_v49 = vsel %vm515_vm0, %v756_v47, %v754_v46  ;;  %v765_v50 = vld [vmem:[#allocation1 + $0x43] ss:$8 sm:$0xf]   ;;  %v808_v63 = vsel %vm515_vm0, %v806_v61, %v804_v60  ;;  %v815_v0 = vld [vmem:[#allocation1 + $0x42] ss:$8 sm:$0xf]  }
  0x27   :  { %1367 = vrot.lane.b32.xlu0 %v1366_v41, %s1409_s11  ;;  %v767_v51 = vld [vmem:[#allocation1 + $0x43] ss:$8 sm:$0xf0]   ;;  %v817_v1 = vld [vmem:[#allocation1 + $0x42] ss:$8 sm:$0xf0]  }
  0x28   :  { %v769_v52 = vsel %vm515_vm0, %v767_v51, %v765_v50  ;;  %v819_v2 = vsel %vm515_vm0, %v817_v1, %v815_v0  ;;  %v878_v3 = vld [vmem:[#allocation1 + $0x81] ss:$8 sm:$0xf]   ;;  %v513_v17 = vld [vmem:[#allocation1] ss:$8 sm:$0xf]  }
  0x29   :  { %v1376_v55 = vpack.i.bf16 %v769_v52, %v758_v49  ;;  %v880_v4 = vld [vmem:[#allocation1 + $0x81] ss:$8 sm:$0xf0]   ;;  %v1386_v5 = vpack.i.bf16 %v819_v2, %v808_v63  ;;  %v514_v18 = vld [vmem:[#allocation1] ss:$8 sm:$0xf0]  }
  0x2a   :  { %1382 = vrot.lane.b32.xlu1 %v1381_v48, %s1410_s12  ;;  %v882_v6 = vsel %vm515_vm0, %v880_v4, %v878_v3  ;;  %v891_v7 = vld [vmem:[#allocation1 + $0xc1] ss:$8 sm:$0xf]   ;;  %v516_v20 = vsel %vm515_vm0, %v514_v18, %v513_v17  ;;  %v521_v21 = vld [vmem:[#allocation1 + $0x40] ss:$8 sm:$0xf]  }
  0x2b   :  { %1377 = vrot.lane.b32.xlu0 %v1376_v55, %s1410_s12  ;;  %v893_v8 = vld [vmem:[#allocation1 + $0xc1] ss:$8 sm:$0xf0]   ;;  %v523_v22 = vld [vmem:[#allocation1 + $0x40] ss:$8 sm:$0xf0]  }
  0x2c   :  { %v895_v9 = vsel %vm515_vm0, %v893_v8, %v891_v7  ;;  %v854_v10 = vld [vmem:[#allocation1 + $0x1] ss:$8 sm:$0xf]   ;;  %518 = vst.msk [vmem:[#allocation0] ss:$8 sm:$0xf] %vm517_vm1, %v516_v20   ;;  %v525_v23 = vsel %vm515_vm0, %v523_v22, %v521_v21 }
  0x2d   :  { %v856_v11 = vld [vmem:[#allocation1 + $0x1] ss:$8 sm:$0xf0]   ;;  %v1401_v12 = vpack.i.bf16 %v895_v9, %v882_v6  ;;  %519 = vst.msk [vmem:[#allocation0] ss:$8 sm:$0xf0] %vm517_vm1, %v516_v20  }
  0x2e   :  { %1392 = vrot.lane.b32.xlu1 %v1391_v62, %s1411_s13  ;;  %v858_v13 = vsel %vm515_vm0, %v856_v11, %v854_v10  ;;  %v865_v14 = vld [vmem:[#allocation1 + $0x41] ss:$8 sm:$0xf]   ;;  %v532_v24 = vld [vmem:[#allocation1 + $0x80] ss:$8 sm:$0xf]  }
  0x2f   :  { %1387 = vrot.lane.b32.xlu0 %v1386_v5, %s1411_s13  ;;  %v867_v15 = vld [vmem:[#allocation1 + $0x41] ss:$8 sm:$0xf0]   ;;  %v534_v25 = vld [vmem:[#allocation1 + $0x80] ss:$8 sm:$0xf0]  }
  0x30   :  { %v869_v16 = vsel %vm515_vm0, %v867_v15, %v865_v14  ;;  %528 = vst.msk [vmem:[#allocation0 + $0x40] ss:$8 sm:$0xf] %vm517_vm1, %v525_v23   ;;  %530 = vst.msk [vmem:[#allocation0 + $0x40] ss:$8 sm:$0xf0] %vm517_vm1, %v525_v23   ;;  %v536_v26 = vsel %vm515_vm0, %v534_v25, %v532_v24 }
  0x31   :  { %v1396_v19 = vpack.i.bf16 %v869_v16, %v858_v13  ;;  %v543_v27 = vld [vmem:[#allocation1 + $0xc0] ss:$8 sm:$0xf]   ;;  %539 = vst.msk [vmem:[#allocation0 + $0x80] ss:$8 sm:$0xf] %vm517_vm1, %v536_v26  }
  0x32   :  { %1402 = vrot.lane.b32.xlu1 %v1401_v12, %s1412_s14  ;;  %v545_v28 = vld [vmem:[#allocation1 + $0xc0] ss:$8 sm:$0xf0]   ;;  %541 = vst.msk [vmem:[#allocation0 + $0x80] ss:$8 sm:$0xf0] %vm517_vm1, %v536_v26  }
  0x33   :  { %1397 = vrot.lane.b32.xlu0 %v1396_v19, %s1412_s14  ;;  %v547_v29 = vsel %vm515_vm0, %v545_v28, %v543_v27  ;;  %v1413_v11 = vmov 0.0  }
  0x34   :  { %550 = vst.msk [vmem:[#allocation0 + $0xc0] ss:$8 sm:$0xf] %vm517_vm1, %v547_v29   ;;  %552 = vst.msk [vmem:[#allocation0 + $0xc0] ss:$8 sm:$0xf0] %vm517_vm1, %v547_v29  }
  0x88   :  { %v1348_v30 = vpop.permute.xlu1 %1347 }
  0x89   :  { %v1338_v31 = vpop.permute.xlu0 %1337  ;;  %v1350_v32 = vunpack.i.h.bf16 %v1348_v30  ;;  %v1349_v33 = vunpack.i.l.bf16 %v1348_v30 }
  0x8a   :  { %v1340_v34 = vunpack.i.h.bf16 %v1338_v31  ;;  %v1339_v35 = vunpack.i.l.bf16 %v1338_v31 }
  0x8c   :  { %562 = vst.msk [vmem:[#allocation0] ss:$8 sm:$0xf] %vm561_vm3, %v1339_v35   ;;  %563 = vst.msk [vmem:[#allocation0] ss:$8 sm:$0xf0] %vm561_vm3, %v1339_v35  }
  0x8d   :  { %574 = vst.msk [vmem:[#allocation0 + $0x40] ss:$8 sm:$0xf] %vm561_vm3, %v1340_v34   ;;  %576 = vst.msk [vmem:[#allocation0 + $0x40] ss:$8 sm:$0xf0] %vm561_vm3, %v1340_v34  }
  0x8e   :  { %612 = vst.msk [vmem:[#allocation0] ss:$8 sm:$0xf] %vm611_vm2, %v1349_v33   ;;  %613 = vst.msk [vmem:[#allocation0] ss:$8 sm:$0xf0] %vm611_vm2, %v1349_v33  }
  0x8f   :  { %624 = vst.msk [vmem:[#allocation0 + $0x40] ss:$8 sm:$0xf] %vm611_vm2, %v1350_v32   ;;  %626 = vst.msk [vmem:[#allocation0 + $0x40] ss:$8 sm:$0xf0] %vm611_vm2, %v1350_v32  }
  0x90   :  { %v1353_v36 = vpop.permute.xlu1 %1352  ;;  %v1343_v37 = vpop.permute.xlu0 %1342 }
  0x91   :  { %v1355_v38 = vunpack.i.h.bf16 %v1353_v36  ;;  %v1354_v39 = vunpack.i.l.bf16 %v1353_v36  ;;  %v1345_v40 = vunpack.i.h.bf16 %v1343_v37  ;;  %v1344_v41 = vunpack.i.l.bf16 %v1343_v37 }
  0x93   :  { %587 = vst.msk [vmem:[#allocation0 + $0x80] ss:$8 sm:$0xf] %vm561_vm3, %v1344_v41   ;;  %589 = vst.msk [vmem:[#allocation0 + $0x80] ss:$8 sm:$0xf0] %vm561_vm3, %v1344_v41  }
  0x94   :  { %600 = vst.msk [vmem:[#allocation0 + $0xc0] ss:$8 sm:$0xf] %vm561_vm3, %v1345_v40   ;;  %602 = vst.msk [vmem:[#allocation0 + $0xc0] ss:$8 sm:$0xf0] %vm561_vm3, %v1345_v40   ;;  %v1363_v42 = vpop.permute.xlu1 %1362 }
  0x95   :  { %637 = vst.msk [vmem:[#allocation0 + $0x80] ss:$8 sm:$0xf] %vm611_vm2, %v1354_v39   ;;  %639 = vst.msk [vmem:[#allocation0 + $0x80] ss:$8 sm:$0xf0] %vm611_vm2, %v1354_v39   ;;  %v1358_v43 = vpop.permute.xlu0 %1357  ;;  %v1365_v44 = vunpack.i.h.bf16 %v1363_v42  ;;  %v1364_v45 = vunpack.i.l.bf16 %v1363_v42 }
  0x96   :  { %650 = vst.msk [vmem:[#allocation0 + $0xc0] ss:$8 sm:$0xf] %vm611_vm2, %v1355_v38   ;;  %652 = vst.msk [vmem:[#allocation0 + $0xc0] ss:$8 sm:$0xf0] %vm611_vm2, %v1355_v38   ;;  %v1360_v46 = vunpack.i.h.bf16 %v1358_v43  ;;  %v1359_v47 = vunpack.i.l.bf16 %v1358_v43 }
  0x97   :  { %687 = vst.msk [vmem:[#allocation0 + $0x80] ss:$8 sm:$0xf] %vm661_vm4, %v1364_v45   ;;  %689 = vst.msk [vmem:[#allocation0 + $0x80] ss:$8 sm:$0xf0] %vm661_vm4, %v1364_v45  }
  0x98   :  { %700 = vst.msk [vmem:[#allocation0 + $0xc0] ss:$8 sm:$0xf] %vm661_vm4, %v1365_v44   ;;  %702 = vst.msk [vmem:[#allocation0 + $0xc0] ss:$8 sm:$0xf0] %vm661_vm4, %v1365_v44   ;;  %v1373_v48 = vpop.permute.xlu1 %1372 }
  0x99   :  { %674 = vst.msk [vmem:[#allocation0 + $0x40] ss:$8 sm:$0xf] %vm661_vm4, %v1360_v46   ;;  %676 = vst.msk [vmem:[#allocation0 + $0x40] ss:$8 sm:$0xf0] %vm661_vm4, %v1360_v46   ;;  %v1368_v49 = vpop.permute.xlu0 %1367  ;;  %v1375_v50 = vunpack.i.h.bf16 %v1373_v48  ;;  %v1374_v51 = vunpack.i.l.bf16 %v1373_v48 }
  0x9a   :  { %662 = vst.msk [vmem:[#allocation0] ss:$8 sm:$0xf] %vm661_vm4, %v1359_v47   ;;  %663 = vst.msk [vmem:[#allocation0] ss:$8 sm:$0xf0] %vm661_vm4, %v1359_v47   ;;  %v1370_v52 = vunpack.i.h.bf16 %v1368_v49  ;;  %v1369_v53 = vunpack.i.l.bf16 %v1368_v49 }
  0x9b   :  { %737 = vst.msk [vmem:[#allocation0 + $0x80] ss:$8 sm:$0xf] %vm711_vm5, %v1374_v51   ;;  %739 = vst.msk [vmem:[#allocation0 + $0x80] ss:$8 sm:$0xf0] %vm711_vm5, %v1374_v51  }
  0x9c   :  { %750 = vst.msk [vmem:[#allocation0 + $0xc0] ss:$8 sm:$0xf] %vm711_vm5, %v1375_v50   ;;  %752 = vst.msk [vmem:[#allocation0 + $0xc0] ss:$8 sm:$0xf0] %vm711_vm5, %v1375_v50   ;;  %v1383_v54 = vpop.permute.xlu1 %1382 }
  0x9d   :  { %712 = vst.msk [vmem:[#allocation0] ss:$8 sm:$0xf] %vm711_vm5, %v1369_v53   ;;  %713 = vst.msk [vmem:[#allocation0] ss:$8 sm:$0xf0] %vm711_vm5, %v1369_v53   ;;  %v1378_v55 = vpop.permute.xlu0 %1377  ;;  %v1385_v56 = vunpack.i.h.bf16 %v1383_v54  ;;  %v1384_v57 = vunpack.i.l.bf16 %v1383_v54 }
  0x9e   :  { %724 = vst.msk [vmem:[#allocation0 + $0x40] ss:$8 sm:$0xf] %vm711_vm5, %v1370_v52   ;;  %726 = vst.msk [vmem:[#allocation0 + $0x40] ss:$8 sm:$0xf0] %vm711_vm5, %v1370_v52   ;;  %v1380_v58 = vunpack.i.h.bf16 %v1378_v55  ;;  %v1379_v59 = vunpack.i.l.bf16 %v1378_v55 }
  0x9f   :  { %787 = vst.msk [vmem:[#allocation0 + $0x80] ss:$8 sm:$0xf] %vm761_vm6, %v1384_v57   ;;  %789 = vst.msk [vmem:[#allocation0 + $0x80] ss:$8 sm:$0xf0] %vm761_vm6, %v1384_v57  }
  0xa0   :  { %800 = vst.msk [vmem:[#allocation0 + $0xc0] ss:$8 sm:$0xf] %vm761_vm6, %v1385_v56   ;;  %802 = vst.msk [vmem:[#allocation0 + $0xc0] ss:$8 sm:$0xf0] %vm761_vm6, %v1385_v56   ;;  %v1393_v60 = vpop.permute.xlu1 %1392 }
  0xa1   :  { %762 = vst.msk [vmem:[#allocation0] ss:$8 sm:$0xf] %vm761_vm6, %v1379_v59   ;;  %763 = vst.msk [vmem:[#allocation0] ss:$8 sm:$0xf0] %vm761_vm6, %v1379_v59   ;;  %v1388_v61 = vpop.permute.xlu0 %1387  ;;  %v1395_v62 = vunpack.i.h.bf16 %v1393_v60  ;;  %v1394_v63 = vunpack.i.l.bf16 %v1393_v60 }
  0xa2   :  { %774 = vst.msk [vmem:[#allocation0 + $0x40] ss:$8 sm:$0xf] %vm761_vm6, %v1380_v58   ;;  %776 = vst.msk [vmem:[#allocation0 + $0x40] ss:$8 sm:$0xf0] %vm761_vm6, %v1380_v58   ;;  %v1390_v0 = vunpack.i.h.bf16 %v1388_v61  ;;  %v1389_v1 = vunpack.i.l.bf16 %v1388_v61 }
  0xa3   :  { %837 = vst.msk [vmem:[#allocation0 + $0x80] ss:$8 sm:$0xf] %vm811_vm7, %v1394_v63   ;;  %839 = vst.msk [vmem:[#allocation0 + $0x80] ss:$8 sm:$0xf0] %vm811_vm7, %v1394_v63  }
  0xa4   :  { %850 = vst.msk [vmem:[#allocation0 + $0xc0] ss:$8 sm:$0xf] %vm811_vm7, %v1395_v62   ;;  %852 = vst.msk [vmem:[#allocation0 + $0xc0] ss:$8 sm:$0xf0] %vm811_vm7, %v1395_v62   ;;  %v1403_v2 = vpop.permute.xlu1 %1402 }
  0xa5   :  { %812 = vst.msk [vmem:[#allocation0] ss:$8 sm:$0xf] %vm811_vm7, %v1389_v1   ;;  %813 = vst.msk [vmem:[#allocation0] ss:$8 sm:$0xf0] %vm811_vm7, %v1389_v1   ;;  %v1398_v3 = vpop.permute.xlu0 %1397  ;;  %v1405_v4 = vunpack.i.h.bf16 %v1403_v2  ;;  %v1404_v5 = vunpack.i.l.bf16 %v1403_v2 }
  0xa6   :  { %824 = vst.msk [vmem:[#allocation0 + $0x40] ss:$8 sm:$0xf] %vm811_vm7, %v1390_v0   ;;  %826 = vst.msk [vmem:[#allocation0 + $0x40] ss:$8 sm:$0xf0] %vm811_vm7, %v1390_v0   ;;  %v1400_v6 = vunpack.i.h.bf16 %v1398_v3  ;;  %v1399_v7 = vunpack.i.l.bf16 %v1398_v3 }
  0xa7   :  { %887 = vst.msk [vmem:[#allocation0 + $0x80] ss:$8 sm:$0xf] %vm861_vm8, %v1404_v5   ;;  %889 = vst.msk [vmem:[#allocation0 + $0x80] ss:$8 sm:$0xf0] %vm861_vm8, %v1404_v5  }
  0xa8   :  { %900 = vst.msk [vmem:[#allocation0 + $0xc0] ss:$8 sm:$0xf] %vm861_vm8, %v1405_v4   ;;  %902 = vst.msk [vmem:[#allocation0 + $0xc0] ss:$8 sm:$0xf0] %vm861_vm8, %v1405_v4  }
  0xa9   :  { %862 = vst.msk [vmem:[#allocation0] ss:$8 sm:$0xf] %vm861_vm8, %v1399_v7   ;;  %863 = vst.msk [vmem:[#allocation0] ss:$8 sm:$0xf0] %vm861_vm8, %v1399_v7  }
  0xaa   :  { %874 = vst.msk [vmem:[#allocation0 + $0x40] ss:$8 sm:$0xf] %vm861_vm8, %v1400_v6   ;;  %876 = vst.msk [vmem:[#allocation0 + $0x40] ss:$8 sm:$0xf0] %vm861_vm8, %v1400_v6  }
  0xae   :  { %v1016_v8 = vld [vmem:[#allocation0 + $0x80] sm:$0x3]  ;;  %v1023_v9 = vld [vmem:[#allocation0 + $0x88] sm:$0x3]  ;;  %v1030_v10 = vld [vmem:[#allocation0 + $0x90] sm:$0x3] }
  0xaf   :  { %v1017_v12 = vpack.c.bf16 %v1413_v11, %v1016_v8  ;;  %v1024_v13 = vpack.c.bf16 %v1413_v11, %v1023_v9  ;;  %v1031_v14 = vpack.c.bf16 %v1413_v11, %v1030_v10  ;;  %v1037_v15 = vld [vmem:[#allocation0 + $0x98] sm:$0x3]  ;;  %v1044_v16 = vld [vmem:[#allocation0 + $0xa0] sm:$0x3]  ;;  %v1051_v17 = vld [vmem:[#allocation0 + $0xa8] sm:$0x3] }
  0xb0   :  { %v1038_v18 = vpack.c.bf16 %v1413_v11, %v1037_v15  ;;  %v1045_v19 = vpack.c.bf16 %v1413_v11, %v1044_v16  ;;  %v1052_v20 = vpack.c.bf16 %v1413_v11, %v1051_v17  ;;  %v1058_v21 = vld [vmem:[#allocation0 + $0xb0] sm:$0x3]  ;;  %v1065_v22 = vld [vmem:[#allocation0 + $0xb8] sm:$0x3]  ;;  %v1072_v23 = vld [vmem:[#allocation0 + $0xc0] sm:$0x3] }
  0xb1   :  { %1233 = vst [vmem:[%s1657_s1 + $0x10] sm:$0x1] %v1017_v12  ;;  %1234 = vst [vmem:[%s1657_s1 + $0x11] sm:$0x1] %v1024_v13  ;;  %v1059_v24 = vpack.c.bf16 %v1413_v11, %v1058_v21  ;;  %v1066_v25 = vpack.c.bf16 %v1413_v11, %v1065_v22  ;;  %v1073_v26 = vpack.c.bf16 %v1413_v11, %v1072_v23  ;;  %v1079_v27 = vld [vmem:[#allocation0 + $0xc8] sm:$0x3] }
  0xb2   :  { %1235 = vst [vmem:[%s1657_s1 + $0x12] sm:$0x1] %v1031_v14  ;;  %v1086_v28 = vld [vmem:[#allocation0 + $0xd0] sm:$0x3]  ;;  %v1093_v29 = vld [vmem:[#allocation0 + $0xd8] sm:$0x3]  ;;  %v1080_v30 = vpack.c.bf16 %v1413_v11, %v1079_v27 }
  0xb3   :  { %1236 = vst [vmem:[%s1657_s1 + $0x13] sm:$0x1] %v1038_v18  ;;  %1237 = vst [vmem:[%s1657_s1 + $0x14] sm:$0x1] %v1045_v19  ;;  %v1087_v31 = vpack.c.bf16 %v1413_v11, %v1086_v28  ;;  %v1094_v32 = vpack.c.bf16 %v1413_v11, %v1093_v29  ;;  %v1100_v33 = vld [vmem:[#allocation0 + $0xe0] sm:$0x3] }
  0xb4   :  { %1238 = vst [vmem:[%s1657_s1 + $0x15] sm:$0x1] %v1052_v20  ;;  %v1107_v34 = vld [vmem:[#allocation0 + $0xe8] sm:$0x3]  ;;  %v1114_v35 = vld [vmem:[#allocation0 + $0xf0] sm:$0x3]  ;;  %v1101_v36 = vpack.c.bf16 %v1413_v11, %v1100_v33 }
  0xb5   :  { %1239 = vst [vmem:[%s1657_s1 + $0x16] sm:$0x1] %v1059_v24  ;;  %1240 = vst [vmem:[%s1657_s1 + $0x17] sm:$0x1] %v1066_v25  ;;  %v1108_v37 = vpack.c.bf16 %v1413_v11, %v1107_v34  ;;  %v1115_v38 = vpack.c.bf16 %v1413_v11, %v1114_v35  ;;  %v1121_v39 = vld [vmem:[#allocation0 + $0xf8] sm:$0x3] }
  0xb6   :  { %1241 = vst [vmem:[%s1657_s1 + $0x18] sm:$0x1] %v1073_v26  ;;  %v907_v40 = vld [vmem:[#allocation0] sm:$0x3]  ;;  %v912_v41 = vld [vmem:[#allocation0 + $0x8] sm:$0x3]  ;;  %v1122_v42 = vpack.c.bf16 %v1413_v11, %v1121_v39 }
  0xb7   :  { %1242 = vst [vmem:[%s1657_s1 + $0x19] sm:$0x1] %v1080_v30  ;;  %1243 = vst [vmem:[%s1657_s1 + $0x1a] sm:$0x1] %v1087_v31  ;;  %v908_v43 = vpack.c.bf16 %v1413_v11, %v907_v40  ;;  %v913_v44 = vpack.c.bf16 %v1413_v11, %v912_v41  ;;  %v918_v45 = vld [vmem:[#allocation0 + $0x10] sm:$0x3] }
  0xb8   :  { %1244 = vst [vmem:[%s1657_s1 + $0x1b] sm:$0x1] %v1094_v32  ;;  %v925_v46 = vld [vmem:[#allocation0 + $0x18] sm:$0x3]  ;;  %v932_v47 = vld [vmem:[#allocation0 + $0x20] sm:$0x3]  ;;  %v919_v48 = vpack.c.bf16 %v1413_v11, %v918_v45 }
  0xb9   :  { %1245 = vst [vmem:[%s1657_s1 + $0x1c] sm:$0x1] %v1101_v36  ;;  %1246 = vst [vmem:[%s1657_s1 + $0x1d] sm:$0x1] %v1108_v37  ;;  %v926_v49 = vpack.c.bf16 %v1413_v11, %v925_v46  ;;  %v933_v50 = vpack.c.bf16 %v1413_v11, %v932_v47  ;;  %v939_v51 = vld [vmem:[#allocation0 + $0x28] sm:$0x3] }
  0xba   :  { %1247 = vst [vmem:[%s1657_s1 + $0x1e] sm:$0x1] %v1115_v38  ;;  %v946_v52 = vld [vmem:[#allocation0 + $0x30] sm:$0x3]  ;;  %v953_v53 = vld [vmem:[#allocation0 + $0x38] sm:$0x3]  ;;  %v940_v54 = vpack.c.bf16 %v1413_v11, %v939_v51 }
  0xbb   :  { %1248 = vst [vmem:[%s1657_s1 + $0x1f] sm:$0x1] %v1122_v42  ;;  %910 = vst [vmem:[%s1657_s1] sm:$0x1] %v908_v43  ;;  %v947_v55 = vpack.c.bf16 %v1413_v11, %v946_v52  ;;  %v954_v56 = vpack.c.bf16 %v1413_v11, %v953_v53  ;;  %v960_v57 = vld [vmem:[#allocation0 + $0x40] sm:$0x3] }
  0xbc   :  { %1218 = vst [vmem:[%s1657_s1 + $0x1] sm:$0x1] %v913_v44  ;;  %v967_v58 = vld [vmem:[#allocation0 + $0x48] sm:$0x3]  ;;  %v974_v59 = vld [vmem:[#allocation0 + $0x50] sm:$0x3]  ;;  %v961_v60 = vpack.c.bf16 %v1413_v11, %v960_v57 }
  0xbd   :  { %1219 = vst [vmem:[%s1657_s1 + $0x2] sm:$0x1] %v919_v48  ;;  %1220 = vst [vmem:[%s1657_s1 + $0x3] sm:$0x1] %v926_v49  ;;  %v968_v61 = vpack.c.bf16 %v1413_v11, %v967_v58  ;;  %v975_v62 = vpack.c.bf16 %v1413_v11, %v974_v59  ;;  %v981_v63 = vld [vmem:[#allocation0 + $0x58] sm:$0x3] }
  0xbe   :  { %1221 = vst [vmem:[%s1657_s1 + $0x4] sm:$0x1] %v933_v50  ;;  %v988_v0 = vld [vmem:[#allocation0 + $0x60] sm:$0x3]  ;;  %v995_v1 = vld [vmem:[#allocation0 + $0x68] sm:$0x3]  ;;  %v982_v2 = vpack.c.bf16 %v1413_v11, %v981_v63 }
  0xbf   :  { %1222 = vst [vmem:[%s1657_s1 + $0x5] sm:$0x1] %v940_v54  ;;  %1223 = vst [vmem:[%s1657_s1 + $0x6] sm:$0x1] %v947_v55  ;;  %v989_v3 = vpack.c.bf16 %v1413_v11, %v988_v0  ;;  %v996_v4 = vpack.c.bf16 %v1413_v11, %v995_v1  ;;  %v1002_v5 = vld [vmem:[#allocation0 + $0x70] sm:$0x3] }
  0xc0   :  { %1224 = vst [vmem:[%s1657_s1 + $0x7] sm:$0x1] %v954_v56  ;;  %v1009_v6 = vld [vmem:[#allocation0 + $0x78] sm:$0x3]  ;;  %1225 = vst [vmem:[%s1657_s1 + $0x8] sm:$0x1] %v961_v60  ;;  %v1003_v7 = vpack.c.bf16 %v1413_v11, %v1002_v5 }
  0xc1   :  { %1226 = vst [vmem:[%s1657_s1 + $0x9] sm:$0x1] %v968_v61  ;;  %1227 = vst [vmem:[%s1657_s1 + $0xa] sm:$0x1] %v975_v62  ;;  %v1010_v8 = vpack.c.bf16 %v1413_v11, %v1009_v6 }
  0xc2   :  { %1228 = vst [vmem:[%s1657_s1 + $0xb] sm:$0x1] %v982_v2  ;;  %1229 = vst [vmem:[%s1657_s1 + $0xc] sm:$0x1] %v989_v3 }
  0xc3   :  { %1230 = vst [vmem:[%s1657_s1 + $0xd] sm:$0x1] %v996_v4  ;;  %1231 = vst [vmem:[%s1657_s1 + $0xe] sm:$0x1] %v1003_v7 }
  0xc4   :  { %1232 = vst [vmem:[%s1657_s1 + $0xf] sm:$0x1] %v1010_v8 }

// kernel: end2end_forward.1
= control target key start
LH: loop header
LB: loop body
LE: loop exit
PB: predicated region body
PF: predicated region fallthrough
CT: control target
= control target key end

     0   :  { %13 = vsyncpa [#allocation4], 0  ;;  %v3457_v8 = vmov 0   ;;  %vm739_vm0 = vcmask 1042432   ;;  %vm726_vm1 = vcmask 441344   ;;  %s4402_s0 = inlined_call_operand.<no memory space> [shape: f32[1], index: 0, kind: input, shape index: {}]   ;;  %s4403_s1 = inlined_call_operand.vmem [shape: bf16[54,4096], index: 1, kind: input, shape index: {}]   ;;  %s4404_s2 = inlined_call_operand.vmem [shape: bf16[64,54], index: 2, kind: input, shape index: {}]   ;;  %s4405_s3 = inlined_call_operand.vmem [shape: f32[64,256], index: 3, kind: input, shape index: {}]   ;;  %s4406_s4 = inlined_call_operand.vmem [shape: s32[16,1], index: 4, kind: input, shape index: {}]   ;;  %s4407_s5 = inlined_call_operand.hbm [shape: f32[16,16], index: 5, kind: output, shape index: {0}]   ;;  %s4408_s6 = inlined_call_operand.hbm [shape: f32[1,1], index: 6, kind: output, shape index: {1}]  }
   0x1   :  { %v34_v0 = vld [vmem:[%s4403_s1] sm:$0xff]  ;;  %v35_v2 = vld [vmem:[%s4403_s1 + $0x8] sm:$0xff]  ;;  %868 = vmatprep.mubr.bf16.mxu0 %v3457_v8  ;;  %941 = vmatprep.mubr.bf16.mxu1 %v3457_v8  ;;  %v36_v29 = vld [vmem:[%s4403_s1 + $0x10] sm:$0xff] }
   0x2   :  { %v50_v1 = vld [vmem:[%s4403_s1 + $0x80] sm:$0xff]  ;;  %v51_v4 = vld [vmem:[%s4403_s1 + $0x88] sm:$0xff]  ;;  %3355 = vset.pattern.permute.xlu1 %v3457_v8  ;;  %v52_v32 = vld [vmem:[%s4403_s1 + $0x90] sm:$0xff] }
   0x3   :  { %v3107_v3 = vcombine.high %v34_v0, %v50_v1  ;;  %v3106_v5 = vcombine.low %v34_v0, %v50_v1  ;;  %v66_v6 = vld [vmem:[%s4403_s1 + $0x100] sm:$0xff]  ;;  %v3109_v9 = vcombine.high %v35_v2, %v51_v4  ;;  %v3108_v10 = vcombine.low %v35_v2, %v51_v4  ;;  %v67_v12 = vld [vmem:[%s4403_s1 + $0x108] sm:$0xff]  ;;  %v37_v33 = vld [vmem:[%s4403_s1 + $0x18] sm:$0xff] }
   0x4   :  { %v82_v7 = vld [vmem:[%s4403_s1 + $0x180] sm:$0xff]  ;;  %v83_v13 = vld [vmem:[%s4403_s1 + $0x188] sm:$0xff]  ;;  %v53_v34 = vld [vmem:[%s4403_s1 + $0x98] sm:$0xff]  ;;  %v3111_v36 = vcombine.high %v36_v29, %v52_v32  ;;  %v3110_v44 = vcombine.low %v36_v29, %v52_v32 }
   0x5   :  { %v3139_v11 = vcombine.high %v66_v6, %v82_v7  ;;  %v98_v14 = vld [vmem:[%s4403_s1 + $0x200] sm:$0xff]  ;;  %836 = vmatprep.subr.bf16.mxu0 %v3107_v3  ;;  %v3141_v15 = vcombine.high %v67_v12, %v83_v13  ;;  %v99_v17 = vld [vmem:[%s4403_s1 + $0x208] sm:$0xff]  ;;  %909 = vmatprep.subr.bf16.mxu1 %v3109_v9  ;;  %v3138_v19 = vcombine.low %v66_v6, %v82_v7  ;;  %v68_v40 = vld [vmem:[%s4403_s1 + $0x110] sm:$0xff] }
   0x6   :  { %v114_v16 = vld [vmem:[%s4403_s1 + $0x280] sm:$0xff]  ;;  %v115_v18 = vld [vmem:[%s4403_s1 + $0x288] sm:$0xff]  ;;  %837 = vmatpush1.bf16.msra.mxu0 %v3106_v5  ;;  %910 = vmatpush1.bf16.msra.mxu1 %v3108_v10  ;;  %v3140_v20 = vcombine.low %v67_v12, %v83_v13  ;;  %v3113_v38 = vcombine.high %v37_v33, %v53_v34  ;;  %v84_v41 = vld [vmem:[%s4403_s1 + $0x190] sm:$0xff]  ;;  %v3112_v45 = vcombine.low %v37_v33, %v53_v34 }
   0x7   :  { %838 = vmatprep.subr.bf16.mxu0 %v3139_v11  ;;  %v3171_v21 = vcombine.high %v98_v14, %v114_v16  ;;  %911 = vmatprep.subr.bf16.mxu1 %v3141_v15  ;;  %v3173_v22 = vcombine.high %v99_v17, %v115_v18  ;;  %v130_v23 = vld [vmem:[%s4403_s1 + $0x300] sm:$0x77]  ;;  %v131_v24 = vld [vmem:[%s4403_s1 + $0x308] sm:$0x77]  ;;  %v3170_v25 = vcombine.low %v98_v14, %v114_v16  ;;  %v69_v42 = vld [vmem:[%s4403_s1 + $0x118] sm:$0xff] }
   0x8   :  { %v3172_v26 = vcombine.low %v99_v17, %v115_v18  ;;  %v3203_v27 = vcombine.high %v130_v23, %v130_v23  ;;  %v3202_v28 = vcombine.low %v130_v23, %v130_v23  ;;  %v3205_v30 = vcombine.high %v131_v24, %v131_v24  ;;  %v3562_v39 = vld [vmem:[%s4404_s2] sm:$0xff]   ;;  %v85_v43 = vld [vmem:[%s4403_s1 + $0x198] sm:$0xff]  ;;  %v100_v48 = vld [vmem:[%s4403_s1 + $0x210] sm:$0xff] }
   0x9   :  { %v3204_v31 = vcombine.low %v131_v24, %v131_v24  ;;  %v3143_v46 = vcombine.high %v68_v40, %v84_v41  ;;  %v3145_v47 = vcombine.high %v69_v42, %v85_v43  ;;  %v116_v49 = vld [vmem:[%s4403_s1 + $0x290] sm:$0xff]  ;;  %v101_v50 = vld [vmem:[%s4403_s1 + $0x218] sm:$0xff]  ;;  %v3142_v52 = vcombine.low %v68_v40, %v84_v41  ;;  %v3597_v55 = vld [vmem:[%s4404_s2 + $0x8] sm:$0xff]  }
   0xa   :  { %839 = vmatpush1.bf16.msra.mxu0 %v3138_v19  ;;  %912 = vmatpush1.bf16.msra.mxu1 %v3140_v20  ;;  %v741_v35 = vsel %vm739_vm0, %v3202_v28, 0  ;;  %v117_v51 = vld [vmem:[%s4403_s1 + $0x298] sm:$0xff]  ;;  %v3144_v53 = vcombine.low %v69_v42, %v85_v43  ;;  %v3175_v54 = vcombine.high %v100_v48, %v116_v49  ;;  %v132_v57 = vld [vmem:[%s4403_s1 + $0x310] sm:$0x77]  ;;  %v3174_v59 = vcombine.low %v100_v48, %v116_v49  ;;  %v38_v1 = vld [vmem:[%s4403_s1 + $0x20] sm:$0xff] }
   0xb   :  { %840 = vmatprep.subr.bf16.mxu0 %v3171_v21  ;;  %913 = vmatprep.subr.bf16.mxu1 %v3173_v22  ;;  %v747_v37 = vsel %vm739_vm0, %v3204_v31, 0  ;;  %v3177_v56 = vcombine.high %v101_v50, %v117_v51  ;;  %v133_v58 = vld [vmem:[%s4403_s1 + $0x318] sm:$0x77]  ;;  %v3176_v60 = vcombine.low %v101_v50, %v117_v51  ;;  %v3207_v61 = vcombine.high %v132_v57, %v132_v57  ;;  %v54_v2 = vld [vmem:[%s4403_s1 + $0xa0] sm:$0xff] }
   0xc   :  { %v3206_v62 = vcombine.low %v132_v57, %v132_v57  ;;  %v3209_v63 = vcombine.high %v133_v58, %v133_v58  ;;  %v3208_v0 = vcombine.low %v133_v58, %v133_v58 }
   0xe   :  { %841 = vmatpush1.bf16.msra.mxu0 %v3170_v25  ;;  %914 = vmatpush1.bf16.msra.mxu1 %v3172_v26 }
   0xf   :  { %3234 = vmatprep.subr.msk.bf16.mxu0 %vm739_vm0, %v3203_v27  ;;  %3239 = vmatprep.subr.msk.bf16.mxu1 %vm739_vm0, %v3205_v30 }
  0x12   :  { %843 = vmatpush1.bf16.msra.mxu0 %v741_v35  ;;  %916 = vmatpush1.bf16.msra.mxu1 %v747_v37 }
  0x13   :  { %982 = vmatprep.subr.bf16.mxu0 %v3111_v36  ;;  %1055 = vmatprep.subr.bf16.mxu1 %v3113_v38 }
  0x15   :  { %3235 = vmatmul.mubr.msk.bf16.vlgmr.msra.gmra.mrb[0].mxu0 %vm726_vm1, %v3562_v39  ;;  %3240 = vmatmul.mubr.msk.bf16.vlgmr.msra.gmra.mrb[0].mxu1 %vm726_vm1, %v3562_v39 }
  0x16   :  { %878 = vmatprep.mubr.bf16.mxu0 %v3457_v8  ;;  %951 = vmatprep.mubr.bf16.mxu1 %v3457_v8 }
  0x17   :  { %983 = vmatpush1.bf16.msra.mxu0 %v3110_v44  ;;  %1056 = vmatpush1.bf16.msra.mxu1 %v3112_v45 }
  0x18   :  { %984 = vmatprep.subr.bf16.mxu0 %v3143_v46  ;;  %1057 = vmatprep.subr.bf16.mxu1 %v3145_v47 }
  0x1b   :  { %985 = vmatpush1.bf16.msra.mxu0 %v3142_v52  ;;  %1058 = vmatpush1.bf16.msra.mxu1 %v3144_v53 }
  0x1c   :  { %986 = vmatprep.subr.bf16.mxu0 %v3175_v54  ;;  %1059 = vmatprep.subr.bf16.mxu1 %v3177_v56 }
  0x1d   :  { %3236 = vmatmul.mubr.msk.bf16.gmra.mrb[4].mxu0 %vm726_vm1, %v3597_v55 }
  0x1e   :  { %14 = vsyncpa [#allocation6], 0  ;;  %3241 = vmatmul.mubr.msk.bf16.gmra.mrb[4].mxu1 %vm726_vm1, %v3597_v55  ;;  %888 = vmatprep.mubr.bf16.mxu0 %v3457_v8  ;;  %v39_v3 = vld [vmem:[%s4403_s1 + $0x28] sm:$0xff]  ;;  %v753_v5 = vsel %vm739_vm0, %v3206_v62, 0  ;;  %v3115_v6 = vcombine.high %v38_v1, %v54_v2  ;;  %v3628_v7 = vld [vmem:[%s4404_s2 + $0x10] sm:$0xff]   ;;  %v759_v9 = vsel %vm739_vm0, %v3208_v0, 0  ;;  %v3114_v16 = vcombine.low %v38_v1, %v54_v2 }
  0x1f   :  { %v55_v4 = vld [vmem:[%s4403_s1 + $0xa8] sm:$0xff]  ;;  %961 = vmatprep.mubr.bf16.mxu1 %v3457_v8  ;;  %987 = vmatpush1.bf16.msra.mxu0 %v3174_v59  ;;  %v3641_v11 = vld [vmem:[%s4404_s2 + $0x18] sm:$0xff]   ;;  %v70_v12 = vld [vmem:[%s4403_s1 + $0x120] sm:$0xff]  ;;  %vm2644_vm2 = vcmask 7168   ;;  %vm2653_vm3 = vcmask 15360   ;;  %vm2662_vm4 = vcmask 23552  }
  0x20   :  { %1060 = vmatpush1.bf16.msra.mxu1 %v3176_v60  ;;  %3244 = vmatprep.subr.msk.bf16.mxu0 %vm739_vm0, %v3207_v61  ;;  %v3117_v10 = vcombine.high %v39_v3, %v55_v4  ;;  %v86_v13 = vld [vmem:[%s4403_s1 + $0x1a0] sm:$0xff]  ;;  %v71_v14 = vld [vmem:[%s4403_s1 + $0x128] sm:$0xff]  ;;  %v3116_v17 = vcombine.low %v39_v3, %v55_v4  ;;  %v40_v36 = vld [vmem:[%s4403_s1 + $0x30] sm:$0xff]  ;;  %vm2671_vm5 = vcmask 31744   ;;  %vm2680_vm6 = vcmask 39936  }
  0x21   :  { %3249 = vmatprep.subr.msk.bf16.mxu1 %vm739_vm0, %v3209_v63  ;;  %v87_v15 = vld [vmem:[%s4403_s1 + $0x1a8] sm:$0xff]  ;;  %v3147_v18 = vcombine.high %v70_v12, %v86_v13  ;;  %v102_v20 = vld [vmem:[%s4403_s1 + $0x220] sm:$0xff]  ;;  %v3146_v24 = vcombine.low %v70_v12, %v86_v13  ;;  %v56_v37 = vld [vmem:[%s4403_s1 + $0xb0] sm:$0xff]  ;;  %vm2689_vm7 = vcmask 48128   ;;  %vm2698_vm8 = vcmask 56320  }
  0x22   :  { %v3149_v19 = vcombine.high %v71_v14, %v87_v15  ;;  %v118_v21 = vld [vmem:[%s4403_s1 + $0x2a0] sm:$0xff]  ;;  %v103_v22 = vld [vmem:[%s4403_s1 + $0x228] sm:$0xff]  ;;  %v3148_v25 = vcombine.low %v71_v14, %v87_v15  ;;  %v41_v38 = vld [vmem:[%s4403_s1 + $0x38] sm:$0xff]  ;;  %v3119_v42 = vcombine.high %v40_v36, %v56_v37  ;;  %v3118_v49 = vcombine.low %v40_v36, %v56_v37 }
  0x23   :  { %989 = vmatpush1.bf16.msra.mxu0 %v753_v5  ;;  %v119_v23 = vld [vmem:[%s4403_s1 + $0x2a8] sm:$0xff]  ;;  %v3179_v26 = vcombine.high %v102_v20, %v118_v21  ;;  %v134_v28 = vld [vmem:[%s4403_s1 + $0x320] sm:$0x77]  ;;  %v3178_v30 = vcombine.low %v102_v20, %v118_v21  ;;  %v57_v40 = vld [vmem:[%s4403_s1 + $0xb8] sm:$0xff]  ;;  %vm2707_vm9 = vcmask 64512   ;;  %vm2716_vm10 = vcmask 72704  }
  0x24   :  { %1062 = vmatpush1.bf16.msra.mxu1 %v759_v9  ;;  %1128 = vmatprep.subr.bf16.mxu0 %v3115_v6  ;;  %v3181_v27 = vcombine.high %v103_v22, %v119_v23  ;;  %v135_v29 = vld [vmem:[%s4403_s1 + $0x328] sm:$0x77]  ;;  %v3180_v31 = vcombine.low %v103_v22, %v119_v23  ;;  %v3211_v32 = vcombine.high %v134_v28, %v134_v28  ;;  %v72_v45 = vld [vmem:[%s4403_s1 + $0x130] sm:$0xff]  ;;  %v73_v47 = vld [vmem:[%s4403_s1 + $0x138] sm:$0xff]  ;;  %vm2725_vm11 = vcmask 80896  }
  0x25   :  { %3237 = vmatmul.mubr.msk.bf16.gmra.mrb[8].mxu0 %vm726_vm1, %v3628_v7  ;;  %1201 = vmatprep.subr.bf16.mxu1 %v3117_v10  ;;  %v3210_v33 = vcombine.low %v134_v28, %v134_v28  ;;  %v3213_v34 = vcombine.high %v135_v29, %v135_v29  ;;  %v3212_v35 = vcombine.low %v135_v29, %v135_v29  ;;  %v88_v46 = vld [vmem:[%s4403_s1 + $0x1b0] sm:$0xff]  ;;  %v89_v48 = vld [vmem:[%s4403_s1 + $0x1b8] sm:$0xff]  ;;  %v42_v6 = vld [vmem:[%s4403_s1 + $0x40] sm:$0xff]  ;;  %vm2734_vm12 = vcmask 89088  }
  0x26   :  { %3242 = vmatmul.mubr.msk.bf16.gmra.mrb[8].mxu1 %vm726_vm1, %v3628_v7  ;;  %898 = vmatprep.mubr.bf16.mxu0 %v3457_v8  ;;  %v3121_v44 = vcombine.high %v41_v38, %v57_v40  ;;  %v3120_v50 = vcombine.low %v41_v38, %v57_v40  ;;  %v3151_v51 = vcombine.high %v72_v45, %v88_v46  ;;  %v104_v53 = vld [vmem:[%s4403_s1 + $0x230] sm:$0xff]  ;;  %v105_v56 = vld [vmem:[%s4403_s1 + $0x238] sm:$0xff]  ;;  %v58_v9 = vld [vmem:[%s4403_s1 + $0xc0] sm:$0xff]  ;;  %vm2743_vm13 = vcmask 97280  }
  0x27   :  { %971 = vmatprep.mubr.bf16.mxu1 %v3457_v8  ;;  %v765_v41 = vsel %vm739_vm0, %v3210_v33, 0  ;;  %v771_v43 = vsel %vm739_vm0, %v3212_v35, 0  ;;  %v3153_v52 = vcombine.high %v73_v47, %v89_v48  ;;  %v120_v54 = vld [vmem:[%s4403_s1 + $0x2b0] sm:$0xff]  ;;  %v121_v57 = vld [vmem:[%s4403_s1 + $0x2b8] sm:$0xff]  ;;  %v3150_v58 = vcombine.low %v72_v45, %v88_v46  ;;  %v43_v10 = vld [vmem:[%s4403_s1 + $0x48] sm:$0xff] }
  0x28   :  { %v3152_v59 = vcombine.low %v73_v47, %v89_v48  ;;  %v3183_v60 = vcombine.high %v104_v53, %v120_v54  ;;  %v3185_v61 = vcombine.high %v105_v56, %v121_v57  ;;  %v136_v62 = vld [vmem:[%s4403_s1 + $0x330] sm:$0x77]  ;;  %v137_v63 = vld [vmem:[%s4403_s1 + $0x338] sm:$0x77]  ;;  %v3182_v0 = vcombine.low %v104_v53, %v120_v54  ;;  %v59_v12 = vld [vmem:[%s4403_s1 + $0xc8] sm:$0xff] }
  0x29   :  { %v3184_v1 = vcombine.low %v105_v56, %v121_v57  ;;  %v3215_v2 = vcombine.high %v136_v62, %v136_v62  ;;  %v3214_v3 = vcombine.low %v136_v62, %v136_v62  ;;  %v3217_v4 = vcombine.high %v137_v63, %v137_v63  ;;  %v91_v20 = vld [vmem:[%s4403_s1 + $0x1c8] sm:$0xff]  ;;  %v138_v33 = vld [vmem:[%s4403_s1 + $0x340] sm:$0x77]  ;;  %v61_v45 = vld [vmem:[%s4403_s1 + $0xd8] sm:$0xff] }
  0x2a   :  { %v3216_v5 = vcombine.low %v137_v63, %v137_v63  ;;  %v3123_v14 = vcombine.high %v42_v6, %v58_v9  ;;  %v3122_v21 = vcombine.low %v42_v6, %v58_v9  ;;  %v3124_v22 = vcombine.low %v43_v10, %v59_v12  ;;  %v123_v28 = vld [vmem:[%s4403_s1 + $0x2c8] sm:$0xff]  ;;  %v93_v53 = vld [vmem:[%s4403_s1 + $0x1d8] sm:$0xff] }
  0x2b   :  { %v777_v13 = vsel %vm739_vm0, %v3214_v3, 0  ;;  %v3219_v37 = vcombine.high %v138_v33, %v138_v33  ;;  %v3218_v38 = vcombine.low %v138_v33, %v138_v33  ;;  %v125_v62 = vld [vmem:[%s4403_s1 + $0x2d8] sm:$0xff]  ;;  %v140_v3 = vld [vmem:[%s4403_s1 + $0x350] sm:$0x77]  ;;  %v127_v33 = vld [vmem:[%s4403_s1 + $0x2e8] sm:$0xff]  ;;  %vm2752_vm14 = vcmask 105472  }
  0x2c   :  { %v783_v15 = vsel %vm739_vm0, %v3216_v5, 0  ;;  %v3223_v9 = vcombine.high %v140_v3, %v140_v3  ;;  %vm2770_vm15 = vcmask 121856  }
  0x2d   :  { %3238 = vmatmul.mubr.msk.bf16.gmra.mrb[12].mxu0 %vm726_vm1, %v3641_v11  ;;  %v789_v46 = vsel %vm739_vm0, %v3218_v38, 0  ;;  %v142_v38 = vld [vmem:[%s4403_s1 + $0x360] sm:$0x77] }
  0x2e   :  { %3243 = vmatmul.mubr.msk.bf16.gmra.mrb[12].mxu1 %vm726_vm1, %v3641_v11  ;;  %1014 = vmatprep.mubr.bf16.mxu0 %v3457_v8 }
  0x2f   :  { %1087 = vmatprep.mubr.bf16.mxu1 %v3457_v8 }
  0x35   :  { %3245 = vmatmul.mubr.msk.bf16.vlgmr.msra.gmra.mrb[16].mxu0 %vm726_vm1, %v3562_v39 }
  0x36   :  { %3250 = vmatmul.mubr.msk.bf16.vlgmr.msra.gmra.mrb[16].mxu1 %vm726_vm1, %v3562_v39  ;;  %1024 = vmatprep.mubr.bf16.mxu0 %v3457_v8 }
  0x37   :  { %1097 = vmatprep.mubr.bf16.mxu1 %v3457_v8  ;;  %1129 = vmatpush1.bf16.msra.mxu0 %v3114_v16  ;;  %v3125_v16 = vcombine.high %v43_v10, %v59_v12  ;;  %v3222_v10 = vcombine.low %v140_v3, %v140_v3  ;;  %v129_v3 = vld [vmem:[%s4403_s1 + $0x2f8] sm:$0xff] }
  0x38   :  { %1202 = vmatpush1.bf16.msra.mxu1 %v3116_v17  ;;  %1130 = vmatprep.subr.bf16.mxu0 %v3147_v18  ;;  %v74_v17 = vld [vmem:[%s4403_s1 + $0x140] sm:$0xff] }
  0x39   :  { %1203 = vmatprep.subr.bf16.mxu1 %v3149_v19  ;;  %v90_v18 = vld [vmem:[%s4403_s1 + $0x1c0] sm:$0xff]  ;;  %v75_v19 = vld [vmem:[%s4403_s1 + $0x148] sm:$0xff] }
  0x3a   :  { %v3155_v23 = vcombine.high %v74_v17, %v90_v18  ;;  %v3154_v29 = vcombine.low %v74_v17, %v90_v18  ;;  %v63_v17 = vld [vmem:[%s4403_s1 + $0xe8] sm:$0xff]  ;;  %v801_v18 = vsel %vm739_vm0, %v3222_v10, 0  ;;  %v144_v10 = vld [vmem:[%s4403_s1 + $0x370] sm:$0x77] }
  0x3b   :  { %1131 = vmatpush1.bf16.msra.mxu0 %v3146_v24  ;;  %v3157_v24 = vcombine.high %v75_v19, %v91_v20 }
  0x3c   :  { %1204 = vmatpush1.bf16.msra.mxu1 %v3148_v25  ;;  %1132 = vmatprep.subr.bf16.mxu0 %v3179_v26  ;;  %v106_v25 = vld [vmem:[%s4403_s1 + $0x240] sm:$0xff] }
  0x3d   :  { %3246 = vmatmul.mubr.msk.bf16.gmra.mrb[20].mxu0 %vm726_vm1, %v3597_v55  ;;  %1205 = vmatprep.subr.bf16.mxu1 %v3181_v27  ;;  %v122_v26 = vld [vmem:[%s4403_s1 + $0x2c0] sm:$0xff]  ;;  %v107_v27 = vld [vmem:[%s4403_s1 + $0x248] sm:$0xff] }
  0x3e   :  { %3251 = vmatmul.mubr.msk.bf16.gmra.mrb[20].mxu1 %vm726_vm1, %v3597_v55  ;;  %1034 = vmatprep.mubr.bf16.mxu0 %v3457_v8  ;;  %v3186_v35 = vcombine.low %v106_v25, %v122_v26  ;;  %v3188_v36 = vcombine.low %v107_v27, %v123_v28 }
  0x3f   :  { %1107 = vmatprep.mubr.bf16.mxu1 %v3457_v8  ;;  %1133 = vmatpush1.bf16.msra.mxu0 %v3178_v30  ;;  %v3156_v30 = vcombine.low %v75_v19, %v91_v20 }
  0x40   :  { %1206 = vmatpush1.bf16.msra.mxu1 %v3180_v31  ;;  %3254 = vmatprep.subr.msk.bf16.mxu0 %vm739_vm0, %v3211_v32  ;;  %v3187_v31 = vcombine.high %v106_v25, %v122_v26  ;;  %v3189_v32 = vcombine.high %v107_v27, %v123_v28  ;;  %v95_v25 = vld [vmem:[%s4403_s1 + $0x1e8] sm:$0xff] }
  0x41   :  { %3259 = vmatprep.subr.msk.bf16.mxu1 %vm739_vm0, %v3213_v34  ;;  %v139_v34 = vld [vmem:[%s4403_s1 + $0x348] sm:$0x77] }
  0x42   :  { %v3221_v40 = vcombine.high %v139_v34, %v139_v34 }
  0x43   :  { %1135 = vmatpush1.bf16.msra.mxu0 %v765_v41  ;;  %v3220_v41 = vcombine.low %v139_v34, %v139_v34 }
  0x44   :  { %1208 = vmatpush1.bf16.msra.mxu1 %v771_v43  ;;  %1274 = vmatprep.subr.bf16.mxu0 %v3119_v42  ;;  %v44_v42 = vld [vmem:[%s4403_s1 + $0x50] sm:$0xff] }
  0x45   :  { %3247 = vmatmul.mubr.msk.bf16.gmra.mrb[24].mxu0 %vm726_vm1, %v3628_v7  ;;  %1347 = vmatprep.subr.bf16.mxu1 %v3121_v44  ;;  %v60_v43 = vld [vmem:[%s4403_s1 + $0xd0] sm:$0xff]  ;;  %v45_v44 = vld [vmem:[%s4403_s1 + $0x58] sm:$0xff]  ;;  %v795_v48 = vsel %vm739_vm0, %v3220_v41, 0 }
  0x46   :  { %3252 = vmatmul.mubr.msk.bf16.gmra.mrb[24].mxu1 %vm726_vm1, %v3628_v7  ;;  %1044 = vmatprep.mubr.bf16.mxu0 %v3457_v8  ;;  %v3127_v47 = vcombine.high %v44_v42, %v60_v43  ;;  %v3126_v54 = vcombine.low %v44_v42, %v60_v43  ;;  %v3128_v56 = vcombine.low %v45_v44, %v61_v45 }
  0x47   :  { %1117 = vmatprep.mubr.bf16.mxu1 %v3457_v8  ;;  %v3227_v43 = vcombine.high %v142_v38, %v142_v38 }
  0x4d   :  { %3248 = vmatmul.mubr.msk.bf16.gmra.mrb[28].mxu0 %vm726_vm1, %v3641_v11 }
  0x4e   :  { %3253 = vmatmul.mubr.msk.bf16.gmra.mrb[28].mxu1 %vm726_vm1, %v3641_v11  ;;  %1160 = vmatprep.mubr.bf16.mxu0 %v3457_v8 }
  0x4f   :  { %1233 = vmatprep.mubr.bf16.mxu1 %v3457_v8 }
  0x55   :  { %3255 = vmatmul.mubr.msk.bf16.vlgmr.msra.gmra.mrb[32].mxu0 %vm726_vm1, %v3562_v39 }
  0x56   :  { %3260 = vmatmul.mubr.msk.bf16.vlgmr.msra.gmra.mrb[32].mxu1 %vm726_vm1, %v3562_v39  ;;  %1170 = vmatprep.mubr.bf16.mxu0 %v3457_v8 }
  0x57   :  { %1243 = vmatprep.mubr.bf16.mxu1 %v3457_v8  ;;  %1275 = vmatpush1.bf16.msra.mxu0 %v3118_v49  ;;  %v3129_v49 = vcombine.high %v45_v44, %v61_v45  ;;  %v3226_v44 = vcombine.low %v142_v38, %v142_v38 }
  0x58   :  { %1348 = vmatpush1.bf16.msra.mxu1 %v3120_v50  ;;  %1276 = vmatprep.subr.bf16.mxu0 %v3151_v51  ;;  %v76_v50 = vld [vmem:[%s4403_s1 + $0x150] sm:$0xff] }
  0x59   :  { %1349 = vmatprep.subr.bf16.mxu1 %v3153_v52  ;;  %v92_v51 = vld [vmem:[%s4403_s1 + $0x1d0] sm:$0xff]  ;;  %v77_v52 = vld [vmem:[%s4403_s1 + $0x158] sm:$0xff] }
  0x5a   :  { %v3159_v57 = vcombine.high %v76_v50, %v92_v51  ;;  %v3158_v63 = vcombine.low %v76_v50, %v92_v51  ;;  %v65_v50 = vld [vmem:[%s4403_s1 + $0xf8] sm:$0xff]  ;;  %v813_v51 = vsel %vm739_vm0, %v3226_v44, 0 }
  0x5b   :  { %1277 = vmatpush1.bf16.msra.mxu0 %v3150_v58  ;;  %v3161_v58 = vcombine.high %v77_v52, %v93_v53 }
  0x5c   :  { %1350 = vmatpush1.bf16.msra.mxu1 %v3152_v59  ;;  %1278 = vmatprep.subr.bf16.mxu0 %v3183_v60  ;;  %v108_v59 = vld [vmem:[%s4403_s1 + $0x250] sm:$0xff] }
  0x5d   :  { %3256 = vmatmul.mubr.msk.bf16.gmra.mrb[36].mxu0 %vm726_vm1, %v3597_v55  ;;  %1351 = vmatprep.subr.bf16.mxu1 %v3185_v61  ;;  %v124_v60 = vld [vmem:[%s4403_s1 + $0x2d0] sm:$0xff]  ;;  %v109_v61 = vld [vmem:[%s4403_s1 + $0x258] sm:$0xff] }
  0x5e   :  { %3261 = vmatmul.mubr.msk.bf16.gmra.mrb[36].mxu1 %vm726_vm1, %v3597_v55  ;;  %1180 = vmatprep.mubr.bf16.mxu0 %v3457_v8  ;;  %v3190_v5 = vcombine.low %v108_v59, %v124_v60  ;;  %v3192_v6 = vcombine.low %v109_v61, %v125_v62 }
  0x5f   :  { %1253 = vmatprep.mubr.bf16.mxu1 %v3457_v8  ;;  %1279 = vmatpush1.bf16.msra.mxu0 %v3182_v0  ;;  %v3160_v0 = vcombine.low %v77_v52, %v93_v53 }
  0x60   :  { %1352 = vmatpush1.bf16.msra.mxu1 %v3184_v1  ;;  %3264 = vmatprep.subr.msk.bf16.mxu0 %vm739_vm0, %v3215_v2  ;;  %v3191_v1 = vcombine.high %v108_v59, %v124_v60  ;;  %v3193_v2 = vcombine.high %v109_v61, %v125_v62  ;;  %v97_v59 = vld [vmem:[%s4403_s1 + $0x1f8] sm:$0xff] }
  0x61   :  { %3269 = vmatprep.subr.msk.bf16.mxu1 %vm739_vm0, %v3217_v4  ;;  %v141_v4 = vld [vmem:[%s4403_s1 + $0x358] sm:$0x77] }
  0x62   :  { %v3225_v12 = vcombine.high %v141_v4, %v141_v4 }
  0x63   :  { %1281 = vmatpush1.bf16.msra.mxu0 %v777_v13  ;;  %v3224_v13 = vcombine.low %v141_v4, %v141_v4 }
  0x64   :  { %1354 = vmatpush1.bf16.msra.mxu1 %v783_v15  ;;  %1420 = vmatprep.subr.bf16.mxu0 %v3123_v14  ;;  %v46_v14 = vld [vmem:[%s4403_s1 + $0x60] sm:$0xff] }
  0x65   :  { %3257 = vmatmul.mubr.msk.bf16.gmra.mrb[40].mxu0 %vm726_vm1, %v3628_v7  ;;  %1493 = vmatprep.subr.bf16.mxu1 %v3125_v16  ;;  %v62_v15 = vld [vmem:[%s4403_s1 + $0xe0] sm:$0xff]  ;;  %v47_v16 = vld [vmem:[%s4403_s1 + $0x68] sm:$0xff]  ;;  %v807_v20 = vsel %vm739_vm0, %v3224_v13, 0 }
  0x66   :  { %3262 = vmatmul.mubr.msk.bf16.gmra.mrb[40].mxu1 %vm726_vm1, %v3628_v7  ;;  %1190 = vmatprep.mubr.bf16.mxu0 %v3457_v8  ;;  %v3131_v19 = vcombine.high %v46_v14, %v62_v15  ;;  %v3130_v26 = vcombine.low %v46_v14, %v62_v15  ;;  %v3132_v27 = vcombine.low %v47_v16, %v63_v17 }
  0x67   :  { %1263 = vmatprep.mubr.bf16.mxu1 %v3457_v8  ;;  %v3231_v15 = vcombine.high %v144_v10, %v144_v10 }
  0x6d   :  { %3258 = vmatmul.mubr.msk.bf16.gmra.mrb[44].mxu0 %vm726_vm1, %v3641_v11 }
  0x6e   :  { %3263 = vmatmul.mubr.msk.bf16.gmra.mrb[44].mxu1 %vm726_vm1, %v3641_v11  ;;  %1306 = vmatprep.mubr.bf16.mxu0 %v3457_v8 }
  0x6f   :  { %1379 = vmatprep.mubr.bf16.mxu1 %v3457_v8 }
  0x75   :  { %3265 = vmatmul.mubr.msk.bf16.vlgmr.msra.gmra.mrb[48].mxu0 %vm726_vm1, %v3562_v39 }
  0x76   :  { %3270 = vmatmul.mubr.msk.bf16.vlgmr.msra.gmra.mrb[48].mxu1 %vm726_vm1, %v3562_v39  ;;  %1316 = vmatprep.mubr.bf16.mxu0 %v3457_v8 }
  0x77   :  { %1389 = vmatprep.mubr.bf16.mxu1 %v3457_v8  ;;  %1421 = vmatpush1.bf16.msra.mxu0 %v3122_v21  ;;  %v3133_v21 = vcombine.high %v47_v16, %v63_v17  ;;  %v3230_v16 = vcombine.low %v144_v10, %v144_v10 }
  0x78   :  { %1494 = vmatpush1.bf16.msra.mxu1 %v3124_v22  ;;  %1422 = vmatprep.subr.bf16.mxu0 %v3155_v23  ;;  %v78_v22 = vld [vmem:[%s4403_s1 + $0x160] sm:$0xff] }
  0x79   :  { %1495 = vmatprep.subr.bf16.mxu1 %v3157_v24  ;;  %v94_v23 = vld [vmem:[%s4403_s1 + $0x1e0] sm:$0xff]  ;;  %v79_v24 = vld [vmem:[%s4403_s1 + $0x168] sm:$0xff] }
  0x7a   :  { %v3163_v28 = vcombine.high %v78_v22, %v94_v23  ;;  %v3162_v34 = vcombine.low %v78_v22, %v94_v23 }
  0x7b   :  { %1423 = vmatpush1.bf16.msra.mxu0 %v3154_v29  ;;  %v3165_v29 = vcombine.high %v79_v24, %v95_v25 }
  0x7c   :  { %1496 = vmatpush1.bf16.msra.mxu1 %v3156_v30  ;;  %1424 = vmatprep.subr.bf16.mxu0 %v3187_v31  ;;  %v110_v30 = vld [vmem:[%s4403_s1 + $0x260] sm:$0xff] }
  0x7d   :  { %3266 = vmatmul.mubr.msk.bf16.gmra.mrb[52].mxu0 %vm726_vm1, %v3597_v55  ;;  %1497 = vmatprep.subr.bf16.mxu1 %v3189_v32  ;;  %v126_v31 = vld [vmem:[%s4403_s1 + $0x2e0] sm:$0xff]  ;;  %v111_v32 = vld [vmem:[%s4403_s1 + $0x268] sm:$0xff] }
  0x7e   :  { %3271 = vmatmul.mubr.msk.bf16.gmra.mrb[52].mxu1 %vm726_vm1, %v3597_v55  ;;  %1326 = vmatprep.mubr.bf16.mxu0 %v3457_v8  ;;  %v3194_v41 = vcombine.low %v110_v30, %v126_v31  ;;  %v3196_v42 = vcombine.low %v111_v32, %v127_v33 }
  0x7f   :  { %1399 = vmatprep.mubr.bf16.mxu1 %v3457_v8  ;;  %1425 = vmatpush1.bf16.msra.mxu0 %v3186_v35  ;;  %v3164_v35 = vcombine.low %v79_v24, %v95_v25 }
  0x80   :  { %1498 = vmatpush1.bf16.msra.mxu1 %v3188_v36  ;;  %3274 = vmatprep.subr.msk.bf16.mxu0 %vm739_vm0, %v3219_v37  ;;  %v3195_v36 = vcombine.high %v110_v30, %v126_v31  ;;  %v3197_v37 = vcombine.high %v111_v32, %v127_v33 }
  0x81   :  { %3279 = vmatprep.subr.msk.bf16.mxu1 %vm739_vm0, %v3221_v40  ;;  %v143_v40 = vld [vmem:[%s4403_s1 + $0x368] sm:$0x77] }
  0x82   :  { %v3229_v45 = vcombine.high %v143_v40, %v143_v40 }
  0x83   :  { %1427 = vmatpush1.bf16.msra.mxu0 %v789_v46  ;;  %v3228_v46 = vcombine.low %v143_v40, %v143_v40 }
  0x84   :  { %1500 = vmatpush1.bf16.msra.mxu1 %v795_v48  ;;  %1566 = vmatprep.subr.bf16.mxu0 %v3127_v47  ;;  %v48_v47 = vld [vmem:[%s4403_s1 + $0x70] sm:$0xff] }
  0x85   :  { %3267 = vmatmul.mubr.msk.bf16.gmra.mrb[56].mxu0 %vm726_vm1, %v3628_v7  ;;  %1639 = vmatprep.subr.bf16.mxu1 %v3129_v49  ;;  %v64_v48 = vld [vmem:[%s4403_s1 + $0xf0] sm:$0xff]  ;;  %v49_v49 = vld [vmem:[%s4403_s1 + $0x78] sm:$0xff]  ;;  %v819_v53 = vsel %vm739_vm0, %v3228_v46, 0 }
  0x86   :  { %3272 = vmatmul.mubr.msk.bf16.gmra.mrb[56].mxu1 %vm726_vm1, %v3628_v7  ;;  %1336 = vmatprep.mubr.bf16.mxu0 %v3457_v8  ;;  %v3135_v52 = vcombine.high %v48_v47, %v64_v48  ;;  %v3134_v60 = vcombine.low %v48_v47, %v64_v48  ;;  %v3136_v61 = vcombine.low %v49_v49, %v65_v50 }
  0x87   :  { %1409 = vmatprep.mubr.bf16.mxu1 %v3457_v8 }
  0x8d   :  { %3268 = vmatmul.mubr.msk.bf16.gmra.mrb[60].mxu0 %vm726_vm1, %v3641_v11 }
  0x8e   :  { %3273 = vmatmul.mubr.msk.bf16.gmra.mrb[60].mxu1 %vm726_vm1, %v3641_v11  ;;  %1452 = vmatprep.mubr.bf16.mxu0 %v3457_v8 }
  0x8f   :  { %1525 = vmatprep.mubr.bf16.mxu1 %v3457_v8 }
  0x95   :  { %3275 = vmatmul.mubr.msk.bf16.vlgmr.msra.gmra.mrb[64].mxu0 %vm726_vm1, %v3562_v39 }
  0x96   :  { %3280 = vmatmul.mubr.msk.bf16.vlgmr.msra.gmra.mrb[64].mxu1 %vm726_vm1, %v3562_v39  ;;  %1462 = vmatprep.mubr.bf16.mxu0 %v3457_v8 }
  0x97   :  { %1535 = vmatprep.mubr.bf16.mxu1 %v3457_v8  ;;  %1567 = vmatpush1.bf16.msra.mxu0 %v3126_v54  ;;  %v3137_v54 = vcombine.high %v49_v49, %v65_v50 }
  0x98   :  { %1640 = vmatpush1.bf16.msra.mxu1 %v3128_v56  ;;  %1568 = vmatprep.subr.bf16.mxu0 %v3159_v57  ;;  %v80_v56 = vld [vmem:[%s4403_s1 + $0x170] sm:$0xff] }
  0x99   :  { %1641 = vmatprep.subr.bf16.mxu1 %v3161_v58  ;;  %v96_v57 = vld [vmem:[%s4403_s1 + $0x1f0] sm:$0xff]  ;;  %v81_v58 = vld [vmem:[%s4403_s1 + $0x178] sm:$0xff] }
  0x9a   :  { %v3167_v62 = vcombine.high %v80_v56, %v96_v57  ;;  %v3166_v4 = vcombine.low %v80_v56, %v96_v57 }
  0x9b   :  { %1569 = vmatpush1.bf16.msra.mxu0 %v3158_v63  ;;  %v3169_v63 = vcombine.high %v81_v58, %v97_v59 }
  0x9c   :  { %1642 = vmatpush1.bf16.msra.mxu1 %v3160_v0  ;;  %1570 = vmatprep.subr.bf16.mxu0 %v3191_v1  ;;  %v112_v0 = vld [vmem:[%s4403_s1 + $0x270] sm:$0xff] }
  0x9d   :  { %3276 = vmatmul.mubr.msk.bf16.gmra.mrb[68].mxu0 %vm726_vm1, %v3597_v55  ;;  %1643 = vmatprep.subr.bf16.mxu1 %v3193_v2  ;;  %v128_v1 = vld [vmem:[%s4403_s1 + $0x2f0] sm:$0xff]  ;;  %v113_v2 = vld [vmem:[%s4403_s1 + $0x278] sm:$0xff] }
  0x9e   :  { %3281 = vmatmul.mubr.msk.bf16.gmra.mrb[68].mxu1 %vm726_vm1, %v3597_v55  ;;  %1472 = vmatprep.mubr.bf16.mxu0 %v3457_v8  ;;  %v3198_v13 = vcombine.low %v112_v0, %v128_v1  ;;  %v3200_v14 = vcombine.low %v113_v2, %v129_v3 }
  0x9f   :  { %1545 = vmatprep.mubr.bf16.mxu1 %v3457_v8  ;;  %1571 = vmatpush1.bf16.msra.mxu0 %v3190_v5  ;;  %v3168_v5 = vcombine.low %v81_v58, %v97_v59 }
  0xa0   :  { %1644 = vmatpush1.bf16.msra.mxu1 %v3192_v6  ;;  %3284 = vmatprep.subr.msk.bf16.mxu0 %vm739_vm0, %v3223_v9  ;;  %v3199_v6 = vcombine.high %v112_v0, %v128_v1  ;;  %v3201_v9 = vcombine.high %v113_v2, %v129_v3 }
  0xa1   :  { %3289 = vmatprep.subr.msk.bf16.mxu1 %vm739_vm0, %v3225_v12  ;;  %v145_v12 = vld [vmem:[%s4403_s1 + $0x378] sm:$0x77] }
  0xa2   :  { %v3233_v17 = vcombine.high %v145_v12, %v145_v12 }
  0xa3   :  { %1573 = vmatpush1.bf16.msra.mxu0 %v801_v18  ;;  %v3232_v18 = vcombine.low %v145_v12, %v145_v12 }
  0xa4   :  { %1646 = vmatpush1.bf16.msra.mxu1 %v807_v20  ;;  %1712 = vmatprep.subr.bf16.mxu0 %v3131_v19  ;;  %v825_v19 = vsel %vm739_vm0, %v3230_v16, 0 }
  0xa5   :  { %3277 = vmatmul.mubr.msk.bf16.gmra.mrb[72].mxu0 %vm726_vm1, %v3628_v7  ;;  %1785 = vmatprep.subr.bf16.mxu1 %v3133_v21  ;;  %v831_v20 = vsel %vm739_vm0, %v3232_v18, 0 }
  0xa6   :  { %3282 = vmatmul.mubr.msk.bf16.gmra.mrb[72].mxu1 %vm726_vm1, %v3628_v7  ;;  %1482 = vmatprep.mubr.bf16.mxu0 %v3457_v8 }
  0xa7   :  { %1555 = vmatprep.mubr.bf16.mxu1 %v3457_v8 }
  0xad   :  { %3278 = vmatmul.mubr.msk.bf16.gmra.mrb[76].mxu0 %vm726_vm1, %v3641_v11 }
  0xae   :  { %3283 = vmatmul.mubr.msk.bf16.gmra.mrb[76].mxu1 %vm726_vm1, %v3641_v11  ;;  %1598 = vmatprep.mubr.bf16.mxu0 %v3457_v8 }
  0xaf   :  { %1671 = vmatprep.mubr.bf16.mxu1 %v3457_v8 }
  0xb5   :  { %3285 = vmatmul.mubr.msk.bf16.vlgmr.msra.gmra.mrb[80].mxu0 %vm726_vm1, %v3562_v39 }
  0xb6   :  { %3290 = vmatmul.mubr.msk.bf16.vlgmr.msra.gmra.mrb[80].mxu1 %vm726_vm1, %v3562_v39  ;;  %1608 = vmatprep.mubr.bf16.mxu0 %v3457_v8 }
  0xb7   :  { %1681 = vmatprep.mubr.bf16.mxu1 %v3457_v8  ;;  %1713 = vmatpush1.bf16.msra.mxu0 %v3130_v26 }
  0xb8   :  { %1786 = vmatpush1.bf16.msra.mxu1 %v3132_v27  ;;  %1714 = vmatprep.subr.bf16.mxu0 %v3163_v28 }
  0xb9   :  { %1787 = vmatprep.subr.bf16.mxu1 %v3165_v29 }
  0xbb   :  { %1715 = vmatpush1.bf16.msra.mxu0 %v3162_v34 }
  0xbc   :  { %1788 = vmatpush1.bf16.msra.mxu1 %v3164_v35  ;;  %1716 = vmatprep.subr.bf16.mxu0 %v3195_v36 }
  0xbd   :  { %3286 = vmatmul.mubr.msk.bf16.gmra.mrb[84].mxu0 %vm726_vm1, %v3597_v55  ;;  %1789 = vmatprep.subr.bf16.mxu1 %v3197_v37 }
  0xbe   :  { %3291 = vmatmul.mubr.msk.bf16.gmra.mrb[84].mxu1 %vm726_vm1, %v3597_v55  ;;  %1618 = vmatprep.mubr.bf16.mxu0 %v3457_v8 }
  0xbf   :  { %1691 = vmatprep.mubr.bf16.mxu1 %v3457_v8  ;;  %1717 = vmatpush1.bf16.msra.mxu0 %v3194_v41 }
  0xc0   :  { %1790 = vmatpush1.bf16.msra.mxu1 %v3196_v42  ;;  %3294 = vmatprep.subr.msk.bf16.mxu0 %vm739_vm0, %v3227_v43 }
  0xc1   :  { %3299 = vmatprep.subr.msk.bf16.mxu1 %vm739_vm0, %v3229_v45 }
  0xc3   :  { %1719 = vmatpush1.bf16.msra.mxu0 %v813_v51 }
  0xc4   :  { %1792 = vmatpush1.bf16.msra.mxu1 %v819_v53  ;;  %1858 = vmatprep.subr.bf16.mxu0 %v3135_v52 }
  0xc5   :  { %3287 = vmatmul.mubr.msk.bf16.gmra.mrb[88].mxu0 %vm726_vm1, %v3628_v7  ;;  %1931 = vmatprep.subr.bf16.mxu1 %v3137_v54 }
  0xc6   :  { %3292 = vmatmul.mubr.msk.bf16.gmra.mrb[88].mxu1 %vm726_vm1, %v3628_v7  ;;  %1628 = vmatprep.mubr.bf16.mxu0 %v3457_v8 }
  0xc7   :  { %1701 = vmatprep.mubr.bf16.mxu1 %v3457_v8 }
  0xcd   :  { %3288 = vmatmul.mubr.msk.bf16.gmra.mrb[92].mxu0 %vm726_vm1, %v3641_v11 }
  0xce   :  { %3293 = vmatmul.mubr.msk.bf16.gmra.mrb[92].mxu1 %vm726_vm1, %v3641_v11  ;;  %1744 = vmatprep.mubr.bf16.mxu0 %v3457_v8 }
  0xcf   :  { %1817 = vmatprep.mubr.bf16.mxu1 %v3457_v8 }
  0xd5   :  { %3295 = vmatmul.mubr.msk.bf16.vlgmr.msra.gmra.mrb[96].mxu0 %vm726_vm1, %v3562_v39 }
  0xd6   :  { %3300 = vmatmul.mubr.msk.bf16.vlgmr.msra.gmra.mrb[96].mxu1 %vm726_vm1, %v3562_v39  ;;  %1754 = vmatprep.mubr.bf16.mxu0 %v3457_v8 }
  0xd7   :  { %1827 = vmatprep.mubr.bf16.mxu1 %v3457_v8  ;;  %1859 = vmatpush1.bf16.msra.mxu0 %v3134_v60 }
  0xd8   :  { %1932 = vmatpush1.bf16.msra.mxu1 %v3136_v61  ;;  %1860 = vmatprep.subr.bf16.mxu0 %v3167_v62 }
  0xd9   :  { %1933 = vmatprep.subr.bf16.mxu1 %v3169_v63 }
  0xdb   :  { %1861 = vmatpush1.bf16.msra.mxu0 %v3166_v4 }
  0xdc   :  { %1934 = vmatpush1.bf16.msra.mxu1 %v3168_v5  ;;  %1862 = vmatprep.subr.bf16.mxu0 %v3199_v6 }
  0xdd   :  { %3296 = vmatmul.mubr.msk.bf16.gmra.mrb[100].mxu0 %vm726_vm1, %v3597_v55  ;;  %1935 = vmatprep.subr.bf16.mxu1 %v3201_v9 }
  0xde   :  { %3301 = vmatmul.mubr.msk.bf16.gmra.mrb[100].mxu1 %vm726_vm1, %v3597_v55  ;;  %1764 = vmatprep.mubr.bf16.mxu0 %v3457_v8 }
  0xdf   :  { %1837 = vmatprep.mubr.bf16.mxu1 %v3457_v8  ;;  %1863 = vmatpush1.bf16.msra.mxu0 %v3198_v13 }
  0xe0   :  { %1936 = vmatpush1.bf16.msra.mxu1 %v3200_v14  ;;  %3304 = vmatprep.subr.msk.bf16.mxu0 %vm739_vm0, %v3231_v15 }
  0xe1   :  { %3309 = vmatprep.subr.msk.bf16.mxu1 %vm739_vm0, %v3233_v17  ;;  %vm2761_vm0 = vcmask 113664  }
  0xe3   :  { %1865 = vmatpush1.bf16.msra.mxu0 %v825_v19 }
  0xe4   :  { %1938 = vmatpush1.bf16.msra.mxu1 %v831_v20 }
  0xe5   :  { %3297 = vmatmul.mubr.msk.bf16.gmra.mrb[104].mxu0 %vm726_vm1, %v3628_v7 }
  0xe6   :  { %3302 = vmatmul.mubr.msk.bf16.gmra.mrb[104].mxu1 %vm726_vm1, %v3628_v7  ;;  %1774 = vmatprep.mubr.bf16.mxu0 %v3457_v8 }
  0xe7   :  { %1847 = vmatprep.mubr.bf16.mxu1 %v3457_v8 }
  0xe8   :  { %v870_v21 = vpop.f32.mrb[0].mxu0  ;;  %v943_v23 = vpop.f32.mrb[0].mxu1 }
  0xe9   :  { %v2004_v22 = vmax.f32 %v870_v21, 0.0  ;;  %v872_v24 = vpop.f32.mrb[1].mxu0  ;;  %v2006_v25 = vmax.f32 %v943_v23, 0.0  ;;  %v945_v27 = vpop.f32.mrb[1].mxu1 }
  0xea   :  { %v2005_v26 = vmax.f32 %v872_v24, 0.0  ;;  %v874_v28 = vpop.f32.mrb[2].mxu0  ;;  %v2007_v29 = vmax.f32 %v945_v27, 0.0  ;;  %v947_v31 = vpop.f32.mrb[2].mxu1 }
  0xeb   :  { %v2036_v30 = vmax.f32 %v874_v28, 0.0  ;;  %v876_v32 = vpop.f32.mrb[3].mxu0  ;;  %v2038_v33 = vmax.f32 %v947_v31, 0.0  ;;  %v949_v35 = vpop.f32.mrb[3].mxu1 }
  0xec   :  { %v2037_v34 = vmax.f32 %v876_v32, 0.0  ;;  %v2260_v36 = vadd.f32 %v2005_v26, %v2004_v22  ;;  %v2039_v37 = vmax.f32 %v949_v35, 0.0  ;;  %v2284_v38 = vadd.f32 %v2007_v29, %v2006_v25 }
  0xed   :  { %3298 = vmatmul.mubr.msk.bf16.gmra.mrb[108].mxu0 %vm726_vm1, %v3641_v11 }
  0xee   :  { %3303 = vmatmul.mubr.msk.bf16.gmra.mrb[108].mxu1 %vm726_vm1, %v3641_v11  ;;  %2261 = vadd.xlane.f32.xlu0 %v2260_v36  ;;  %v2263_v40 = vadd.f32 %v2037_v34, %v2036_v30  ;;  %v2287_v41 = vadd.f32 %v2039_v37, %v2038_v33 }
  0xef   :  { %1890 = vmatprep.mubr.bf16.mxu0 %v3457_v8  ;;  %1963 = vmatprep.mubr.bf16.mxu1 %v3457_v8 }
  0xf0   :  { %2264 = vadd.xlane.f32.xlu1 %v2263_v40  ;;  %v880_v42 = vpop.f32.mrb[4].mxu0 }
  0xf1   :  { %v953_v43 = vpop.f32.mrb[4].mxu1  ;;  %v2068_v44 = vmax.f32 %v880_v42, 0.0  ;;  %v882_v45 = vpop.f32.mrb[5].mxu0 }
  0xf2   :  { %v2070_v46 = vmax.f32 %v953_v43, 0.0  ;;  %v2069_v47 = vmax.f32 %v882_v45, 0.0  ;;  %v955_v48 = vpop.f32.mrb[5].mxu1  ;;  %2285 = vadd.xlane.f32.xlu0 %v2284_v38  ;;  %v884_v49 = vpop.f32.mrb[6].mxu0 }
  0xf3   :  { %v2071_v50 = vmax.f32 %v955_v48, 0.0  ;;  %v957_v51 = vpop.f32.mrb[6].mxu1  ;;  %v2100_v52 = vmax.f32 %v884_v49, 0.0  ;;  %v886_v53 = vpop.f32.mrb[7].mxu0 }
  0xf4   :  { %v2102_v54 = vmax.f32 %v957_v51, 0.0  ;;  %v2101_v56 = vmax.f32 %v886_v53, 0.0  ;;  %v959_v57 = vpop.f32.mrb[7].mxu1  ;;  %v2266_v58 = vadd.f32 %v2069_v47, %v2068_v44 }
  0xf5   :  { %v2103_v59 = vmax.f32 %v959_v57, 0.0  ;;  %3305 = vmatmul.mubr.msk.bf16.vlgmr.msra.gmra.mrb[112].mxu0 %vm726_vm1, %v3562_v39  ;;  %v2290_v60 = vadd.f32 %v2071_v50, %v2070_v46 }
  0xf6   :  { %3310 = vmatmul.mubr.msk.bf16.vlgmr.msra.gmra.mrb[112].mxu1 %vm726_vm1, %v3562_v39  ;;  %2288 = vadd.xlane.f32.xlu0 %v2287_v41  ;;  %v2269_v61 = vadd.f32 %v2101_v56, %v2100_v52 }
  0xf7   :  { %2291 = vadd.xlane.f32.xlu1 %v2290_v60  ;;  %1900 = vmatprep.mubr.bf16.mxu0 %v3457_v8  ;;  %v2293_v62 = vadd.f32 %v2103_v59, %v2102_v54 }
  0xf8   :  { %v890_v63 = vpop.f32.mrb[8].mxu0  ;;  %1973 = vmatprep.mubr.bf16.mxu1 %v3457_v8 }
  0xf9   :  { %v2132_v0 = vmax.f32 %v890_v63, 0.0  ;;  %v963_v1 = vpop.f32.mrb[8].mxu1  ;;  %v892_v2 = vpop.f32.mrb[9].mxu0 }
  0xfa   :  { %v2134_v3 = vmax.f32 %v963_v1, 0.0  ;;  %v2133_v4 = vmax.f32 %v892_v2, 0.0  ;;  %v965_v5 = vpop.f32.mrb[9].mxu1  ;;  %2267 = vadd.xlane.f32.xlu0 %v2266_v58  ;;  %v894_v6 = vpop.f32.mrb[10].mxu0 }
  0xfb   :  { %v2135_v9 = vmax.f32 %v965_v5, 0.0  ;;  %v967_v10 = vpop.f32.mrb[10].mxu1  ;;  %2270 = vadd.xlane.f32.xlu1 %v2269_v61  ;;  %v2164_v39 = vmax.f32 %v894_v6, 0.0  ;;  %v896_v12 = vpop.f32.mrb[11].mxu0 }
  0xfc   :  { %v2166_v13 = vmax.f32 %v967_v10, 0.0  ;;  %v2165_v14 = vmax.f32 %v896_v12, 0.0  ;;  %v969_v15 = vpop.f32.mrb[11].mxu1  ;;  %v2272_v16 = vadd.f32 %v2133_v4, %v2132_v0 }
  0xfd   :  { %v2167_v17 = vmax.f32 %v969_v15, 0.0  ;;  %3306 = vmatmul.mubr.msk.bf16.gmra.mrb[116].mxu0 %vm726_vm1, %v3597_v55  ;;  %v2296_v18 = vadd.f32 %v2135_v9, %v2134_v3 }
  0xfe   :  { %2294 = vadd.xlane.f32.xlu0 %v2293_v62  ;;  %3311 = vmatmul.mubr.msk.bf16.gmra.mrb[116].mxu1 %vm726_vm1, %v3597_v55  ;;  %v2275_v19 = vadd.f32 %v2165_v14, %v2164_v39 }
  0xff   :  { %2297 = vadd.xlane.f32.xlu1 %v2296_v18  ;;  %1910 = vmatprep.mubr.bf16.mxu0 %v3457_v8  ;;  %v2299_v20 = vadd.f32 %v2167_v17, %v2166_v13 }
 0x100   :  { %v900_v21 = vpop.f32.mrb[12].mxu0  ;;  %1983 = vmatprep.mubr.bf16.mxu1 %v3457_v8 }
 0x101   :  { %v2196_v22 = vmax.f32 %v900_v21, 0.0  ;;  %v973_v23 = vpop.f32.mrb[12].mxu1  ;;  %v902_v24 = vpop.f32.mrb[13].mxu0 }
 0x102   :  { %v2198_v25 = vmax.f32 %v973_v23, 0.0  ;;  %v2197_v26 = vmax.f32 %v902_v24, 0.0  ;;  %v975_v27 = vpop.f32.mrb[13].mxu1  ;;  %2273 = vadd.xlane.f32.xlu0 %v2272_v16  ;;  %v904_v28 = vpop.f32.mrb[14].mxu0 }
 0x103   :  { %v2199_v29 = vmax.f32 %v975_v27, 0.0  ;;  %v977_v30 = vpop.f32.mrb[14].mxu1  ;;  %2276 = vadd.xlane.f32.xlu1 %v2275_v19  ;;  %v2228_v55 = vmax.f32 %v904_v28, 0.0  ;;  %v906_v31 = vpop.f32.mrb[15].mxu0 }
 0x104   :  { %v2230_v32 = vmax.f32 %v977_v30, 0.0  ;;  %v2229_v33 = vmax.f32 %v906_v31, 0.0  ;;  %v979_v34 = vpop.f32.mrb[15].mxu1  ;;  %v2278_v35 = vadd.f32 %v2197_v26, %v2196_v22 }
 0x105   :  { %v2231_v36 = vmax.f32 %v979_v34, 0.0  ;;  %v2302_v37 = vadd.f32 %v2199_v29, %v2198_v25  ;;  %3307 = vmatmul.mubr.msk.bf16.gmra.mrb[120].mxu0 %vm726_vm1, %v3628_v7 }
 0x106   :  { %2300 = vadd.xlane.f32.xlu0 %v2299_v20  ;;  %v2281_v38 = vadd.f32 %v2229_v33, %v2228_v55  ;;  %3312 = vmatmul.mubr.msk.bf16.gmra.mrb[120].mxu1 %vm726_vm1, %v3628_v7 }
 0x107   :  { %2303 = vadd.xlane.f32.xlu1 %v2302_v37  ;;  %1920 = vmatprep.mubr.bf16.mxu0 %v3457_v8  ;;  %v2305_v40 = vadd.f32 %v2231_v36, %v2230_v32 }
 0x108   :  { %v1016_v41 = vpop.f32.mrb[16].mxu0  ;;  %1993 = vmatprep.mubr.bf16.mxu1 %v3457_v8 }
 0x109   :  { %v2008_v42 = vmax.f32 %v1016_v41, 0.0  ;;  %v1089_v43 = vpop.f32.mrb[16].mxu1  ;;  %v1018_v44 = vpop.f32.mrb[17].mxu0 }
 0x10a   :  { %v2010_v45 = vmax.f32 %v1089_v43, 0.0  ;;  %v2009_v46 = vmax.f32 %v1018_v44, 0.0  ;;  %v1091_v47 = vpop.f32.mrb[17].mxu1  ;;  %2279 = vadd.xlane.f32.xlu0 %v2278_v35  ;;  %v1020_v48 = vpop.f32.mrb[18].mxu0 }
 0x10b   :  { %v2011_v49 = vmax.f32 %v1091_v47, 0.0  ;;  %v1093_v50 = vpop.f32.mrb[18].mxu1  ;;  %2282 = vadd.xlane.f32.xlu1 %v2281_v38  ;;  %v2040_v51 = vmax.f32 %v1020_v48, 0.0  ;;  %v1022_v7 = vpop.f32.mrb[19].mxu0 }
 0x10c   :  { %v2042_v52 = vmax.f32 %v1093_v50, 0.0  ;;  %v2041_v53 = vmax.f32 %v1022_v7, 0.0  ;;  %v1095_v54 = vpop.f32.mrb[19].mxu1  ;;  %v2308_v56 = vadd.f32 %v2009_v46, %v2008_v42 }
 0x10d   :  { %v2043_v57 = vmax.f32 %v1095_v54, 0.0  ;;  %3308 = vmatmul.mubr.msk.bf16.gmra.mrb[124].mxu0 %vm726_vm1, %v3641_v11  ;;  %v2332_v58 = vadd.f32 %v2011_v49, %v2010_v45 }
 0x10e   :  { %2306 = vadd.xlane.f32.xlu0 %v2305_v40  ;;  %v2311_v59 = vadd.f32 %v2041_v53, %v2040_v51  ;;  %3313 = vmatmul.mubr.msk.bf16.gmra.mrb[124].mxu1 %vm726_vm1, %v3641_v11  ;;  %vm2827_vm1 = vcmask 523264  }
 0x10f   :  { %2309 = vadd.xlane.f32.xlu1 %v2308_v56  ;;  %v2335_v60 = vadd.f32 %v2043_v57, %v2042_v52 }
 0x110   :  { %v1026_v61 = vpop.f32.mrb[20].mxu0 }
 0x111   :  { %v2072_v62 = vmax.f32 %v1026_v61, 0.0  ;;  %v1099_v63 = vpop.f32.mrb[20].mxu1  ;;  %v1028_v0 = vpop.f32.mrb[21].mxu0 }
 0x112   :  { %v2074_v1 = vmax.f32 %v1099_v63, 0.0  ;;  %v2073_v2 = vmax.f32 %v1028_v0, 0.0  ;;  %v1101_v3 = vpop.f32.mrb[21].mxu1  ;;  %2312 = vadd.xlane.f32.xlu0 %v2311_v59  ;;  %v1030_v4 = vpop.f32.mrb[22].mxu0 }
 0x113   :  { %v2075_v5 = vmax.f32 %v1101_v3, 0.0  ;;  %v1103_v6 = vpop.f32.mrb[22].mxu1  ;;  %2333 = vadd.xlane.f32.xlu1 %v2332_v58  ;;  %v2104_v9 = vmax.f32 %v1030_v4, 0.0  ;;  %v1032_v10 = vpop.f32.mrb[23].mxu0 }
 0x114   :  { %v2106_v39 = vmax.f32 %v1103_v6, 0.0  ;;  %v2105_v12 = vmax.f32 %v1032_v10, 0.0  ;;  %v1105_v13 = vpop.f32.mrb[23].mxu1  ;;  %v2314_v11 = vadd.f32 %v2073_v2, %v2072_v62 }
 0x115   :  { %v2107_v14 = vmax.f32 %v1105_v13, 0.0  ;;  %v2338_v15 = vadd.f32 %v2075_v5, %v2074_v1 }
 0x116   :  { %2336 = vadd.xlane.f32.xlu0 %v2335_v60  ;;  %v2317_v16 = vadd.f32 %v2105_v12, %v2104_v9 }
 0x117   :  { %2339 = vadd.xlane.f32.xlu1 %v2338_v15  ;;  %v2341_v17 = vadd.f32 %v2107_v14, %v2106_v39 }
 0x118   :  { %v1036_v18 = vpop.f32.mrb[24].mxu0 }
 0x119   :  { %v2136_v19 = vmax.f32 %v1036_v18, 0.0  ;;  %v1109_v20 = vpop.f32.mrb[24].mxu1  ;;  %v1038_v21 = vpop.f32.mrb[25].mxu0 }
 0x11a   :  { %v2138_v22 = vmax.f32 %v1109_v20, 0.0  ;;  %v2137_v23 = vmax.f32 %v1038_v21, 0.0  ;;  %v1111_v24 = vpop.f32.mrb[25].mxu1  ;;  %2315 = vadd.xlane.f32.xlu0 %v2314_v11  ;;  %v1040_v25 = vpop.f32.mrb[26].mxu0 }
 0x11b   :  { %v2139_v26 = vmax.f32 %v1111_v24, 0.0  ;;  %v1113_v27 = vpop.f32.mrb[26].mxu1  ;;  %v2168_v28 = vmax.f32 %v1040_v25, 0.0  ;;  %v1042_v29 = vpop.f32.mrb[27].mxu0 }
 0x11c   :  { %v2170_v30 = vmax.f32 %v1113_v27, 0.0  ;;  %v2169_v55 = vmax.f32 %v1042_v29, 0.0  ;;  %v1115_v31 = vpop.f32.mrb[27].mxu1  ;;  %v2320_v32 = vadd.f32 %v2137_v23, %v2136_v19 }
 0x11d   :  { %v2171_v33 = vmax.f32 %v1115_v31, 0.0  ;;  %v2344_v34 = vadd.f32 %v2139_v26, %v2138_v22 }
 0x11e   :  { %2318 = vadd.xlane.f32.xlu0 %v2317_v16  ;;  %v2323_v35 = vadd.f32 %v2169_v55, %v2168_v28 }
 0x11f   :  { %2345 = vadd.xlane.f32.xlu1 %v2344_v34  ;;  %v2347_v36 = vadd.f32 %v2171_v33, %v2170_v30 }
 0x120   :  { %v1046_v37 = vpop.f32.mrb[28].mxu0 }
 0x121   :  { %v2200_v38 = vmax.f32 %v1046_v37, 0.0  ;;  %v1119_v40 = vpop.f32.mrb[28].mxu1  ;;  %v1048_v41 = vpop.f32.mrb[29].mxu0 }
 0x122   :  { %v2202_v42 = vmax.f32 %v1119_v40, 0.0  ;;  %v2201_v43 = vmax.f32 %v1048_v41, 0.0  ;;  %v1121_v44 = vpop.f32.mrb[29].mxu1  ;;  %2342 = vadd.xlane.f32.xlu0 %v2341_v17  ;;  %v1050_v45 = vpop.f32.mrb[30].mxu0 }
 0x123   :  { %v2203_v46 = vmax.f32 %v1121_v44, 0.0  ;;  %v1123_v47 = vpop.f32.mrb[30].mxu1  ;;  %v2232_v48 = vmax.f32 %v1050_v45, 0.0  ;;  %v1052_v49 = vpop.f32.mrb[31].mxu0 }
 0x124   :  { %v2234_v50 = vmax.f32 %v1123_v47, 0.0  ;;  %v2233_v51 = vmax.f32 %v1052_v49, 0.0  ;;  %v1125_v7 = vpop.f32.mrb[31].mxu1  ;;  %v2326_v52 = vadd.f32 %v2201_v43, %v2200_v38 }
 0x125   :  { %v2235_v53 = vmax.f32 %v1125_v7, 0.0  ;;  %v2350_v54 = vadd.f32 %v2203_v46, %v2202_v42 }
 0x126   :  { %2321 = vadd.xlane.f32.xlu0 %v2320_v32  ;;  %v2329_v56 = vadd.f32 %v2233_v51, %v2232_v48 }
 0x127   :  { %2351 = vadd.xlane.f32.xlu1 %v2350_v54  ;;  %v2353_v57 = vadd.f32 %v2235_v53, %v2234_v50 }
 0x128   :  { %v1162_v58 = vpop.f32.mrb[32].mxu0 }
 0x129   :  { %v2012_v59 = vmax.f32 %v1162_v58, 0.0  ;;  %v1235_v60 = vpop.f32.mrb[32].mxu1  ;;  %v1164_v61 = vpop.f32.mrb[33].mxu0 }
 0x12a   :  { %v2014_v62 = vmax.f32 %v1235_v60, 0.0  ;;  %v2013_v63 = vmax.f32 %v1164_v61, 0.0  ;;  %v1237_v0 = vpop.f32.mrb[33].mxu1  ;;  %2324 = vadd.xlane.f32.xlu0 %v2323_v35  ;;  %v1166_v1 = vpop.f32.mrb[34].mxu0 }
 0x12b   :  { %v2015_v2 = vmax.f32 %v1237_v0, 0.0  ;;  %v1239_v3 = vpop.f32.mrb[34].mxu1  ;;  %2354 = vadd.xlane.f32.xlu1 %v2353_v57  ;;  %v2044_v4 = vmax.f32 %v1166_v1, 0.0  ;;  %v1168_v5 = vpop.f32.mrb[35].mxu0 }
 0x12c   :  { %v2046_v6 = vmax.f32 %v1239_v3, 0.0  ;;  %v2045_v9 = vmax.f32 %v1168_v5, 0.0  ;;  %v1241_v10 = vpop.f32.mrb[35].mxu1  ;;  %v2356_v39 = vadd.f32 %v2013_v63, %v2012_v59 }
 0x12d   :  { %v2047_v12 = vmax.f32 %v1241_v10, 0.0  ;;  %v2380_v13 = vadd.f32 %v2015_v2, %v2014_v62 }
 0x12e   :  { %2348 = vadd.xlane.f32.xlu0 %v2347_v36  ;;  %v2359_v11 = vadd.f32 %v2045_v9, %v2044_v4 }
 0x12f   :  { %2357 = vadd.xlane.f32.xlu1 %v2356_v39  ;;  %v2383_v14 = vadd.f32 %v2047_v12, %v2046_v6 }
 0x130   :  { %v1172_v15 = vpop.f32.mrb[36].mxu0 }
 0x131   :  { %v2076_v16 = vmax.f32 %v1172_v15, 0.0  ;;  %v1245_v17 = vpop.f32.mrb[36].mxu1  ;;  %v1174_v18 = vpop.f32.mrb[37].mxu0 }
 0x132   :  { %v2078_v19 = vmax.f32 %v1245_v17, 0.0  ;;  %v2077_v20 = vmax.f32 %v1174_v18, 0.0  ;;  %v1247_v21 = vpop.f32.mrb[37].mxu1  ;;  %2327 = vadd.xlane.f32.xlu0 %v2326_v52  ;;  %v1176_v22 = vpop.f32.mrb[38].mxu0 }
 0x133   :  { %v2079_v23 = vmax.f32 %v1247_v21, 0.0  ;;  %v1249_v24 = vpop.f32.mrb[38].mxu1  ;;  %2381 = vadd.xlane.f32.xlu1 %v2380_v13  ;;  %v2108_v25 = vmax.f32 %v1176_v22, 0.0  ;;  %v1178_v26 = vpop.f32.mrb[39].mxu0 }
 0x134   :  { %v2110_v27 = vmax.f32 %v1249_v24, 0.0  ;;  %v2109_v28 = vmax.f32 %v1178_v26, 0.0  ;;  %v1251_v29 = vpop.f32.mrb[39].mxu1  ;;  %v2362_v30 = vadd.f32 %v2077_v20, %v2076_v16 }
 0x135   :  { %v2111_v55 = vmax.f32 %v1251_v29, 0.0  ;;  %v2386_v31 = vadd.f32 %v2079_v23, %v2078_v19 }
 0x136   :  { %2330 = vadd.xlane.f32.xlu0 %v2329_v56  ;;  %v2365_v32 = vadd.f32 %v2109_v28, %v2108_v25 }
 0x137   :  { %2360 = vadd.xlane.f32.xlu1 %v2359_v11  ;;  %v2389_v33 = vadd.f32 %v2111_v55, %v2110_v27 }
 0x138   :  { %v1182_v34 = vpop.f32.mrb[40].mxu0 }
 0x139   :  { %v2140_v35 = vmax.f32 %v1182_v34, 0.0  ;;  %v1255_v36 = vpop.f32.mrb[40].mxu1  ;;  %v1184_v37 = vpop.f32.mrb[41].mxu0 }
 0x13a   :  { %v2142_v38 = vmax.f32 %v1255_v36, 0.0  ;;  %v2141_v40 = vmax.f32 %v1184_v37, 0.0  ;;  %v1257_v41 = vpop.f32.mrb[41].mxu1  ;;  %2384 = vadd.xlane.f32.xlu0 %v2383_v14  ;;  %v1186_v42 = vpop.f32.mrb[42].mxu0 }
 0x13b   :  { %v2143_v43 = vmax.f32 %v1257_v41, 0.0  ;;  %v1259_v44 = vpop.f32.mrb[42].mxu1  ;;  %2363 = vadd.xlane.f32.xlu1 %v2362_v30  ;;  %v2172_v45 = vmax.f32 %v1186_v42, 0.0  ;;  %v1188_v46 = vpop.f32.mrb[43].mxu0 }
 0x13c   :  { %v2174_v47 = vmax.f32 %v1259_v44, 0.0  ;;  %v2173_v48 = vmax.f32 %v1188_v46, 0.0  ;;  %v1261_v49 = vpop.f32.mrb[43].mxu1  ;;  %v2368_v50 = vadd.f32 %v2141_v40, %v2140_v35 }
 0x13d   :  { %v2175_v51 = vmax.f32 %v1261_v49, 0.0  ;;  %v2392_v7 = vadd.f32 %v2143_v43, %v2142_v38 }
 0x13e   :  { %2390 = vadd.xlane.f32.xlu0 %v2389_v33  ;;  %v2371_v52 = vadd.f32 %v2173_v48, %v2172_v45 }
 0x13f   :  { %2387 = vadd.xlane.f32.xlu1 %v2386_v31  ;;  %v2395_v53 = vadd.f32 %v2175_v51, %v2174_v47 }
 0x140   :  { %v1192_v54 = vpop.f32.mrb[44].mxu0 }
 0x141   :  { %v2204_v56 = vmax.f32 %v1192_v54, 0.0  ;;  %v1265_v57 = vpop.f32.mrb[44].mxu1  ;;  %v1194_v58 = vpop.f32.mrb[45].mxu0 }
 0x142   :  { %v2206_v59 = vmax.f32 %v1265_v57, 0.0  ;;  %v2205_v60 = vmax.f32 %v1194_v58, 0.0  ;;  %v1267_v61 = vpop.f32.mrb[45].mxu1  ;;  %2396 = vadd.xlane.f32.xlu0 %v2395_v53  ;;  %v1196_v62 = vpop.f32.mrb[46].mxu0 }
 0x143   :  { %v2207_v63 = vmax.f32 %v1267_v61, 0.0  ;;  %v1269_v0 = vpop.f32.mrb[46].mxu1  ;;  %2366 = vadd.xlane.f32.xlu1 %v2365_v32  ;;  %v2236_v1 = vmax.f32 %v1196_v62, 0.0  ;;  %v1198_v2 = vpop.f32.mrb[47].mxu0 }
 0x144   :  { %v2238_v3 = vmax.f32 %v1269_v0, 0.0  ;;  %v2237_v4 = vmax.f32 %v1198_v2, 0.0  ;;  %v1271_v5 = vpop.f32.mrb[47].mxu1  ;;  %v2374_v6 = vadd.f32 %v2205_v60, %v2204_v56 }
 0x145   :  { %v2239_v9 = vmax.f32 %v1271_v5, 0.0  ;;  %v2398_v10 = vadd.f32 %v2207_v63, %v2206_v59 }
 0x146   :  { %v2377_v39 = vadd.f32 %v2237_v4, %v2236_v1 }
 0x147   :  { %2399 = vadd.xlane.f32.xlu0 %v2398_v10  ;;  %2369 = vadd.xlane.f32.xlu1 %v2368_v50  ;;  %v2401_v12 = vadd.f32 %v2239_v9, %v2238_v3 }
 0x148   :  { %v1308_v13 = vpop.f32.mrb[48].mxu0 }
 0x149   :  { %v2016_v11 = vmax.f32 %v1308_v13, 0.0  ;;  %v1381_v14 = vpop.f32.mrb[48].mxu1  ;;  %v1310_v15 = vpop.f32.mrb[49].mxu0 }
 0x14a   :  { %v2018_v16 = vmax.f32 %v1381_v14, 0.0  ;;  %v2017_v17 = vmax.f32 %v1310_v15, 0.0  ;;  %v1383_v18 = vpop.f32.mrb[49].mxu1  ;;  %v1312_v19 = vpop.f32.mrb[50].mxu0 }
 0x14b   :  { %v2019_v20 = vmax.f32 %v1383_v18, 0.0  ;;  %v1385_v21 = vpop.f32.mrb[50].mxu1  ;;  %2393 = vadd.xlane.f32.xlu1 %v2392_v7  ;;  %2378 = vadd.xlane.f32.xlu0 %v2377_v39  ;;  %v2048_v22 = vmax.f32 %v1312_v19, 0.0  ;;  %v1314_v23 = vpop.f32.mrb[51].mxu0 }
 0x14c   :  { %v2050_v24 = vmax.f32 %v1385_v21, 0.0  ;;  %v2049_v25 = vmax.f32 %v1314_v23, 0.0  ;;  %v1387_v26 = vpop.f32.mrb[51].mxu1  ;;  %v2404_v27 = vadd.f32 %v2017_v17, %v2016_v11 }
 0x14d   :  { %v2051_v28 = vmax.f32 %v1387_v26, 0.0  ;;  %v2428_v29 = vadd.f32 %v2019_v20, %v2018_v16 }
 0x14e   :  { %v2407_v30 = vadd.f32 %v2049_v25, %v2048_v22 }
 0x14f   :  { %2372 = vadd.xlane.f32.xlu1 %v2371_v52  ;;  %2402 = vadd.xlane.f32.xlu0 %v2401_v12  ;;  %v2431_v55 = vadd.f32 %v2051_v28, %v2050_v24 }
 0x150   :  { %v1318_v31 = vpop.f32.mrb[52].mxu0 }
 0x151   :  { %v2080_v32 = vmax.f32 %v1318_v31, 0.0  ;;  %v1391_v33 = vpop.f32.mrb[52].mxu1  ;;  %v1320_v34 = vpop.f32.mrb[53].mxu0 }
 0x152   :  { %v2082_v35 = vmax.f32 %v1391_v33, 0.0  ;;  %v2081_v36 = vmax.f32 %v1320_v34, 0.0  ;;  %v1393_v37 = vpop.f32.mrb[53].mxu1  ;;  %v1322_v38 = vpop.f32.mrb[54].mxu0 }
 0x153   :  { %v2083_v40 = vmax.f32 %v1393_v37, 0.0  ;;  %v1395_v41 = vpop.f32.mrb[54].mxu1  ;;  %2375 = vadd.xlane.f32.xlu1 %v2374_v6  ;;  %2405 = vadd.xlane.f32.xlu0 %v2404_v27  ;;  %v2112_v42 = vmax.f32 %v1322_v38, 0.0  ;;  %v1324_v43 = vpop.f32.mrb[55].mxu0 }
 0x154   :  { %v2114_v44 = vmax.f32 %v1395_v41, 0.0  ;;  %v2113_v45 = vmax.f32 %v1324_v43, 0.0  ;;  %v1397_v46 = vpop.f32.mrb[55].mxu1  ;;  %v2410_v47 = vadd.f32 %v2081_v36, %v2080_v32 }
 0x155   :  { %v2115_v48 = vmax.f32 %v1397_v46, 0.0  ;;  %v2434_v49 = vadd.f32 %v2083_v40, %v2082_v35 }
 0x156   :  { %v2413_v50 = vadd.f32 %v2113_v45, %v2112_v42 }
 0x157   :  { %2429 = vadd.xlane.f32.xlu1 %v2428_v29  ;;  %2408 = vadd.xlane.f32.xlu0 %v2407_v30  ;;  %v2437_v51 = vadd.f32 %v2115_v48, %v2114_v44 }
 0x158   :  { %v1328_v7 = vpop.f32.mrb[56].mxu0 }
 0x159   :  { %v2144_v52 = vmax.f32 %v1328_v7, 0.0  ;;  %v1401_v53 = vpop.f32.mrb[56].mxu1  ;;  %v1330_v54 = vpop.f32.mrb[57].mxu0 }
 0x15a   :  { %v2146_v56 = vmax.f32 %v1401_v53, 0.0  ;;  %v2145_v57 = vmax.f32 %v1330_v54, 0.0  ;;  %v1403_v58 = vpop.f32.mrb[57].mxu1  ;;  %v1332_v59 = vpop.f32.mrb[58].mxu0 }
 0x15b   :  { %v2147_v60 = vmax.f32 %v1403_v58, 0.0  ;;  %v1405_v61 = vpop.f32.mrb[58].mxu1  ;;  %2435 = vadd.xlane.f32.xlu1 %v2434_v49  ;;  %2432 = vadd.xlane.f32.xlu0 %v2431_v55  ;;  %v2176_v62 = vmax.f32 %v1332_v59, 0.0  ;;  %v1334_v63 = vpop.f32.mrb[59].mxu0 }
 0x15c   :  { %v2178_v0 = vmax.f32 %v1405_v61, 0.0  ;;  %v2177_v1 = vmax.f32 %v1334_v63, 0.0  ;;  %v1407_v2 = vpop.f32.mrb[59].mxu1  ;;  %v2416_v3 = vadd.f32 %v2145_v57, %v2144_v52 }
 0x15d   :  { %v2179_v4 = vmax.f32 %v1407_v2, 0.0  ;;  %v2440_v5 = vadd.f32 %v2147_v60, %v2146_v56 }
 0x15e   :  { %v2419_v6 = vadd.f32 %v2177_v1, %v2176_v62 }
 0x15f   :  { %2441 = vadd.xlane.f32.xlu1 %v2440_v5  ;;  %2411 = vadd.xlane.f32.xlu0 %v2410_v47  ;;  %v2443_v9 = vadd.f32 %v2179_v4, %v2178_v0 }
 0x160   :  { %v1338_v10 = vpop.f32.mrb[60].mxu0 }
 0x161   :  { %v2208_v39 = vmax.f32 %v1338_v10, 0.0  ;;  %v1411_v12 = vpop.f32.mrb[60].mxu1  ;;  %v1340_v13 = vpop.f32.mrb[61].mxu0 }
 0x162   :  { %v2210_v11 = vmax.f32 %v1411_v12, 0.0  ;;  %v2209_v14 = vmax.f32 %v1340_v13, 0.0  ;;  %v1413_v15 = vpop.f32.mrb[61].mxu1  ;;  %v1342_v16 = vpop.f32.mrb[62].mxu0 }
 0x163   :  { %v2211_v17 = vmax.f32 %v1413_v15, 0.0  ;;  %v1415_v18 = vpop.f32.mrb[62].mxu1  ;;  %2444 = vadd.xlane.f32.xlu1 %v2443_v9  ;;  %2414 = vadd.xlane.f32.xlu0 %v2413_v50  ;;  %v2240_v19 = vmax.f32 %v1342_v16, 0.0  ;;  %v1344_v20 = vpop.f32.mrb[63].mxu0 }
 0x164   :  { %v2242_v21 = vmax.f32 %v1415_v18, 0.0  ;;  %v2241_v22 = vmax.f32 %v1344_v20, 0.0  ;;  %v1417_v23 = vpop.f32.mrb[63].mxu1  ;;  %v2422_v24 = vadd.f32 %v2209_v14, %v2208_v39 }
 0x165   :  { %v2243_v25 = vmax.f32 %v1417_v23, 0.0  ;;  %v2446_v26 = vadd.f32 %v2211_v17, %v2210_v11 }
 0x166   :  { %v2425_v27 = vadd.f32 %v2241_v22, %v2240_v19 }
 0x167   :  { %2438 = vadd.xlane.f32.xlu0 %v2437_v51  ;;  %2423 = vadd.xlane.f32.xlu1 %v2422_v24  ;;  %v2449_v28 = vadd.f32 %v2243_v25, %v2242_v21 }
 0x168   :  { %v1454_v29 = vpop.f32.mrb[64].mxu0 }
 0x169   :  { %v2020_v30 = vmax.f32 %v1454_v29, 0.0  ;;  %v1527_v55 = vpop.f32.mrb[64].mxu1  ;;  %v1456_v31 = vpop.f32.mrb[65].mxu0 }
 0x16a   :  { %v2022_v32 = vmax.f32 %v1527_v55, 0.0  ;;  %v2021_v33 = vmax.f32 %v1456_v31, 0.0  ;;  %v1529_v34 = vpop.f32.mrb[65].mxu1  ;;  %v1458_v35 = vpop.f32.mrb[66].mxu0 }
 0x16b   :  { %v2023_v36 = vmax.f32 %v1529_v34, 0.0  ;;  %v1531_v37 = vpop.f32.mrb[66].mxu1  ;;  %2417 = vadd.xlane.f32.xlu0 %v2416_v3  ;;  %2447 = vadd.xlane.f32.xlu1 %v2446_v26  ;;  %v2052_v38 = vmax.f32 %v1458_v35, 0.0  ;;  %v1460_v40 = vpop.f32.mrb[67].mxu0 }
 0x16c   :  { %v2054_v41 = vmax.f32 %v1531_v37, 0.0  ;;  %v2053_v42 = vmax.f32 %v1460_v40, 0.0  ;;  %v1533_v43 = vpop.f32.mrb[67].mxu1  ;;  %v2452_v44 = vadd.f32 %v2021_v33, %v2020_v30 }
 0x16d   :  { %v2055_v45 = vmax.f32 %v1533_v43, 0.0  ;;  %v2476_v46 = vadd.f32 %v2023_v36, %v2022_v32 }
 0x16e   :  { %v2455_v47 = vadd.f32 %v2053_v42, %v2052_v38 }
 0x16f   :  { %2420 = vadd.xlane.f32.xlu0 %v2419_v6  ;;  %2450 = vadd.xlane.f32.xlu1 %v2449_v28  ;;  %v2479_v48 = vadd.f32 %v2055_v45, %v2054_v41 }
 0x170   :  { %v1464_v49 = vpop.f32.mrb[68].mxu0 }
 0x171   :  { %v2084_v50 = vmax.f32 %v1464_v49, 0.0  ;;  %v1537_v51 = vpop.f32.mrb[68].mxu1  ;;  %v1466_v7 = vpop.f32.mrb[69].mxu0 }
 0x172   :  { %v2086_v52 = vmax.f32 %v1537_v51, 0.0  ;;  %v2085_v53 = vmax.f32 %v1466_v7, 0.0  ;;  %v1539_v54 = vpop.f32.mrb[69].mxu1  ;;  %v1468_v56 = vpop.f32.mrb[70].mxu0 }
 0x173   :  { %v2087_v57 = vmax.f32 %v1539_v54, 0.0  ;;  %v1541_v58 = vpop.f32.mrb[70].mxu1  ;;  %2426 = vadd.xlane.f32.xlu0 %v2425_v27  ;;  %2453 = vadd.xlane.f32.xlu1 %v2452_v44  ;;  %v2116_v59 = vmax.f32 %v1468_v56, 0.0  ;;  %v1470_v60 = vpop.f32.mrb[71].mxu0 }
 0x174   :  { %v2118_v61 = vmax.f32 %v1541_v58, 0.0  ;;  %v2117_v62 = vmax.f32 %v1470_v60, 0.0  ;;  %v1543_v63 = vpop.f32.mrb[71].mxu1  ;;  %v2458_v0 = vadd.f32 %v2085_v53, %v2084_v50 }
 0x175   :  { %v2119_v1 = vmax.f32 %v1543_v63, 0.0  ;;  %v2482_v2 = vadd.f32 %v2087_v57, %v2086_v52 }
 0x176   :  { %v2461_v3 = vadd.f32 %v2117_v62, %v2116_v59 }
 0x177   :  { %2480 = vadd.xlane.f32.xlu0 %v2479_v48  ;;  %2477 = vadd.xlane.f32.xlu1 %v2476_v46  ;;  %v2485_v4 = vadd.f32 %v2119_v1, %v2118_v61 }
 0x178   :  { %v1474_v5 = vpop.f32.mrb[72].mxu0 }
 0x179   :  { %v2148_v6 = vmax.f32 %v1474_v5, 0.0  ;;  %v1547_v9 = vpop.f32.mrb[72].mxu1  ;;  %v1476_v10 = vpop.f32.mrb[73].mxu0 }
 0x17a   :  { %v2150_v39 = vmax.f32 %v1547_v9, 0.0  ;;  %v2149_v12 = vmax.f32 %v1476_v10, 0.0  ;;  %v1549_v13 = vpop.f32.mrb[73].mxu1  ;;  %v1478_v11 = vpop.f32.mrb[74].mxu0 }
 0x17b   :  { %v2151_v14 = vmax.f32 %v1549_v13, 0.0  ;;  %v1551_v15 = vpop.f32.mrb[74].mxu1  ;;  %2486 = vadd.xlane.f32.xlu0 %v2485_v4  ;;  %2456 = vadd.xlane.f32.xlu1 %v2455_v47  ;;  %v2180_v16 = vmax.f32 %v1478_v11, 0.0  ;;  %v2262_v17 = vpop.xlane.xlu0 %2261 }
 0x17c   :  { %v2182_v18 = vmax.f32 %v1551_v15, 0.0  ;;  %v1553_v19 = vpop.f32.mrb[75].mxu1  ;;  %v1480_v20 = vpop.f32.mrb[75].mxu0  ;;  %v2464_v21 = vadd.f32 %v2149_v12, %v2148_v6 }
 0x17d   :  { %v2183_v22 = vmax.f32 %v1553_v19, 0.0  ;;  %v2181_v23 = vmax.f32 %v1480_v20, 0.0  ;;  %v2488_v24 = vadd.f32 %v2151_v14, %v2150_v39  ;;  %v2265_v28 = vpop.xlane.xlu1 %2264 }
 0x17f   :  { %2489 = vadd.xlane.f32.xlu0 %v2488_v24  ;;  %2459 = vadd.xlane.f32.xlu1 %v2458_v0  ;;  %v2286_v25 = vpop.xlane.xlu0 %2285  ;;  %v2467_v26 = vadd.f32 %v2181_v23, %v2180_v16  ;;  %v2491_v27 = vadd.f32 %v2183_v22, %v2182_v18 }
 0x180   :  { %v4080_v29 = vsel %vm2644_vm2, %v2262_v17, %v2286_v25  ;;  %v1484_v30 = vpop.f32.mrb[76].mxu0 }
 0x181   :  { %v2212_v55 = vmax.f32 %v1484_v30, 0.0  ;;  %v1557_v31 = vpop.f32.mrb[76].mxu1  ;;  %v1486_v32 = vpop.f32.mrb[77].mxu0 }
 0x182   :  { %v2214_v33 = vmax.f32 %v1557_v31, 0.0  ;;  %v2213_v34 = vmax.f32 %v1486_v32, 0.0  ;;  %v1559_v35 = vpop.f32.mrb[77].mxu1  ;;  %v1488_v36 = vpop.f32.mrb[78].mxu0 }
 0x183   :  { %v2215_v37 = vmax.f32 %v1559_v35, 0.0  ;;  %v1561_v38 = vpop.f32.mrb[78].mxu1  ;;  %2483 = vadd.xlane.f32.xlu1 %v2482_v2  ;;  %2468 = vadd.xlane.f32.xlu0 %v2467_v26  ;;  %v2289_v40 = vpop.xlane.xlu0 %2288  ;;  %v2244_v42 = vmax.f32 %v1488_v36, 0.0 }
 0x184   :  { %v2246_v41 = vmax.f32 %v1561_v38, 0.0  ;;  %v1563_v43 = vpop.f32.mrb[79].mxu1  ;;  %v4083_v44 = vsel %vm2644_vm2, %v2265_v28, %v2289_v40  ;;  %v2292_v45 = vpop.xlane.xlu1 %2291  ;;  %v2470_v46 = vadd.f32 %v2213_v34, %v2212_v55 }
 0x185   :  { %v2247_v47 = vmax.f32 %v1563_v43, 0.0  ;;  %v1490_v48 = vpop.f32.mrb[79].mxu0  ;;  %v2494_v49 = vadd.f32 %v2215_v37, %v2214_v33 }
 0x186   :  { %v2245_v50 = vmax.f32 %v1490_v48, 0.0 }
 0x187   :  { %2462 = vadd.xlane.f32.xlu1 %v2461_v3  ;;  %2492 = vadd.xlane.f32.xlu0 %v2491_v27  ;;  %v2268_v51 = vpop.xlane.xlu0 %2267  ;;  %v2497_v7 = vadd.f32 %v2247_v47, %v2246_v41 }
 0x188   :  { %v4086_v52 = vsel %vm2644_vm2, %v2268_v51, %v2292_v45  ;;  %v2271_v53 = vpop.xlane.xlu1 %2270  ;;  %v1600_v54 = vpop.f32.mrb[80].mxu0  ;;  %v2473_v56 = vadd.f32 %v2245_v50, %v2244_v42 }
 0x189   :  { %v2024_v57 = vmax.f32 %v1600_v54, 0.0  ;;  %v1673_v58 = vpop.f32.mrb[80].mxu1  ;;  %v1602_v59 = vpop.f32.mrb[81].mxu0 }
 0x18a   :  { %v2026_v60 = vmax.f32 %v1673_v58, 0.0  ;;  %v2025_v61 = vmax.f32 %v1602_v59, 0.0  ;;  %v1675_v62 = vpop.f32.mrb[81].mxu1  ;;  %v1604_v63 = vpop.f32.mrb[82].mxu0 }
 0x18b   :  { %v2027_v0 = vmax.f32 %v1675_v62, 0.0  ;;  %v1677_v1 = vpop.f32.mrb[82].mxu1  ;;  %2465 = vadd.xlane.f32.xlu1 %v2464_v21  ;;  %2495 = vadd.xlane.f32.xlu0 %v2494_v49  ;;  %v2295_v2 = vpop.xlane.xlu0 %2294  ;;  %v2056_v4 = vmax.f32 %v1604_v63, 0.0 }
 0x18c   :  { %v2058_v3 = vmax.f32 %v1677_v1, 0.0  ;;  %v1679_v5 = vpop.f32.mrb[83].mxu1  ;;  %v4089_v6 = vsel %vm2644_vm2, %v2271_v53, %v2295_v2  ;;  %v2298_v9 = vpop.xlane.xlu1 %2297  ;;  %v2500_v10 = vadd.f32 %v2025_v61, %v2024_v57 }
 0x18d   :  { %v2059_v39 = vmax.f32 %v1679_v5, 0.0  ;;  %v1606_v12 = vpop.f32.mrb[83].mxu0  ;;  %v2524_v13 = vadd.f32 %v2027_v0, %v2026_v60 }
 0x18e   :  { %v2057_v11 = vmax.f32 %v1606_v12, 0.0 }
 0x18f   :  { %2471 = vadd.xlane.f32.xlu1 %v2470_v46  ;;  %2474 = vadd.xlane.f32.xlu0 %v2473_v56  ;;  %v2274_v14 = vpop.xlane.xlu0 %2273  ;;  %v2527_v15 = vadd.f32 %v2059_v39, %v2058_v3 }
 0x190   :  { %v4092_v16 = vsel %vm2644_vm2, %v2274_v14, %v2298_v9  ;;  %v2277_v17 = vpop.xlane.xlu1 %2276  ;;  %v1610_v18 = vpop.f32.mrb[84].mxu0  ;;  %v2503_v19 = vadd.f32 %v2057_v11, %v2056_v4 }
 0x191   :  { %v2088_v20 = vmax.f32 %v1610_v18, 0.0  ;;  %v1683_v21 = vpop.f32.mrb[84].mxu1  ;;  %v1612_v22 = vpop.f32.mrb[85].mxu0 }
 0x192   :  { %v2090_v23 = vmax.f32 %v1683_v21, 0.0  ;;  %v2089_v24 = vmax.f32 %v1612_v22, 0.0  ;;  %v1685_v25 = vpop.f32.mrb[85].mxu1  ;;  %v1614_v26 = vpop.f32.mrb[86].mxu0 }
 0x193   :  { %v2091_v27 = vmax.f32 %v1685_v25, 0.0  ;;  %v1687_v28 = vpop.f32.mrb[86].mxu1  ;;  %2525 = vadd.xlane.f32.xlu1 %v2524_v13  ;;  %2498 = vadd.xlane.f32.xlu0 %v2497_v7  ;;  %v2301_v30 = vpop.xlane.xlu0 %2300  ;;  %v2120_v31 = vmax.f32 %v1614_v26, 0.0 }
 0x194   :  { %v2122_v55 = vmax.f32 %v1687_v28, 0.0  ;;  %v1689_v32 = vpop.f32.mrb[87].mxu1  ;;  %v4095_v33 = vsel %vm2644_vm2, %v2277_v17, %v2301_v30  ;;  %v2304_v34 = vpop.xlane.xlu1 %2303  ;;  %v2506_v35 = vadd.f32 %v2089_v24, %v2088_v20 }
 0x195   :  { %v2123_v36 = vmax.f32 %v1689_v32, 0.0  ;;  %v1616_v37 = vpop.f32.mrb[87].mxu0  ;;  %v2530_v38 = vadd.f32 %v2091_v27, %v2090_v23 }
 0x196   :  { %v2121_v40 = vmax.f32 %v1616_v37, 0.0 }
 0x197   :  { %2531 = vadd.xlane.f32.xlu1 %v2530_v38  ;;  %2501 = vadd.xlane.f32.xlu0 %v2500_v10  ;;  %v2280_v41 = vpop.xlane.xlu0 %2279  ;;  %v2533_v42 = vadd.f32 %v2123_v36, %v2122_v55 }
 0x198   :  { %v4098_v43 = vsel %vm2644_vm2, %v2280_v41, %v2304_v34  ;;  %v2283_v45 = vpop.xlane.xlu1 %2282  ;;  %v1620_v46 = vpop.f32.mrb[88].mxu0  ;;  %v2509_v47 = vadd.f32 %v2121_v40, %v2120_v31 }
 0x199   :  { %v2152_v48 = vmax.f32 %v1620_v46, 0.0  ;;  %v1693_v49 = vpop.f32.mrb[88].mxu1  ;;  %v1622_v50 = vpop.f32.mrb[89].mxu0 }
 0x19a   :  { %v2154_v51 = vmax.f32 %v1693_v49, 0.0  ;;  %v2153_v7 = vmax.f32 %v1622_v50, 0.0  ;;  %v1695_v53 = vpop.f32.mrb[89].mxu1  ;;  %v1624_v54 = vpop.f32.mrb[90].mxu0 }
 0x19b   :  { %v2155_v56 = vmax.f32 %v1695_v53, 0.0  ;;  %v1697_v57 = vpop.f32.mrb[90].mxu1  ;;  %2534 = vadd.xlane.f32.xlu1 %v2533_v42  ;;  %2504 = vadd.xlane.f32.xlu0 %v2503_v19  ;;  %v2307_v58 = vpop.xlane.xlu0 %2306  ;;  %v2184_v60 = vmax.f32 %v1624_v54, 0.0 }
 0x19c   :  { %v2186_v59 = vmax.f32 %v1697_v57, 0.0  ;;  %v1699_v61 = vpop.f32.mrb[91].mxu1  ;;  %v4101_v62 = vsel %vm2644_vm2, %v2283_v45, %v2307_v58  ;;  %v2310_v63 = vpop.xlane.xlu1 %2309  ;;  %v2512_v0 = vadd.f32 %v2153_v7, %v2152_v48  ;;  %vm3014_vm2 = vcmask 130048  }
 0x19d   :  { %v2187_v1 = vmax.f32 %v1699_v61, 0.0  ;;  %v2654_v2 = vsel %vm2653_vm3, %v4080_v29, %v2310_v63  ;;  %v1626_v3 = vpop.f32.mrb[91].mxu0  ;;  %v2536_v4 = vadd.f32 %v2155_v56, %v2154_v51 }
 0x19e   :  { %v2185_v5 = vmax.f32 %v1626_v3, 0.0 }
 0x19f   :  { %2528 = vadd.xlane.f32.xlu0 %v2527_v15  ;;  %2513 = vadd.xlane.f32.xlu1 %v2512_v0  ;;  %v2313_v9 = vpop.xlane.xlu0 %2312  ;;  %v2539_v10 = vadd.f32 %v2187_v1, %v2186_v59 }
 0x1a0   :  { %v2334_v39 = vpop.xlane.xlu1 %2333  ;;  %v2655_v12 = vsel %vm2653_vm3, %v4083_v44, %v2313_v9  ;;  %v1630_v13 = vpop.f32.mrb[92].mxu0  ;;  %v2515_v11 = vadd.f32 %v2185_v5, %v2184_v60 }
 0x1a1   :  { %v4108_v14 = vsel %vm2662_vm4, %v2654_v2, %v2334_v39  ;;  %v2216_v17 = vmax.f32 %v1630_v13, 0.0  ;;  %v1703_v18 = vpop.f32.mrb[92].mxu1  ;;  %v1632_v29 = vpop.f32.mrb[93].mxu0 }
 0x1a2   :  { %v2218_v19 = vmax.f32 %v1703_v18, 0.0  ;;  %v2217_v20 = vmax.f32 %v1632_v29, 0.0  ;;  %v1705_v21 = vpop.f32.mrb[93].mxu1  ;;  %v1634_v22 = vpop.f32.mrb[94].mxu0 }
 0x1a3   :  { %v2219_v15 = vmax.f32 %v1705_v21, 0.0  ;;  %v1707_v23 = vpop.f32.mrb[94].mxu1  ;;  %2507 = vadd.xlane.f32.xlu0 %v2506_v35  ;;  %2537 = vadd.xlane.f32.xlu1 %v2536_v4  ;;  %v2337_v24 = vpop.xlane.xlu0 %2336  ;;  %v2248_v26 = vmax.f32 %v1634_v22, 0.0 }
 0x1a4   :  { %v2250_v25 = vmax.f32 %v1707_v23, 0.0  ;;  %v1709_v44 = vpop.f32.mrb[95].mxu1  ;;  %v4111_v27 = vsel %vm2662_vm4, %v2655_v12, %v2337_v24  ;;  %v2518_v28 = vadd.f32 %v2217_v20, %v2216_v17  ;;  %v1636_v55 = vpop.f32.mrb[95].mxu0 }
 0x1a5   :  { %v2251_v30 = vmax.f32 %v1709_v44, 0.0  ;;  %v2542_v31 = vadd.f32 %v2219_v15, %v2218_v19  ;;  %v2249_v32 = vmax.f32 %v1636_v55, 0.0  ;;  %v2340_v37 = vpop.xlane.xlu1 %2339 }
 0x1a7   :  { %2510 = vadd.xlane.f32.xlu0 %v2509_v47  ;;  %2540 = vadd.xlane.f32.xlu1 %v2539_v10  ;;  %v2316_v34 = vpop.xlane.xlu0 %2315  ;;  %v2545_v36 = vadd.f32 %v2251_v30, %v2250_v25  ;;  %v2521_v40 = vadd.f32 %v2249_v32, %v2248_v26 }
 0x1a8   :  { %v2656_v35 = vsel %vm2653_vm3, %v4086_v52, %v2316_v34  ;;  %v1746_v38 = vpop.f32.mrb[96].mxu0 }
 0x1a9   :  { %v2028_v41 = vmax.f32 %v1746_v38, 0.0  ;;  %v1819_v42 = vpop.f32.mrb[96].mxu1  ;;  %v1748_v45 = vpop.f32.mrb[97].mxu0  ;;  %v4116_v46 = vsel %vm2662_vm4, %v2656_v35, %v2340_v37 }
 0x1aa   :  { %v2030_v48 = vmax.f32 %v1819_v42, 0.0  ;;  %v2029_v49 = vmax.f32 %v1748_v45, 0.0  ;;  %v1821_v50 = vpop.f32.mrb[97].mxu1  ;;  %v1750_v51 = vpop.f32.mrb[98].mxu0 }
 0x1ab   :  { %v2031_v47 = vmax.f32 %v1821_v50, 0.0  ;;  %v1823_v7 = vpop.f32.mrb[98].mxu1  ;;  %2516 = vadd.xlane.f32.xlu0 %v2515_v11  ;;  %2519 = vadd.xlane.f32.xlu1 %v2518_v28  ;;  %v2319_v53 = vpop.xlane.xlu0 %2318  ;;  %v2060_v56 = vmax.f32 %v1750_v51, 0.0 }
 0x1ac   :  { %v2062_v54 = vmax.f32 %v1823_v7, 0.0  ;;  %v1825_v52 = vpop.f32.mrb[99].mxu1  ;;  %v2657_v57 = vsel %vm2653_vm3, %v4089_v6, %v2319_v53  ;;  %v2548_v58 = vadd.f32 %v2029_v49, %v2028_v41  ;;  %v1752_v60 = vpop.f32.mrb[99].mxu0 }
 0x1ad   :  { %v2063_v59 = vmax.f32 %v1825_v52, 0.0  ;;  %v2572_v61 = vadd.f32 %v2031_v47, %v2030_v48  ;;  %v2061_v63 = vmax.f32 %v1752_v60, 0.0  ;;  %v2346_v2 = vpop.xlane.xlu1 %2345 }
 0x1af   :  { %v2575_v0 = vadd.f32 %v2063_v59, %v2062_v54  ;;  %2543 = vadd.xlane.f32.xlu1 %v2542_v31  ;;  %2522 = vadd.xlane.f32.xlu0 %v2521_v40  ;;  %v2343_v1 = vpop.xlane.xlu0 %2342  ;;  %v2551_v3 = vadd.f32 %v2061_v63, %v2060_v56 }
 0x1b0   :  { %v4121_v4 = vsel %vm2662_vm4, %v2657_v57, %v2343_v1  ;;  %v1756_v5 = vpop.f32.mrb[100].mxu0 }
 0x1b1   :  { %v2092_v9 = vmax.f32 %v1756_v5, 0.0  ;;  %v1829_v10 = vpop.f32.mrb[100].mxu1  ;;  %v1758_v39 = vpop.f32.mrb[101].mxu0 }
 0x1b2   :  { %v2094_v12 = vmax.f32 %v1829_v10, 0.0  ;;  %v2093_v6 = vmax.f32 %v1758_v39, 0.0  ;;  %v1831_v13 = vpop.f32.mrb[101].mxu1  ;;  %v1760_v11 = vpop.f32.mrb[102].mxu0 }
 0x1b3   :  { %v2095_v17 = vmax.f32 %v1831_v13, 0.0  ;;  %v1833_v18 = vpop.f32.mrb[102].mxu1  ;;  %2546 = vadd.xlane.f32.xlu1 %v2545_v36  ;;  %2576 = vadd.xlane.f32.xlu0 %v2575_v0  ;;  %v2322_v29 = vpop.xlane.xlu0 %2321  ;;  %v2124_v21 = vmax.f32 %v1760_v11, 0.0 }
 0x1b4   :  { %v2554_v19 = vadd.f32 %v2093_v6, %v2092_v9  ;;  %v2126_v20 = vmax.f32 %v1833_v18, 0.0  ;;  %v1835_v22 = vpop.f32.mrb[103].mxu1  ;;  %v2352_v15 = vpop.xlane.xlu1 %2351  ;;  %v2658_v23 = vsel %vm2653_vm3, %v4092_v16, %v2322_v29 }
 0x1b5   :  { %v2578_v24 = vadd.f32 %v2095_v17, %v2094_v12  ;;  %v2127_v25 = vmax.f32 %v1835_v22, 0.0  ;;  %v1762_v26 = vpop.f32.mrb[103].mxu0  ;;  %v4126_v44 = vsel %vm2662_vm4, %v2658_v23, %v2346_v2 }
 0x1b6   :  { %v2125_v28 = vmax.f32 %v1762_v26, 0.0 }
 0x1b7   :  { %v2581_v30 = vadd.f32 %v2127_v25, %v2126_v20  ;;  %2579 = vadd.xlane.f32.xlu0 %v2578_v24  ;;  %2549 = vadd.xlane.f32.xlu1 %v2548_v58  ;;  %v2325_v55 = vpop.xlane.xlu0 %2324 }
 0x1b8   :  { %v2557_v31 = vadd.f32 %v2125_v28, %v2124_v21  ;;  %v2355_v32 = vpop.xlane.xlu1 %2354  ;;  %v4130_v34 = vsel %vm2653_vm3, %v4095_v33, %v2325_v55  ;;  %v1766_v36 = vpop.f32.mrb[104].mxu0 }
 0x1b9   :  { %v2156_v37 = vmax.f32 %v1766_v36, 0.0  ;;  %v1839_v16 = vpop.f32.mrb[104].mxu1  ;;  %v1768_v35 = vpop.f32.mrb[105].mxu0 }
 0x1ba   :  { %v2158_v38 = vmax.f32 %v1839_v16, 0.0  ;;  %v2157_v40 = vmax.f32 %v1768_v35, 0.0  ;;  %v1841_v41 = vpop.f32.mrb[105].mxu1  ;;  %v1770_v42 = vpop.f32.mrb[106].mxu0 }
 0x1bb   :  { %v2159_v45 = vmax.f32 %v1841_v41, 0.0  ;;  %v1843_v48 = vpop.f32.mrb[106].mxu1  ;;  %2573 = vadd.xlane.f32.xlu1 %v2572_v61  ;;  %2558 = vadd.xlane.f32.xlu0 %v2557_v31  ;;  %v4132_v49 = vpop.xlane.xlu0 %2348  ;;  %v2188_v47 = vmax.f32 %v1770_v42, 0.0 }
 0x1bc   :  { %v2560_v50 = vadd.f32 %v2157_v40, %v2156_v37  ;;  %v2190_v51 = vmax.f32 %v1843_v48, 0.0  ;;  %v1845_v33 = vpop.f32.mrb[107].mxu1  ;;  %v2358_v7 = vpop.xlane.xlu1 %2357 }
 0x1bd   :  { %v2584_v53 = vadd.f32 %v2159_v45, %v2158_v38  ;;  %v2191_v54 = vmax.f32 %v1845_v33, 0.0  ;;  %v2672_v56 = vsel %vm2671_vm5, %v4108_v14, %v2358_v7  ;;  %v1772_v52 = vpop.f32.mrb[107].mxu0 }
 0x1be   :  { %v2189_v57 = vmax.f32 %v1772_v52, 0.0 }
 0x1bf   :  { %v2587_v58 = vadd.f32 %v2191_v54, %v2190_v51  ;;  %2552 = vadd.xlane.f32.xlu1 %v2551_v3  ;;  %2582 = vadd.xlane.f32.xlu0 %v2581_v30  ;;  %v2328_v59 = vpop.xlane.xlu0 %2327 }
 0x1c0   :  { %v2563_v60 = vadd.f32 %v2189_v57, %v2188_v47  ;;  %v2660_v61 = vsel %vm2653_vm3, %v4098_v43, %v2328_v59  ;;  %v2382_v63 = vpop.xlane.xlu1 %2381  ;;  %v1776_v0 = vpop.f32.mrb[108].mxu0 }
 0x1c1   :  { %v4139_v1 = vsel %vm2680_vm6, %v2672_v56, %v2382_v63  ;;  %v2220_v2 = vmax.f32 %v1776_v0, 0.0  ;;  %v1849_v5 = vpop.f32.mrb[108].mxu1  ;;  %v1778_v9 = vpop.f32.mrb[109].mxu0  ;;  %v4142_v14 = vsel %vm2662_vm4, %v2660_v61, %v2352_v15 }
 0x1c2   :  { %v2222_v10 = vmax.f32 %v1849_v5, 0.0  ;;  %v2221_v39 = vmax.f32 %v1778_v9, 0.0  ;;  %v1851_v3 = vpop.f32.mrb[109].mxu1  ;;  %v1780_v12 = vpop.f32.mrb[110].mxu0 }
 0x1c3   :  { %v2223_v6 = vmax.f32 %v1851_v3, 0.0  ;;  %v1853_v13 = vpop.f32.mrb[110].mxu1  ;;  %2555 = vadd.xlane.f32.xlu1 %v2554_v19  ;;  %2585 = vadd.xlane.f32.xlu0 %v2584_v53  ;;  %v2331_v43 = vpop.xlane.xlu0 %2330  ;;  %v2252_v18 = vmax.f32 %v1780_v12, 0.0 }
 0x1c4   :  { %v2566_v11 = vadd.f32 %v2221_v39, %v2220_v2  ;;  %v2254_v17 = vmax.f32 %v1853_v13, 0.0  ;;  %v1855_v29 = vpop.f32.mrb[111].mxu1  ;;  %v2661_v20 = vsel %vm2653_vm3, %v4101_v62, %v2331_v43  ;;  %v2361_v21 = vpop.xlane.xlu1 %2360 }
 0x1c5   :  { %v2590_v22 = vadd.f32 %v2223_v6, %v2222_v10  ;;  %v2255_v15 = vmax.f32 %v1855_v29, 0.0  ;;  %v1782_v23 = vpop.f32.mrb[111].mxu0  ;;  %v4147_v24 = vsel %vm2662_vm4, %v2661_v20, %v2355_v32  ;;  %v2673_v19 = vsel %vm2671_vm5, %v4111_v27, %v2361_v21 }
 0x1c6   :  { %v2253_v25 = vmax.f32 %v1782_v23, 0.0 }
 0x1c7   :  { %v2593_v26 = vadd.f32 %v2255_v15, %v2254_v17  ;;  %2561 = vadd.xlane.f32.xlu1 %v2560_v50  ;;  %2564 = vadd.xlane.f32.xlu0 %v2563_v60  ;;  %v2385_v28 = vpop.xlane.xlu0 %2384 }
 0x1c8   :  { %v2569_v30 = vadd.f32 %v2253_v25, %v2252_v18  ;;  %v4152_v55 = vsel %vm2680_vm6, %v2673_v19, %v2385_v28  ;;  %v4154_v62 = vpop.xlane.xlu1 %2363  ;;  %v1892_v31 = vpop.f32.mrb[112].mxu0 }
 0x1c9   :  { %v2032_v36 = vmax.f32 %v1892_v31, 0.0  ;;  %v1965_v37 = vpop.f32.mrb[112].mxu1  ;;  %v1894_v16 = vpop.f32.mrb[113].mxu0 }
 0x1ca   :  { %v2034_v32 = vmax.f32 %v1965_v37, 0.0  ;;  %v2033_v35 = vmax.f32 %v1894_v16, 0.0  ;;  %v1967_v38 = vpop.f32.mrb[113].mxu1  ;;  %v1896_v40 = vpop.f32.mrb[114].mxu0 }
 0x1cb   :  { %v2035_v41 = vmax.f32 %v1967_v38, 0.0  ;;  %v1969_v42 = vpop.f32.mrb[114].mxu1  ;;  %2588 = vadd.xlane.f32.xlu0 %v2587_v58  ;;  %2567 = vadd.xlane.f32.xlu1 %v2566_v11  ;;  %v2391_v27 = vpop.xlane.xlu0 %2390  ;;  %v2064_v50 = vmax.f32 %v1896_v40, 0.0  ;;  %v2668_v40 = vsel %vm2662_vm4, %v4130_v34, %v4132_v49 }
 0x1cc   :  { %v2596_v45 = vadd.f32 %v2033_v35, %v2032_v36  ;;  %v2066_v48 = vmax.f32 %v1969_v42, 0.0  ;;  %v1971_v51 = vpop.f32.mrb[115].mxu1  ;;  %v4156_v47 = vpop.xlane.xlu1 %2387 }
 0x1cd   :  { %v2620_v33 = vadd.f32 %v2035_v41, %v2034_v32  ;;  %v2067_v7 = vmax.f32 %v1971_v51, 0.0  ;;  %v1898_v53 = vpop.f32.mrb[115].mxu0 }
 0x1ce   :  { %v2065_v54 = vmax.f32 %v1898_v53, 0.0 }
 0x1cf   :  { %v2623_v56 = vadd.f32 %v2067_v7, %v2066_v48  ;;  %2591 = vadd.xlane.f32.xlu0 %v2590_v22  ;;  %2621 = vadd.xlane.f32.xlu1 %v2620_v33  ;;  %v2397_v52 = vpop.xlane.xlu0 %2396 }
 0x1d0   :  { %v2599_v57 = vadd.f32 %v2065_v54, %v2064_v50  ;;  %v2367_v59 = vpop.xlane.xlu1 %2366  ;;  %v1902_v60 = vpop.f32.mrb[116].mxu0 }
 0x1d1   :  { %v2675_v58 = vsel %vm2671_vm5, %v4121_v4, %v2367_v59  ;;  %v2096_v61 = vmax.f32 %v1902_v60, 0.0  ;;  %v1904_v63 = vpop.f32.mrb[117].mxu0  ;;  %v1975_v0 = vpop.f32.mrb[116].mxu1 }
 0x1d2   :  { %v2097_v2 = vmax.f32 %v1904_v63, 0.0  ;;  %v2098_v5 = vmax.f32 %v1975_v0, 0.0  ;;  %v1906_v9 = vpop.f32.mrb[118].mxu0  ;;  %v1977_v10 = vpop.f32.mrb[117].mxu1  ;;  %v4161_v39 = vsel %vm2680_vm6, %v2675_v58, %v2391_v27 }
 0x1d3   :  { %2624 = vadd.xlane.f32.xlu1 %v2623_v56  ;;  %2570 = vadd.xlane.f32.xlu0 %v2569_v30  ;;  %v2128_v3 = vmax.f32 %v1906_v9, 0.0  ;;  %v2099_v12 = vmax.f32 %v1977_v10, 0.0  ;;  %v1908_v6 = vpop.f32.mrb[119].mxu0  ;;  %v1979_v13 = vpop.f32.mrb[118].mxu1 }
 0x1d4   :  { %v2602_v43 = vadd.f32 %v2097_v2, %v2096_v61  ;;  %v2400_v11 = vpop.xlane.xlu0 %2399  ;;  %v4163_v17 = vpop.xlane.xlu1 %2369  ;;  %v2129_v4 = vmax.f32 %v1908_v6, 0.0  ;;  %v2130_v18 = vmax.f32 %v1979_v13, 0.0 }
 0x1d5   :  { %v2626_v29 = vadd.f32 %v2099_v12, %v2098_v5  ;;  %v1981_v20 = vpop.f32.mrb[119].mxu1 }
 0x1d6   :  { %v2605_v21 = vadd.f32 %v2129_v4, %v2128_v3  ;;  %v2131_v22 = vmax.f32 %v1981_v20, 0.0 }
 0x1d7   :  { %2594 = vadd.xlane.f32.xlu0 %v2593_v26  ;;  %2603 = vadd.xlane.f32.xlu1 %v2602_v43 }
 0x1d8   :  { %v2629_v15 = vadd.f32 %v2131_v22, %v2130_v18  ;;  %v4165_v23 = vpop.xlane.xlu1 %2393  ;;  %v2379_v25 = vpop.xlane.xlu0 %2378 }
 0x1d9   :  { %v2679_v19 = vsel %vm2671_vm5, %v4147_v24, %v2379_v25  ;;  %v1912_v28 = vpop.f32.mrb[120].mxu0  ;;  %v1985_v30 = vpop.f32.mrb[120].mxu1 }
 0x1da   :  { %v2160_v31 = vmax.f32 %v1912_v28, 0.0  ;;  %v1914_v36 = vpop.f32.mrb[121].mxu0  ;;  %v2162_v37 = vmax.f32 %v1985_v30, 0.0  ;;  %v1987_v16 = vpop.f32.mrb[121].mxu1 }
 0x1db   :  { %2597 = vadd.xlane.f32.xlu0 %v2596_v45  ;;  %2627 = vadd.xlane.f32.xlu1 %v2626_v29  ;;  %v2161_v32 = vmax.f32 %v1914_v36, 0.0  ;;  %v1916_v35 = vpop.f32.mrb[122].mxu0  ;;  %v2163_v38 = vmax.f32 %v1987_v16, 0.0  ;;  %v1989_v26 = vpop.f32.mrb[122].mxu1 }
 0x1dc   :  { %v2373_v41 = vpop.xlane.xlu1 %2372  ;;  %v2403_v42 = vpop.xlane.xlu0 %2402  ;;  %v2192_v27 = vmax.f32 %v1916_v35, 0.0  ;;  %v2194_v24 = vmax.f32 %v1989_v26, 0.0 }
 0x1dd   :  { %v2677_v48 = vsel %vm2671_vm5, %v2668_v40, %v2373_v41  ;;  %v4174_v50 = vsel %vm2680_vm6, %v2679_v19, %v2403_v42  ;;  %v2608_v51 = vadd.f32 %v2161_v32, %v2160_v31  ;;  %v1918_v45 = vpop.f32.mrb[123].mxu0  ;;  %v2632_v33 = vadd.f32 %v2163_v38, %v2162_v37  ;;  %v1991_v7 = vpop.f32.mrb[123].mxu1 }
 0x1de   :  { %v2193_v53 = vmax.f32 %v1918_v45, 0.0  ;;  %v2195_v54 = vmax.f32 %v1991_v7, 0.0  ;;  %v4177_v56 = vsel %vm2680_vm6, %v2677_v48, %v2397_v52 }
 0x1df   :  { %2600 = vadd.xlane.f32.xlu0 %v2599_v57  ;;  %2630 = vadd.xlane.f32.xlu1 %v2629_v15 }
 0x1e0   :  { %v2611_v34 = vadd.f32 %v2193_v53, %v2192_v27  ;;  %v2376_v49 = vpop.xlane.xlu1 %2375  ;;  %v2406_v59 = vpop.xlane.xlu0 %2405  ;;  %v2635_v60 = vadd.f32 %v2195_v54, %v2194_v24 }
 0x1e1   :  { %v2678_v58 = vsel %vm2671_vm5, %v4142_v14, %v2376_v49  ;;  %v2690_v61 = vsel %vm2689_vm7, %v4139_v1, %v2406_v59  ;;  %v1922_v63 = vpop.f32.mrb[124].mxu0  ;;  %v1995_v0 = vpop.f32.mrb[124].mxu1  ;;  %v2780_v59 = vld [vmem:[%s4405_s3 + $0x8] sm:$0xff] }
 0x1e2   :  { %v2224_v2 = vmax.f32 %v1922_v63, 0.0  ;;  %v1924_v5 = vpop.f32.mrb[125].mxu0  ;;  %v2226_v9 = vmax.f32 %v1995_v0, 0.0  ;;  %v1997_v10 = vpop.f32.mrb[125].mxu1  ;;  %v2687_v52 = vsel %vm2680_vm6, %v2678_v58, %v2400_v11  ;;  %v2781_v0 = vld [vmem:[%s4405_s3 + $0x10] sm:$0xff] }
 0x1e3   :  { %2606 = vadd.xlane.f32.xlu0 %v2605_v21  ;;  %2609 = vadd.xlane.f32.xlu1 %v2608_v51  ;;  %v2225_v57 = vmax.f32 %v1924_v5, 0.0  ;;  %v1926_v3 = vpop.f32.mrb[126].mxu0  ;;  %v2227_v12 = vmax.f32 %v1997_v10, 0.0  ;;  %v1999_v6 = vpop.f32.mrb[126].mxu1  ;;  %v2786_v5 = vld [vmem:[%s4405_s3 + $0x38] sm:$0xff] }
 0x1e4   :  { %v2430_v13 = vpop.xlane.xlu1 %2429  ;;  %v2409_v43 = vpop.xlane.xlu0 %2408  ;;  %v2256_v14 = vmax.f32 %v1926_v3, 0.0  ;;  %v2258_v4 = vmax.f32 %v1999_v6, 0.0  ;;  %v2783_v3 = vld [vmem:[%s4405_s3 + $0x20] sm:$0xff]  ;;  %v2788_v6 = vld [vmem:[%s4405_s3 + $0x48] sm:$0xff] }
 0x1e5   :  { %v2691_v1 = vsel %vm2689_vm7, %v4152_v55, %v2409_v43  ;;  %v2614_v18 = vadd.f32 %v2225_v57, %v2224_v2  ;;  %v1928_v29 = vpop.f32.mrb[127].mxu0  ;;  %v2638_v20 = vadd.f32 %v2227_v12, %v2226_v9  ;;  %v2001_v22 = vpop.f32.mrb[127].mxu1  ;;  %v2674_v55 = vsel %vm2671_vm5, %v4116_v46, %v4154_v62  ;;  %v2784_v2 = vld [vmem:[%s4405_s3 + $0x28] sm:$0xff]  ;;  %v2785_v12 = vld [vmem:[%s4405_s3 + $0x30] sm:$0xff]  ;;  %v2790_v43 = vld [vmem:[%s4405_s3 + $0x58] sm:$0xff] }
 0x1e6   :  { %v2257_v15 = vmax.f32 %v1928_v29, 0.0  ;;  %v2259_v25 = vmax.f32 %v2001_v22, 0.0  ;;  %v2683_v31 = vsel %vm2680_vm6, %v2674_v55, %v4156_v47  ;;  %v2676_v47 = vsel %vm2671_vm5, %v4126_v44, %v4163_v17  ;;  %v2789_v22 = vld [vmem:[%s4405_s3 + $0x50] sm:$0xff]  ;;  %v2791_v55 = vld [vmem:[%s4405_s3 + $0x60] sm:$0xff] }
 0x1e7   :  { %2633 = vadd.xlane.f32.xlu1 %v2632_v33  ;;  %2612 = vadd.xlane.f32.xlu0 %v2611_v34  ;;  %v2685_v41 = vsel %vm2680_vm6, %v2676_v47, %v4165_v23  ;;  %v2699_v17 = vsel %vm2698_vm8, %v2690_v61, %v2430_v13  ;;  %v3458_v9 = vmov 0.0   ;;  %v3331_v57 = vpack.c.bf16 %v2786_v5, %v2784_v2 }
 0x1e8   :  { %v2617_v11 = vadd.f32 %v2257_v15, %v2256_v14  ;;  %v4186_v21 = vpop.xlane.xlu1 %2435  ;;  %v2433_v19 = vpop.xlane.xlu0 %2432  ;;  %v2641_v28 = vadd.f32 %v2259_v25, %v2258_v4  ;;  %2898 = vmatprep.mubr.f32.mxu0 %v3458_v9  ;;  %v3333_v14 = vpack.c.bf16 %v2785_v12, %v2783_v3  ;;  %v3335_v29 = vpack.c.bf16 %v2790_v43, %v2788_v6  ;;  %v2792_v25 = vld [vmem:[%s4405_s3 + $0x68] sm:$0xff] }
 0x1e9   :  { %v2700_v30 = vsel %vm2698_vm8, %v2691_v1, %v2433_v19 }
 0x1eb   :  { %2636 = vadd.xlane.f32.xlu1 %v2635_v60  ;;  %2618 = vadd.xlane.f32.xlu0 %v2617_v11  ;;  %v2782_v60 = vld [vmem:[%s4405_s3 + $0x18] sm:$0xff] }
 0x1ec   :  { %v4194_v36 = vpop.xlane.xlu1 %2441  ;;  %v2412_v37 = vpop.xlane.xlu0 %2411  ;;  %v3327_v63 = vpack.c.bf16 %v2782_v60, %v2780_v59  ;;  %v2794_v11 = vld [vmem:[%s4405_s3 + $0x78] sm:$0xff] }
 0x1ed   :  { %v2692_v16 = vsel %vm2689_vm7, %v2683_v31, %v2412_v37  ;;  %v2793_v31 = vld [vmem:[%s4405_s3 + $0x70] sm:$0xff] }
 0x1ee   :  { %3328 = vmatprep.subr.bf16.mxu0 %v3327_v63  ;;  %v2701_v1 = vsel %vm2698_vm8, %v2692_v16, %v4186_v21 }
 0x1ef   :  { %2615 = vadd.xlane.f32.xlu1 %v2614_v18 }
 0x1f0   :  { %v2445_v32 = vpop.xlane.xlu1 %2444  ;;  %v2415_v35 = vpop.xlane.xlu0 %2414 }
 0x1f1   :  { %v2693_v38 = vsel %vm2689_vm7, %v4161_v39, %v2415_v35 }
 0x1f3   :  { %2639 = vadd.xlane.f32.xlu1 %v2638_v20  ;;  %v2787_v20 = vld [vmem:[%s4405_s3 + $0x40] sm:$0xff] }
 0x1f4   :  { %v2439_v26 = vpop.xlane.xlu0 %2438  ;;  %v2424_v40 = vpop.xlane.xlu1 %2423  ;;  %v3337_v21 = vpack.c.bf16 %v2789_v22, %v2787_v20 }
 0x1f5   :  { %v4200_v46 = vsel %vm2698_vm8, %v2693_v38, %v2439_v26  ;;  %v2696_v62 = vsel %vm2689_vm7, %v2687_v52, %v2424_v40 }
 0x1f7   :  { %2642 = vadd.xlane.f32.xlu1 %v2641_v28 }
 0x1f8   :  { %v2418_v42 = vpop.xlane.xlu0 %2417  ;;  %v2448_v27 = vpop.xlane.xlu1 %2447 }
 0x1f9   :  { %v4209_v39 = vsel %vm2689_vm7, %v2685_v41, %v2418_v42  ;;  %v4212_v24 = vsel %vm2698_vm8, %v2696_v62, %v2448_v27 }
 0x1fa   :  { %v2703_v47 = vsel %vm2698_vm8, %v4209_v39, %v4194_v36 }
 0x1fc   :  { %v2421_v48 = vpop.xlane.xlu0 %2420  ;;  %v2451_v51 = vpop.xlane.xlu1 %2450 }
 0x1fd   :  { %v2695_v45 = vsel %vm2689_vm7, %v4177_v56, %v2421_v48 }
 0x1fe   :  { %v2704_v44 = vsel %vm2698_vm8, %v2695_v45, %v2445_v32  ;;  %v3341_v32 = vpack.c.bf16 %v2793_v31, %v2791_v55 }
 0x200   :  { %v2427_v33 = vpop.xlane.xlu0 %2426  ;;  %v2454_v23 = vpop.xlane.xlu1 %2453 }
 0x201   :  { %v2697_v7 = vsel %vm2689_vm7, %v4174_v50, %v2427_v33  ;;  %v2708_v53 = vsel %vm2707_vm9, %v2699_v17, %v2454_v23  ;;  %v2779_v50 = vld [vmem:[%s4405_s3] sm:$0xff] }
 0x202   :  { %v4222_v54 = vsel %vm2698_vm8, %v2697_v7, %v2451_v51  ;;  %v3329_v52 = vpack.c.bf16 %v2781_v0, %v2779_v50 }
 0x204   :  { %v2481_v34 = vpop.xlane.xlu0 %2480  ;;  %v2478_v49 = vpop.xlane.xlu1 %2477  ;;  %3330 = vmatpush1.bf16.msra.mxu0 %v3329_v52 }
 0x205   :  { %v4225_v56 = vsel %vm2716_vm10, %v2708_v53, %v2478_v49  ;;  %3332 = vmatprep.subr.bf16.mxu0 %v3331_v57 }
 0x208   :  { %v2487_v58 = vpop.xlane.xlu0 %2486  ;;  %v2457_v61 = vpop.xlane.xlu1 %2456  ;;  %3334 = vmatpush1.bf16.msra.mxu0 %v3333_v14 }
 0x209   :  { %v2709_v10 = vsel %vm2707_vm9, %v2700_v30, %v2457_v61  ;;  %3336 = vmatprep.subr.bf16.mxu0 %v3335_v29  ;;  %v3339_v30 = vpack.c.bf16 %v2794_v11, %v2792_v25 }
 0x20a   :  { %v2718_v13 = vsel %vm2716_vm10, %v2709_v10, %v2481_v34 }
 0x20c   :  { %v2490_v4 = vpop.xlane.xlu0 %2489  ;;  %v2460_v18 = vpop.xlane.xlu1 %2459  ;;  %3338 = vmatpush1.bf16.msra.mxu0 %v3337_v21 }
 0x20d   :  { %v2710_v15 = vsel %vm2707_vm9, %v2701_v1, %v2460_v18  ;;  %3340 = vmatprep.subr.bf16.mxu0 %v3339_v30 }
 0x210   :  { %v2484_v19 = vpop.xlane.xlu1 %2483  ;;  %v2469_v28 = vpop.xlane.xlu0 %2468  ;;  %3342 = vmatpush1.bf16.msra.mxu0 %v3341_v32 }
 0x211   :  { %v2719_v37 = vsel %vm2716_vm10, %v2710_v15, %v2484_v19  ;;  %v2713_v16 = vsel %vm2707_vm9, %v2704_v44, %v2469_v28 }
 0x214   :  { %v2463_v35 = vpop.xlane.xlu1 %2462  ;;  %v2493_v38 = vpop.xlane.xlu0 %2492 }
 0x215   :  { %v2711_v26 = vsel %vm2707_vm9, %v4200_v46, %v2463_v35  ;;  %v2722_v40 = vsel %vm2716_vm10, %v2713_v16, %v2493_v38 }
 0x216   :  { %v2720_v62 = vsel %vm2716_vm10, %v2711_v26, %v2487_v58 }
 0x218   :  { %v2466_v41 = vpop.xlane.xlu1 %2465  ;;  %v2496_v42 = vpop.xlane.xlu0 %2495 }
 0x219   :  { %v2712_v27 = vsel %vm2707_vm9, %v2703_v47, %v2466_v41 }
 0x21a   :  { %v2721_v48 = vsel %vm2716_vm10, %v2712_v27, %v2490_v4 }
 0x21c   :  { %v2472_v51 = vpop.xlane.xlu1 %2471  ;;  %v2475_v45 = vpop.xlane.xlu0 %2474 }
 0x21d   :  { %v2714_v46 = vsel %vm2707_vm9, %v4212_v24, %v2472_v51  ;;  %v2715_v44 = vsel %vm2707_vm9, %v4222_v54, %v2475_v45 }
 0x21e   :  { %v2723_v17 = vsel %vm2716_vm10, %v2714_v46, %v2496_v42 }
 0x220   :  { %v2526_v33 = vpop.xlane.xlu1 %2525  ;;  %v2499_v23 = vpop.xlane.xlu0 %2498 }
 0x221   :  { %v2724_v36 = vsel %vm2716_vm10, %v2715_v44, %v2499_v23 }
 0x224   :  { %v2532_v39 = vpop.xlane.xlu1 %2531  ;;  %v2502_v7 = vpop.xlane.xlu0 %2501 }
 0x225   :  { %v2726_v53 = vsel %vm2725_vm11, %v4225_v56, %v2502_v7 }
 0x226   :  { %v2735_v34 = vsel %vm2734_vm12, %v2726_v53, %v2526_v33 }
 0x228   :  { %v2535_v49 = vpop.xlane.xlu1 %2534  ;;  %v2505_v24 = vpop.xlane.xlu0 %2504 }
 0x229   :  { %v2727_v59 = vsel %vm2725_vm11, %v2718_v13, %v2505_v24 }
 0x22c   :  { %v2529_v54 = vpop.xlane.xlu0 %2528  ;;  %v2514_v60 = vpop.xlane.xlu1 %2513 }
 0x22d   :  { %v2730_v50 = vsel %vm2725_vm11, %v2721_v48, %v2514_v60  ;;  %v2736_v41 = vsel %vm2734_vm12, %v2727_v59, %v2529_v54 }
 0x230   :  { %v2508_v58 = vpop.xlane.xlu0 %2507  ;;  %v2538_v61 = vpop.xlane.xlu1 %2537 }
 0x231   :  { %v2728_v63 = vsel %vm2725_vm11, %v2719_v37, %v2508_v58  ;;  %v4305_v0 = vsel %vm2734_vm12, %v2730_v50, %v2538_v61 }
 0x232   :  { %v2737_v2 = vsel %vm2734_vm12, %v2728_v63, %v2532_v39 }
 0x234   :  { %v2511_v56 = vpop.xlane.xlu0 %2510  ;;  %v2541_v5 = vpop.xlane.xlu1 %2540 }
 0x235   :  { %v2729_v10 = vsel %vm2725_vm11, %v2720_v62, %v2511_v56 }
 0x236   :  { %v2738_v52 = vsel %vm2734_vm12, %v2729_v10, %v2535_v49 }
 0x238   :  { %v2517_v57 = vpop.xlane.xlu0 %2516  ;;  %v2520_v3 = vpop.xlane.xlu1 %2519 }
 0x239   :  { %v2731_v12 = vsel %vm2725_vm11, %v2722_v40, %v2517_v57  ;;  %v2732_v6 = vsel %vm2725_vm11, %v2723_v17, %v2520_v3 }
 0x23a   :  { %v4313_v13 = vsel %vm2734_vm12, %v2731_v12, %v2541_v5 }
 0x23c   :  { %v2544_v43 = vpop.xlane.xlu1 %2543  ;;  %v2523_v14 = vpop.xlane.xlu0 %2522 }
 0x23d   :  { %v4316_v4 = vsel %vm2734_vm12, %v2732_v6, %v2544_v43  ;;  %v2733_v1 = vsel %vm2725_vm11, %v2724_v36, %v2523_v14 }
 0x240   :  { %v2547_v18 = vpop.xlane.xlu1 %2546  ;;  %v2577_v29 = vpop.xlane.xlu0 %2576 }
 0x241   :  { %v4320_v20 = vsel %vm2734_vm12, %v2733_v1, %v2547_v18 }
 0x244   :  { %v2580_v22 = vpop.xlane.xlu0 %2579  ;;  %v2550_v15 = vpop.xlane.xlu1 %2549 }
 0x245   :  { %v2744_v47 = vsel %vm2743_vm13, %v2735_v34, %v2550_v15 }
 0x248   :  { %v2574_v25 = vpop.xlane.xlu1 %2573  ;;  %v2559_v11 = vpop.xlane.xlu0 %2558 }
 0x249   :  { %v2753_v42 = vsel %vm2752_vm14, %v2744_v47, %v2574_v25  ;;  %v2747_v49 = vsel %vm2743_vm13, %v2738_v52, %v2559_v11 }
 0x24c   :  { %v2553_v21 = vpop.xlane.xlu1 %2552  ;;  %v2583_v19 = vpop.xlane.xlu0 %2582 }
 0x24d   :  { %v2745_v51 = vsel %vm2743_vm13, %v2736_v41, %v2553_v21  ;;  %v2756_v59 = vsel %vm2752_vm14, %v2747_v49, %v2583_v19 }
 0x24e   :  { %v2754_v44 = vsel %vm2752_vm14, %v2745_v51, %v2577_v29 }
 0x250   :  { %v2556_v28 = vpop.xlane.xlu1 %2555  ;;  %v2586_v30 = vpop.xlane.xlu0 %2585 }
 0x251   :  { %v2746_v23 = vsel %vm2743_vm13, %v2737_v2, %v2556_v28 }
 0x252   :  { %v2755_v7 = vsel %vm2752_vm14, %v2746_v23, %v2580_v22 }
 0x254   :  { %v2562_v55 = vpop.xlane.xlu1 %2561  ;;  %v2565_v31 = vpop.xlane.xlu0 %2564 }
 0x255   :  { %v2748_v58 = vsel %vm2743_vm13, %v4305_v0, %v2562_v55  ;;  %v2749_v52 = vsel %vm2743_vm13, %v4313_v13, %v2565_v31 }
 0x256   :  { %v2757_v63 = vsel %vm2752_vm14, %v2748_v58, %v2586_v30 }
 0x258   :  { %v2589_v37 = vpop.xlane.xlu0 %2588  ;;  %v2568_v16 = vpop.xlane.xlu1 %2567 }
 0x259   :  { %v2758_v57 = vsel %vm2752_vm14, %v2749_v52, %v2589_v37  ;;  %v2750_v12 = vsel %vm2743_vm13, %v4316_v4, %v2568_v16 }
 0x25c   :  { %v2592_v32 = vpop.xlane.xlu0 %2591  ;;  %v2622_v35 = vpop.xlane.xlu1 %2621 }
 0x25d   :  { %v2759_v43 = vsel %vm2752_vm14, %v2750_v12, %v2592_v32 }
 0x260   :  { %v2625_v38 = vpop.xlane.xlu1 %2624  ;;  %v2571_v26 = vpop.xlane.xlu0 %2570 }
 0x261   :  { %v2751_v29 = vsel %vm2743_vm13, %v4320_v20, %v2571_v26 }
 0x264   :  { %v2595_v40 = vpop.xlane.xlu0 %2594  ;;  %v2604_v62 = vpop.xlane.xlu1 %2603 }
 0x265   :  { %v2764_v24 = vsel %vm2761_vm0, %v2755_v7, %v2604_v62  ;;  %v2760_v22 = vsel %vm2752_vm14, %v2751_v29, %v2595_v40 }
 0x268   :  { %v2598_v27 = vpop.xlane.xlu0 %2597  ;;  %v2628_v48 = vpop.xlane.xlu1 %2627 }
 0x269   :  { %v2762_v45 = vsel %vm2761_vm0, %v2753_v42, %v2598_v27  ;;  %v2773_v54 = vsel %vm2770_vm15, %v2764_v24, %v2628_v48 }
 0x26a   :  { %v2771_v46 = vsel %vm2770_vm15, %v2762_v45, %v2622_v35 }
 0x26b   :  { %2795 = vxpose.xlu0.b32.start [1/8] (short) (narrow) %v2771_v46, 16 }
 0x26c   :  { %v2601_v17 = vpop.xlane.xlu0 %2600  ;;  %v2631_v33 = vpop.xlane.xlu1 %2630 }
 0x26d   :  { %v2763_v36 = vsel %vm2761_vm0, %v2754_v44, %v2601_v17  ;;  %v3011_v17 = vstv %s4402_s0 }
 0x26e   :  { %v2772_v39 = vsel %vm2770_vm15, %v2763_v36, %v2625_v38 }
 0x26f   :  { %2796 = vxpose.xlu0.b32.cont [2/8] (short) (narrow) %v2772_v39, 16 }
 0x270   :  { %v2607_v53 = vpop.xlane.xlu0 %2606  ;;  %v2610_v34 = vpop.xlane.xlu1 %2609 }
 0x271   :  { %v2765_v60 = vsel %vm2761_vm0, %v2756_v59, %v2607_v53  ;;  %v2766_v56 = vsel %vm2761_vm0, %v2757_v63, %v2610_v34  ;;  %v3043_v34 = vld [vmem:[%s4406_s4] sm:$0xff] }
 0x272   :  { %v2774_v61 = vsel %vm2770_vm15, %v2765_v60, %v2631_v33 }
 0x273   :  { %2797 = vxpose.xlu0.b32.cont [3/8] (short) (narrow) %v2773_v54, 16 }
 0x274   :  { %v2634_v50 = vpop.xlane.xlu1 %2633  ;;  %v2613_v5 = vpop.xlane.xlu0 %2612 }
 0x275   :  { %v2775_v10 = vsel %vm2770_vm15, %v2766_v56, %v2634_v50  ;;  %v2767_v0 = vsel %vm2761_vm0, %v2758_v57, %v2613_v5  ;;  %v3044_v56 = vld [vmem:[%s4406_s4 + $0x8] sm:$0xff]  ;;  %s3459_s4 = smov [#allocation3]  }
 0x276   :  { %s3077_s15 = sshll.u32 %s3459_s4, 4  ;;  %s3078_s15 = int_to_ptr.vmem [resolvable:$true] %s3077_s15 }
 0x277   :  { %2798 = vxpose.xlu0.b32.cont [4/8] (short) (narrow) %v2774_v61, 16  ;;  %s3409_s16 = scalar_lea.vmem %s3078_s15, 256  ;;  %p3414_p1 = scmp.lt.s32.totalorder %s3078_s15, %s3078_s15 }
 0x278   :  { %v2637_v2 = vpop.xlane.xlu1 %2636  ;;  %v2619_v18 = vpop.xlane.xlu0 %2618  ;;  %p3410_p0 = scmp.ne.s32.totalorder %s3078_s15, %s3409_s16  ;;  %p3415_p2 = scmp.lt.s32.totalorder %s3409_s16, %s3409_s16 }
 0x279   :  { %v2776_v6 = vsel %vm2770_vm15, %v2767_v0, %v2637_v2  ;;  %v2769_v15 = vsel %vm2761_vm0, %v2760_v22, %v2619_v18 }
 0x27a   :  { %p3416_p3 = por %p3415_p2, %p3414_p1 }
 0x27b   :  { %2799 = vxpose.xlu0.b32.cont [5/8] (short) (narrow) %v2775_v10, 16 }
 0x27c   :  { %v2616_v3 = vpop.xlane.xlu1 %2615  ;;  %p3417_p4 = pnand %p3416_p3, %p3410_p0 }
 0x27d   :  { %v2768_v14 = vsel %vm2761_vm0, %v2759_v43, %v2616_v3  ;;  %v3041_v3 = vlaneseq }
 0x27f   :  { %2800 = vxpose.xlu0.b32.cont [6/8] (short) (narrow) %v2776_v6, 16 }
 0x280   :  { %v2640_v1 = vpop.xlane.xlu1 %2639 }
 0x281   :  { %v2777_v13 = vsel %vm2770_vm15, %v2768_v14, %v2640_v1  ;;  %v3042_v14 = vand.u32 127, %v3041_v3 }
 0x283   :  { %2801 = vxpose.xlu0.b32.cont [7/8] (short) (narrow) %v2777_v13, 16 }
 0x284   :  { %v2643_v4 = vpop.xlane.xlu1 %2642 }
 0x285   :  { %v2778_v25 = vsel %vm2770_vm15, %v2769_v15, %v2643_v4 }
 0x287   :  { %2802 = vxpose.xlu0.b32.end [8/8] (short) (narrow) %v2778_v25, 16 }
 0x2b0   :  { %3356 = vset.pattern.permute.xlu0 %v3457_v8 }
 0x2eb   :  { %v2811_v11 = vpop.trf.xlu0 }
 0x2ec   :  { %3314 = vmatmul.mubr.msk.f32.vlgmr.msra.gmra.mrb[128].mxu0 %vm2827_vm1, %v2811_v11 }
 0x2ed   :  { %2904 = vmatprep.mubr.f32.mxu0 %v3458_v9 }
 0x2ef   :  { %v2812_v21 = vpop.trf.xlu0 }
 0x2f0   :  { %3315 = vmatmul.mubr.msk.f32.gmra.mrb[130].mxu0 %vm2827_vm1, %v2812_v21 }
 0x3bf   :  { %v2900_v19 = vpop.f32.mrb[128].mxu0 }
 0x3c0   :  { %v2902_v20 = vpop.f32.mrb[129].mxu0  ;;  %v2911_v37 = vmul.f32 %v2900_v19, %v2900_v19 }
 0x3c1   :  { %v2923_v28 = vmul.f32 %v2902_v20, %v2902_v20 }
 0x3c3   :  { %2925 = vadd.xlane.f32.xlu1 %v2923_v28  ;;  %v2906_v30 = vpop.f32.mrb[130].mxu0 }
 0x3c4   :  { %v2908_v55 = vpop.f32.mrb[131].mxu0  ;;  %v2912_v16 = vmul.f32 %v2906_v30, %v2906_v30 }
 0x3c5   :  { %v2924_v31 = vmul.f32 %v2908_v55, %v2908_v55 }
 0x3c7   :  { %2927 = vadd.xlane.f32.xlu1 %v2924_v31 }
 0x3cb   :  { %2913 = vadd.xlane.f32.xlu1 %v2911_v37 }
 0x3cf   :  { %2915 = vadd.xlane.f32.xlu1 %v2912_v16 }
 0x450   :  { %v2926_v8 = vpop.xlane.xlu1 %2925 }
 0x451   :  { %v2929_v32 = vmax.f32 %v2926_v8, 1e-24 }
 0x453   :  { %3393 = vrsqrt.f32 %v2929_v32 }
 0x454   :  { %v2928_v35 = vpop.xlane.xlu1 %2927 }
 0x455   :  { %v2930_v38 = vmax.f32 %v2928_v35, 1e-24 }
 0x457   :  { %3395 = vrsqrt.f32 %v2930_v38 }
 0x458   :  { %v2914_v9 = vpop.xlane.xlu1 %2913 }
 0x459   :  { %v2917_v26 = vmax.f32 %v2914_v9, 1e-24 }
 0x45b   :  { %3397 = vrsqrt.f32 %v2917_v26 }
 0x45c   :  { %v2916_v40 = vpop.xlane.xlu1 %2915 }
 0x45d   :  { %v2918_v62 = vmax.f32 %v2916_v40, 1e-24  ;;  %v3394_v47 = vpop.eup %3393 }
 0x45e   :  { %v2933_v42 = vmul.f32 %v3394_v47, %v2902_v20 }
 0x45f   :  { %3399 = vrsqrt.f32 %v2918_v62 }
 0x461   :  { %v3396_v41 = vpop.eup %3395 }
 0x462   :  { %v2934_v27 = vmul.f32 %v3396_v41, %v2908_v55 }
 0x464   :  { %v3343_v48 = vpack.c.bf16 %v2934_v27, %v2933_v42 }
 0x465   :  { %v3398_v51 = vpop.eup %3397 }
 0x466   :  { %3344 = vmatprep.subr.bf16.mxu1 %v3343_v48  ;;  %v2921_v45 = vmul.f32 %v3398_v51, %v2900_v19 }
 0x467   :  { %3346 = vmatpush3.bf16.xpose.msra.mxu1 %v3343_v48 }
 0x468   :  { %3324 = vmatprep.mubr.f32.mxu1 %v2921_v45 }
 0x469   :  { %v3400_v46 = vpop.eup %3399 }
 0x46a   :  { %v2922_v44 = vmul.f32 %v3400_v46, %v2906_v30 }
 0x46e   :  { %3325 = vmatmul.mubr.f32.vlgmr.msra.gmra.mrb[128].mxu1 %v2922_v44 }
 0x541   :  { %v3326_v33 = vpop.f32.mrb[128].mxu1 }
 0x542   :  { %v3013_v23 = vmul.f32 %v3326_v33, %v3011_v17  ;;  %v3001_v36 = vpop.f32.mrb[129].mxu1 }
 0x543   :  { %v3012_v39 = vmul.f32 %v3011_v17, %v3001_v36 }
 0x544   :  { %3016 = vst.msk [vmem:[#allocation3 + $0x8] sm:$0xff] %vm3014_vm2, %v3013_v23  ;;  %v3020_v53 = vsel %vm3014_vm2, %v3013_v23, -inf }
 0x545   :  { %3015 = vst.msk [vmem:[#allocation3] sm:$0xff] %vm3014_vm2, %v3012_v39  ;;  %v3017_v7 = vsel %vm3014_vm2, %v3012_v39, -inf }
 0x546   :  { %3018 = vmax.xlane.f32.xlu1 %v3017_v7 }
 0x54a   :  { %3021 = vmax.xlane.f32.xlu1 %v3020_v53 }
 0x55b   :  { %3046 = vperm.xlu1 %3355, %v3043_v34  }
 0x5d3   :  { %v3019_v49 = vpop.xlane.xlu1 %3018 }
 0x5d4   :  { %v3023_v24 = vsub.f32 %v3012_v39, %v3019_v49 }
 0x5d6   :  { %v3025_v60 = vmul.f32 1.442695, %v3023_v24 }
 0x5d7   :  { %v3022_v59 = vpop.xlane.xlu1 %3021 }
 0x5d8   :  { %v3024_v54 = vsub.f32 %v3013_v23, %v3022_v59 }
 0x5da   :  { %v3027_v50 = vmul.f32 1.442695, %v3024_v54 }
 0x5db   :  { %v3047_v5 = vpop.permute.xlu1 %3046 }
 0x5dc   :  { %3401 = vpow2.f32 %v3027_v50  ;;  %vm3051_vm4 = vcmp.eq.s32.totalorder %v3042_v14, %v3047_v5 }
 0x5dd   :  { %3403 = vpow2.f32 %v3025_v60 }
 0x5e6   :  { %v3402_v58 = vpop.eup %3401 }
 0x5e7   :  { %v3032_v61 = vsel %vm3014_vm2, %v3402_v58, 0.0  ;;  %v3404_v63 = vpop.eup %3403 }
 0x5e8   :  { %3033 = vadd.xlane.f32.xlu1 %v3032_v61  ;;  %v3029_v2 = vsel %vm3014_vm2, %v3404_v63, 0.0 }
 0x5ec   :  { %3030 = vadd.xlane.f32.xlu1 %v3029_v2 }
 0x5fd   :  { %3049 = vperm.xlu1 %3355, %v3044_v56  }
 0x675   :  { %v3034_v10 = vpop.xlane.xlu1 %3033 }
 0x676   :  { %3405 = vlog2.f32 %v3034_v10 }
 0x679   :  { %v3031_v52 = vpop.xlane.xlu1 %3030 }
 0x67a   :  { %3407 = vlog2.f32 %v3031_v52 }
 0x67d   :  { %v3050_v6 = vpop.permute.xlu1 %3049 }
 0x67e   :  { %vm3052_vm3 = vcmp.eq.s32.totalorder %v3042_v14, %v3050_v6 }
 0x680   :  { %v3406_v57 = vpop.eup %3405 }
 0x681   :  { %v3038_v0 = vmul.f32 0.6931472, %v3406_v57 }
 0x683   :  { %v3040_v12 = vsub.f32 %v3024_v54, %v3038_v0 }
 0x684   :  { %v3408_v43 = vpop.eup %3407 }
 0x685   :  { %v3036_v1 = vmul.f32 0.6931472, %v3408_v43  ;;  %v3054_v13 = vsel %vm3052_vm3, %v3040_v12, 0.0 }
 0x686   :  { %v3056_v15 = vsel %vm3014_vm2, %v3054_v13, 0.0 }
 0x687   :  { %v3039_v18 = vsub.f32 %v3023_v24, %v3036_v1 }
 0x689   :  { %v3053_v29 = vsel %vm3051_vm4, %v3039_v18, 0.0 }
 0x68a   :  { %v3055_v22 = vsel %vm3014_vm2, %v3053_v29, 0.0 }
 0x68b   :  { %v3057_v4 = vadd.f32 %v3056_v15, %v3055_v22 }
 0x68d   :  { %3058 = vadd.xlane.f32.xlu1 %v3057_v4 }
 0x68e   :  { %3420 = shalt.err (!%p3417_p4)
}
 0x68f   :  { %s3421_s19 = scalar_lea.hbm %s4407_s5, 256 }
 0x690   :  { %p3422_p5 = scmp.ne.s32.totalorder %s4407_s5, %s3421_s19  ;;  %p3425_p6 = scmp.lt.u32.totalorder %s3421_s19, %s4407_s5 }
 0x692   :  { %p3427_p7 = pnand %p3425_p6, %p3422_p5 }
 0x694   :  { %3430 = shalt.err (!%p3427_p7)
}
 0x695   :  { %s3460_s24 = smov 128   ;;  %s3461_s2 = smov 8   ;;  %vm3070_vm5 = vcmask 0  }
 0x696   :  { %3083 = dma.vmem_to_hbm [thread:$0]  %s3078_s15, 256, %s4407_s5, [#allocation4], %s3460_s24, %s3460_s24, %s3461_s2  }
 0x697   :  { %s3462_s28 = smov [#allocation5]  }
 0x698   :  { %s3090_s29 = sshll.u32 %s3462_s28, 4  ;;  %s3091_s29 = int_to_ptr.vmem [resolvable:$true] %s3090_s29 }
 0x699   :  { %s3431_s1 = scalar_lea.vmem %s3091_s29, 16  ;;  %s3435_s5 = scalar_lea.vmem %s3091_s29, 32 }
 0x69a   :  { %p3432_p8 = scmp.ne.s32.totalorder %s3091_s29, %s3431_s1  ;;  %p3436_p9 = scmp.lt.s32.totalorder %s3091_s29, %s3091_s29 }
 0x69b   :  { %p3437_p10 = scmp.lt.s32.totalorder %s3435_s5, %s3431_s1 }
 0x69d   :  { %p3438_p11 = por %p3437_p10, %p3436_p9 }
 0x69f   :  { %p3439_p12 = pnand %p3438_p11, %p3432_p8 }
 0x71a   :  { %v3059_v25 = vpop.xlane.xlu1 %3058 }
 0x71b   :  { %v3060_v11 = vrot.slane %v3059_v25, 4 }
 0x71d   :  { %v3061_v21 = vadd.f32 %v3060_v11, %v3059_v25 }
 0x71f   :  { %v3062_v19 = vrot.slane %v3061_v21, 2 }
 0x721   :  { %v3063_v20 = vadd.f32 %v3062_v19, %v3061_v21 }
 0x723   :  { %v3064_v28 = vrot.slane %v3063_v20, 1 }
 0x725   :  { %v3065_v30 = vadd.f32 %v3064_v28, %v3063_v20 }
 0x727   :  { %3347 = vpush %v3065_v30 }
 0x758   :  { %s3348_s27 = spop %3347 }
 0x759   :  { %v3067_v55 = vstv %s3348_s27 }
 0x75a   :  { %v3068_v31 = vsub.f32 0.0, %v3067_v55 }
 0x75c   :  { %v3069_v37 = vmul.f32 0.0625, %v3068_v31 }
 0x75e   :  { %3071 = vst.msk [vmem:[#allocation5] sm:$0x1] %vm3070_vm5, %v3069_v37 }
 0x75f   :  { %3442 = shalt.err (!%p3439_p12)
}
 0x760   :  { %s3443_s8 = scalar_lea.hbm %s4408_s6, 16 }
 0x761   :  { %p3444_p13 = scmp.ne.s32.totalorder %s4408_s6, %s3443_s8  ;;  %p3447_p0 = scmp.lt.u32.totalorder %s3443_s8, %s4408_s6 }
 0x763   :  { %p3449_p1 = pnand %p3447_p0, %p3444_p13 }
 0x765   :  { %3452 = shalt.err (!%p3449_p1)
}
 0x766   :  { %3093 = dma.vmem_to_hbm [thread:$0]  %s3091_s29, 16, %s4408_s6, [#allocation6]  }
 0x767   :  { %3453 = dma.done.wait [#allocation4], 256  }
 0x768   :  { %3454 = vsyncadd [#allocation4], 4294967040 }
 0x769   :  { %3455 = dma.done.wait [#allocation6], 16  }
 0x76a   :  { %3456 = vsyncadd [#allocation6], 4294967280 }
 0x76b   :  { %3100 = vsyncpa [#allocation4], 1 }
 0x76c   :  { %3101 = vsyncpa [#allocation6], 1 }

</bundles_post_ra>
